<compile_context>
chip_gen: v6e
topology: v6e:2x2x1
jax: 0.10.0
libtpu: 0.0.40
codegen_flags: <defaults>
</compile_context>

<pallas_src>
import jax
import jax.numpy as jnp
from jax import lax
from jax.experimental import pallas as pl
from jax.experimental.pallas import tpu as pltpu


# ---------------------------------------------------------------------------
# Fused DoubleConv kernel
# ---------------------------------------------------------------------------
def _double_conv_kernel(x_ref, w1_ref, b1_ref, w2_ref, b2_ref, o_ref,
                        xp_s, col1_s, mid_s, col2_s):
    # x_ref : (1, H, W, Cin)      NHWC input tile (natural channel count)
    # w1_ref: (9*Cin_p, Cmid_p)   im2col-packed conv1 weights (BN1 scale folded)
    # b1_ref: (1, Cmid_p)         folded BN1 bias
    # w2_ref: (9*Cmid_p, Cout_p)  im2col-packed conv2 weights (BN2 scale folded)
    # b2_ref: (1, Cout_p)         folded BN2 bias
    # o_ref : (1, Cout, H*W)      output tile (NCHW with flattened spatial)
    # xp_s  : (H+2, W+2, Cin_p)   zero-haloed stage-1 input (VMEM scratch)
    # col1_s: (H*W, 9*Cin_p)      stage-1 im2col slab
    # mid_s : (H+2, W+2, Cmid_p)  zero-haloed stage-1 output
    # col2_s: (H*W, 9*Cmid_p)     stage-2 im2col slab
    H = xp_s.shape[0] - 2
    W = xp_s.shape[1] - 2
    cin = x_ref.shape[3]
    cin_p = xp_s.shape[2]
    cmid_p = mid_s.shape[2]
    cout = o_ref.shape[1]

    def conv_stage(src_s, col_s, c_p, w_ref, b_ref):
        # Build the (H*W, 9*c_p) im2col slab from 9 statically shifted windows
        # of the zero-haloed image, then one MXU matmul + bias + ReLU epilogue.
        for dy in range(3):
            for dx in range(3):
                t = dy * 3 + dx
                col_s[:, t * c_p:(t + 1) * c_p] = (
                    src_s[dy:dy + H, dx:dx + W, :].reshape(H * W, c_p))
        y = jnp.dot(col_s[...], w_ref[...],
                    preferred_element_type=jnp.float32)
        return jnp.maximum(y + b_ref[...], 0.0)

    # Stage 1: halo (padding=1) and channel pad (Cin -> Cin_p) handled in VMEM.
    xp_s[...] = jnp.zeros_like(xp_s)
    xp_s[1:H + 1, 1:W + 1, :cin] = x_ref[0].astype(jnp.float32)
    y1 = conv_stage(xp_s, col1_s, cin_p, w1_ref, b1_ref)       # (H*W, Cmid_p)

    # Stage 2: intermediate never leaves VMEM (fused).
    mid_s[...] = jnp.zeros_like(mid_s)
    mid_s[1:H + 1, 1:W + 1, :] = y1.reshape(H, W, cmid_p)
    y2 = conv_stage(mid_s, col2_s, cmid_p, w2_ref, b2_ref)     # (H*W, Cout_p)

    # Lane-dense store: (Cout, H*W) last dim is a multiple of 128 and the
    # layout is already NCHW (spatial flattened) -> no wrapper transpose.
    o_ref[0] = y2.T[:cout, :].astype(o_ref.dtype)


# ---------------------------------------------------------------------------
# Wrapper / parameter packing
# ---------------------------------------------------------------------------
def _round_up(c, m=128):
    return ((c + m - 1) // m) * m


def _fold_bn(gamma, beta, mean, var, eps=1e-5):
    scale = gamma / jnp.sqrt(var + eps)
    bias = beta - mean * scale
    return scale, bias


def _pack_conv_bn(w, gamma, beta, mean, var, cin_p, cout_p):
    """PyTorch (Cout,Cin,3,3) conv weight + BN stats -> im2col-packed
    (9*cin_p, cout_p) weight with BN scale folded in, plus (1, cout_p) bias."""
    cout, cin = w.shape[0], w.shape[1]
    scale, bias = _fold_bn(gamma, beta, mean, var)
    wk = jnp.transpose(w, (2, 3, 1, 0)) * scale[None, None, None, :]  # (3,3,Ci,Co)
    wk = jnp.pad(wk, ((0, 0), (0, 0), (0, cin_p - cin), (0, cout_p - cout)))
    w_packed = wk.reshape(9 * cin_p, cout_p).astype(jnp.float32)
    b_packed = jnp.pad(bias, (0, cout_p - cout)).reshape(1, cout_p)
    return w_packed, b_packed.astype(jnp.float32)


def double_conv_fused(x_nhwc, params):
    """Fused DoubleConv.  x_nhwc: (N, H, W, Cin) -> (N, Cout, H, W) NCHW."""
    (w1, g1, b1, m1, v1, w2, g2, b2, m2, v2) = params
    N, H, W, cin = x_nhwc.shape
    cmid, cout = w1.shape[0], w2.shape[0]
    cin_p, cmid_p, cout_p = _round_up(cin), _round_up(cmid), _round_up(cout)
    assert (H * W) % 128 == 0, "H*W must be lane-dense for the flat output"

    w1_p, b1_p = _pack_conv_bn(w1, g1, b1, m1, v1, cin_p, cmid_p)
    w2_p, b2_p = _pack_conv_bn(w2, g2, b2, m2, v2, cmid_p, cout_p)

    flops = 2 * N * H * W * 9 * (cin_p * cmid_p + cmid_p * cout_p)
    bytes_accessed = 4 * (x_nhwc.size + w1_p.size + w2_p.size + b1_p.size
                          + b2_p.size + N * cout * H * W)

    out_flat = pl.pallas_call(
        _double_conv_kernel,
        out_shape=jax.ShapeDtypeStruct((N, cout, H * W), jnp.float32),
        grid_spec=pltpu.PrefetchScalarGridSpec(
            num_scalar_prefetch=0,
            grid=(N,),
            in_specs=[
                pl.BlockSpec((1, H, W, cin), lambda n: (n, 0, 0, 0)),
                pl.BlockSpec((9 * cin_p, cmid_p), lambda n: (0, 0)),
                pl.BlockSpec((1, cmid_p), lambda n: (0, 0)),
                pl.BlockSpec((9 * cmid_p, cout_p), lambda n: (0, 0)),
                pl.BlockSpec((1, cout_p), lambda n: (0, 0)),
            ],
            out_specs=pl.BlockSpec((1, cout, H * W), lambda n: (n, 0, 0)),
            scratch_shapes=[
                pltpu.VMEM((H + 2, W + 2, cin_p), jnp.float32),
                pltpu.VMEM((H * W, 9 * cin_p), jnp.float32),
                pltpu.VMEM((H + 2, W + 2, cmid_p), jnp.float32),
                pltpu.VMEM((H * W, 9 * cmid_p), jnp.float32),
            ],
        ),
        compiler_params=pltpu.CompilerParams(
            dimension_semantics=("parallel",),
            vmem_limit_bytes=48 * 1024 * 1024,
        ),
        cost_estimate=pl.CostEstimate(
            flops=flops, transcendentals=0, bytes_accessed=bytes_accessed),
    )(x_nhwc.astype(jnp.float32), w1_p, b1_p, w2_p, b2_p)

    # Free metadata reshape -> NCHW (no transpose copy needed).
    return out_flat.reshape(N, cout, H, W)


# ---------------------------------------------------------------------------
# Up.forward glue: bilinear x2 upsample (align_corners=True), pad, concat
# ---------------------------------------------------------------------------
def bilinear_upsample_2x_align_corners(x_nhwc):
    """Matches nn.Upsample(scale_factor=2, mode='bilinear', align_corners=True)."""
    N, H, W, C = x_nhwc.shape
    Ho, Wo = 2 * H, 2 * W

    def axis_coords(n_in, n_out):
        if n_in == 1:
            z = jnp.zeros((n_out,), jnp.int32)
            return z, z, jnp.zeros((n_out,), jnp.float32)
        src = jnp.arange(n_out, dtype=jnp.float32) * (n_in - 1) / (n_out - 1)
        lo = jnp.clip(jnp.floor(src).astype(jnp.int32), 0, n_in - 2)
        return lo, lo + 1, src - lo.astype(jnp.float32)

    y0, y1, fy = axis_coords(H, Ho)
    x0, x1, fx = axis_coords(W, Wo)
    top = x_nhwc[:, y0, :, :]
    bot = x_nhwc[:, y1, :, :]
    rows = top * (1.0 - fy)[None, :, None, None] + bot * fy[None, :, None, None]
    left = rows[:, :, x0, :]
    right = rows[:, :, x1, :]
    return left * (1.0 - fx)[None, None, :, None] + right * fx[None, None, :, None]


def up_forward(x1_nchw, x2_nchw, params):
    """Up.forward: upsample x1 2x (bilinear, align_corners), pad to x2's
    spatial size, concat [x2, x1] on channels, then fused DoubleConv."""
    x1 = jnp.transpose(x1_nchw, (0, 2, 3, 1))
    x2 = jnp.transpose(x2_nchw, (0, 2, 3, 1))
    x1 = bilinear_upsample_2x_align_corners(x1)
    dy = x2.shape[1] - x1.shape[1]
    dx = x2.shape[2] - x1.shape[2]
    x1 = jnp.pad(x1, ((0, 0), (dy // 2, dy - dy // 2),
                      (dx // 2, dx - dx // 2), (0, 0)))
    x = jnp.concatenate([x2, x1], axis=-1)   # == torch.cat([x2, x1], dim=1)
    return double_conv_fused(x, params)


# ---------------------------------------------------------------------------
# Pure-JAX reference (lax.conv) for the correctness check
# ---------------------------------------------------------------------------
def _reference_up(x1_nchw, x2_nchw, params):
    (w1, g1, b1, m1, v1, w2, g2, b2, m2, v2) = params
    x1u = jnp.transpose(
        bilinear_upsample_2x_align_corners(jnp.transpose(x1_nchw, (0, 2, 3, 1))),
        (0, 3, 1, 2))
    dy = x2_nchw.shape[2] - x1u.shape[2]
    dx = x2_nchw.shape[3] - x1u.shape[3]
    x1u = jnp.pad(x1u, ((0, 0), (0, 0), (dy // 2, dy - dy // 2),
                        (dx // 2, dx - dx // 2)))
    x = jnp.concatenate([x2_nchw, x1u], axis=1)

    def block(x, w, g, b, m, v):
        y = lax.conv_general_dilated(
            x, w, window_strides=(1, 1), padding=((1, 1), (1, 1)),
            dimension_numbers=("NCHW", "OIHW", "NCHW"))
        s = (g / jnp.sqrt(v + 1e-5)).reshape(1, -1, 1, 1)
        bb = (b - m * g / jnp.sqrt(v + 1e-5)).reshape(1, -1, 1, 1)
        return jnp.maximum(y * s + bb, 0.0)

    y = block(x, w1, g1, b1, m1, v1)
    return block(y, w2, g2, b2, m2, v2)


if __name__ == "__main__":
    key = jax.random.PRNGKey(0)
    N = 2
    in_channels, out_channels = 8, 8        # bilinear Up: mid = in_channels // 2
    mid_channels = in_channels // 2
    H2, W2 = 16, 16                          # x2 spatial size (output size)
    H1, W1 = H2 // 2, W2 // 2                # x1 spatial size (upsampled 2x)
    c1 = in_channels // 2                    # x1 channels
    c2 = in_channels - c1                    # x2 channels

    ks = jax.random.split(key, 12)
    x1 = jax.random.normal(ks[0], (N, c1, H1, W1), jnp.float32)
    x2 = jax.random.normal(ks[1], (N, c2, H2, W2), jnp.float32)

    # Conv1 + BN1 params (in_channels -> mid_channels)
    w1 = jax.random.normal(ks[2], (mid_channels, in_channels, 3, 3), jnp.float32) * 0.1
    g1 = 1.0 + 0.1 * jax.random.normal(ks[3], (mid_channels,), jnp.float32)
    b1 = 0.1 * jax.random.normal(ks[4], (mid_channels,), jnp.float32)
    m1 = 0.1 * jax.random.normal(ks[5], (mid_channels,), jnp.float32)
    v1 = 1.0 + 0.1 * jax.random.uniform(ks[6], (mid_channels,), jnp.float32)
    # Conv2 + BN2 params (mid_channels -> out_channels)
    w2 = jax.random.normal(ks[7], (out_channels, mid_channels, 3, 3), jnp.float32) * 0.1
    g2 = 1.0 + 0.1 * jax.random.normal(ks[8], (out_channels,), jnp.float32)
    b2 = 0.1 * jax.random.normal(ks[9], (out_channels,), jnp.float32)
    m2 = 0.1 * jax.random.normal(ks[10], (out_channels,), jnp.float32)
    v2 = 1.0 + 0.1 * jax.random.uniform(ks[11], (out_channels,), jnp.float32)

    params = (w1, g1, b1, m1, v1, w2, g2, b2, m2, v2)

    out = jax.jit(up_forward)(x1, x2, params)
    out = jax.block_until_ready(out)

    ref = _reference_up(x1, x2, params)
    assert out.shape == (N, out_channels, H2, W2), out.shape
    max_err = float(jnp.max(jnp.abs(out - ref)))
    assert jnp.allclose(out, ref, atol=1e-3, rtol=1e-3), max_err
    print("KERNEL_OK")
</pallas_src>

<mosaic_0001>
module attributes {stable_mosaic.version = 11 : i64} {
  func.func @_double_conv_kernel(%arg0: i32, %arg1: memref<1x16x16x8xf32, #tpu.memory_space<vmem>>, %arg2: memref<1152x128xf32, #tpu.memory_space<vmem>>, %arg3: memref<1x128xf32, #tpu.memory_space<vmem>>, %arg4: memref<1152x128xf32, #tpu.memory_space<vmem>>, %arg5: memref<1x128xf32, #tpu.memory_space<vmem>>, %arg6: memref<1x8x256xf32, #tpu.memory_space<vmem>>, %arg7: memref<18x18x128xf32, #tpu.memory_space<vmem>>, %arg8: memref<256x1152xf32, #tpu.memory_space<vmem>>, %arg9: memref<18x18x128xf32, #tpu.memory_space<vmem>>, %arg10: memref<256x1152xf32, #tpu.memory_space<vmem>>) attributes {dimension_semantics = [#tpu.dimension_semantics<parallel>], iteration_bounds = array<i64: 2>, scalar_prefetch = 0 : i64, scratch_operands = 4 : i64, tpu.core_type = #tpu.core_type<tc>, window_params = [{transform_indices = @transform_0, window_bounds = array<i64: 1, 16, 16, 8>}, {pipeline_mode = #tpu.pipeline_mode<synchronous>, transform_indices = @transform_1, window_bounds = array<i64: 1152, 128>}, {pipeline_mode = #tpu.pipeline_mode<synchronous>, transform_indices = @transform_2, window_bounds = array<i64: 1, 128>}, {pipeline_mode = #tpu.pipeline_mode<synchronous>, transform_indices = @transform_3, window_bounds = array<i64: 1152, 128>}, {pipeline_mode = #tpu.pipeline_mode<synchronous>, transform_indices = @transform_4, window_bounds = array<i64: 1, 128>}, {transform_indices = @transform_5, window_bounds = array<i64: 1, 8, 256>}]} {
    %cst = arith.constant 0.000000e+00 : f32
    %0 = vector.broadcast %cst : f32 to vector<18x18x128xf32>
    %c0 = arith.constant 0 : index
    %c0_0 = arith.constant 0 : index
    %c0_1 = arith.constant 0 : index
    %1 = vector.load %arg7[%c0, %c0_0, %c0_1] : memref<18x18x128xf32, #tpu.memory_space<vmem>>, vector<18x18x128xf32>
    tpu.vector_store %arg7[%c0, %c0_0, %c0_1], %0 {strides = array<i32>} : memref<18x18x128xf32, #tpu.memory_space<vmem>>, vector<18x18x128xf32>,
    %c0_2 = arith.constant 0 : index
    %c0_3 = arith.constant 0 : index
    %c0_4 = arith.constant 0 : index
    %c0_5 = arith.constant 0 : index
    %2 = vector.load %arg1[%c0_2, %c0_3, %c0_4, %c0_5] : memref<1x16x16x8xf32, #tpu.memory_space<vmem>>, vector<1x16x16x8xf32>
    %3 = vector.shape_cast %2 : vector<1x16x16x8xf32> to vector<16x16x8xf32>
    %c1 = arith.constant 1 : index
    %c1_6 = arith.constant 1 : index
    %c0_7 = arith.constant 0 : index
    %4 = vector.load %arg7[%c1, %c1_6, %c0_7] : memref<18x18x128xf32, #tpu.memory_space<vmem>>, vector<16x16x8xf32>
    tpu.vector_store %arg7[%c1, %c1_6, %c0_7], %3 {strides = array<i32>} : memref<18x18x128xf32, #tpu.memory_space<vmem>>, vector<16x16x8xf32>,
    %c0_8 = arith.constant 0 : index
    %c0_9 = arith.constant 0 : index
    %c0_10 = arith.constant 0 : index
    %5 = vector.load %arg7[%c0_8, %c0_9, %c0_10] : memref<18x18x128xf32, #tpu.memory_space<vmem>>, vector<16x16x128xf32>
    %6 = vector.shape_cast %5 : vector<16x16x128xf32> to vector<256x128xf32>
    %c0_11 = arith.constant 0 : index
    %c0_12 = arith.constant 0 : index
    %7 = vector.load %arg8[%c0_11, %c0_12] : memref<256x1152xf32, #tpu.memory_space<vmem>>, vector<256x128xf32>
    tpu.vector_store %arg8[%c0_11, %c0_12], %6 {strides = array<i32>} : memref<256x1152xf32, #tpu.memory_space<vmem>>, vector<256x128xf32>,
    %c0_13 = arith.constant 0 : index
    %c1_14 = arith.constant 1 : index
    %c0_15 = arith.constant 0 : index
    %8 = vector.load %arg7[%c0_13, %c1_14, %c0_15] : memref<18x18x128xf32, #tpu.memory_space<vmem>>, vector<16x16x128xf32>
    %9 = vector.shape_cast %8 : vector<16x16x128xf32> to vector<256x128xf32>
    %c0_16 = arith.constant 0 : index
    %c128 = arith.constant 128 : index
    %10 = vector.load %arg8[%c0_16, %c128] : memref<256x1152xf32, #tpu.memory_space<vmem>>, vector<256x128xf32>
    tpu.vector_store %arg8[%c0_16, %c128], %9 {strides = array<i32>} : memref<256x1152xf32, #tpu.memory_space<vmem>>, vector<256x128xf32>,
    %c0_17 = arith.constant 0 : index
    %c2 = arith.constant 2 : index
    %c0_18 = arith.constant 0 : index
    %11 = vector.load %arg7[%c0_17, %c2, %c0_18] : memref<18x18x128xf32, #tpu.memory_space<vmem>>, vector<16x16x128xf32>
    %12 = vector.shape_cast %11 : vector<16x16x128xf32> to vector<256x128xf32>
    %c0_19 = arith.constant 0 : index
    %c256 = arith.constant 256 : index
    %13 = vector.load %arg8[%c0_19, %c256] : memref<256x1152xf32, #tpu.memory_space<vmem>>, vector<256x128xf32>
    tpu.vector_store %arg8[%c0_19, %c256], %12 {strides = array<i32>} : memref<256x1152xf32, #tpu.memory_space<vmem>>, vector<256x128xf32>,
    %c1_20 = arith.constant 1 : index
    %c0_21 = arith.constant 0 : index
    %c0_22 = arith.constant 0 : index
    %14 = vector.load %arg7[%c1_20, %c0_21, %c0_22] : memref<18x18x128xf32, #tpu.memory_space<vmem>>, vector<16x16x128xf32>
    %15 = vector.shape_cast %14 : vector<16x16x128xf32> to vector<256x128xf32>
    %c0_23 = arith.constant 0 : index
    %c384 = arith.constant 384 : index
    %16 = vector.load %arg8[%c0_23, %c384] : memref<256x1152xf32, #tpu.memory_space<vmem>>, vector<256x128xf32>
    tpu.vector_store %arg8[%c0_23, %c384], %15 {strides = array<i32>} : memref<256x1152xf32, #tpu.memory_space<vmem>>, vector<256x128xf32>,
    %c1_24 = arith.constant 1 : index
    %c1_25 = arith.constant 1 : index
    %c0_26 = arith.constant 0 : index
    %17 = vector.load %arg7[%c1_24, %c1_25, %c0_26] : memref<18x18x128xf32, #tpu.memory_space<vmem>>, vector<16x16x128xf32>
    %18 = vector.shape_cast %17 : vector<16x16x128xf32> to vector<256x128xf32>
    %c0_27 = arith.constant 0 : index
    %c512 = arith.constant 512 : index
    %19 = vector.load %arg8[%c0_27, %c512] : memref<256x1152xf32, #tpu.memory_space<vmem>>, vector<256x128xf32>
    tpu.vector_store %arg8[%c0_27, %c512], %18 {strides = array<i32>} : memref<256x1152xf32, #tpu.memory_space<vmem>>, vector<256x128xf32>,
    %c1_28 = arith.constant 1 : index
    %c2_29 = arith.constant 2 : index
    %c0_30 = arith.constant 0 : index
    %20 = vector.load %arg7[%c1_28, %c2_29, %c0_30] : memref<18x18x128xf32, #tpu.memory_space<vmem>>, vector<16x16x128xf32>
    %21 = vector.shape_cast %20 : vector<16x16x128xf32> to vector<256x128xf32>
    %c0_31 = arith.constant 0 : index
    %c640 = arith.constant 640 : index
    %22 = vector.load %arg8[%c0_31, %c640] : memref<256x1152xf32, #tpu.memory_space<vmem>>, vector<256x128xf32>
    tpu.vector_store %arg8[%c0_31, %c640], %21 {strides = array<i32>} : memref<256x1152xf32, #tpu.memory_space<vmem>>, vector<256x128xf32>,
    %c2_32 = arith.constant 2 : index
    %c0_33 = arith.constant 0 : index
    %c0_34 = arith.constant 0 : index
    %23 = vector.load %arg7[%c2_32, %c0_33, %c0_34] : memref<18x18x128xf32, #tpu.memory_space<vmem>>, vector<16x16x128xf32>
    %24 = vector.shape_cast %23 : vector<16x16x128xf32> to vector<256x128xf32>
    %c0_35 = arith.constant 0 : index
    %c768 = arith.constant 768 : index
    %25 = vector.load %arg8[%c0_35, %c768] : memref<256x1152xf32, #tpu.memory_space<vmem>>, vector<256x128xf32>
    tpu.vector_store %arg8[%c0_35, %c768], %24 {strides = array<i32>} : memref<256x1152xf32, #tpu.memory_space<vmem>>, vector<256x128xf32>,
    %c2_36 = arith.constant 2 : index
    %c1_37 = arith.constant 1 : index
    %c0_38 = arith.constant 0 : index
    %26 = vector.load %arg7[%c2_36, %c1_37, %c0_38] : memref<18x18x128xf32, #tpu.memory_space<vmem>>, vector<16x16x128xf32>
    %27 = vector.shape_cast %26 : vector<16x16x128xf32> to vector<256x128xf32>
    %c0_39 = arith.constant 0 : index
    %c896 = arith.constant 896 : index
    %28 = vector.load %arg8[%c0_39, %c896] : memref<256x1152xf32, #tpu.memory_space<vmem>>, vector<256x128xf32>
    tpu.vector_store %arg8[%c0_39, %c896], %27 {strides = array<i32>} : memref<256x1152xf32, #tpu.memory_space<vmem>>, vector<256x128xf32>,
    %c2_40 = arith.constant 2 : index
    %c2_41 = arith.constant 2 : index
    %c0_42 = arith.constant 0 : index
    %29 = vector.load %arg7[%c2_40, %c2_41, %c0_42] : memref<18x18x128xf32, #tpu.memory_space<vmem>>, vector<16x16x128xf32>
    %30 = vector.shape_cast %29 : vector<16x16x128xf32> to vector<256x128xf32>
    %c0_43 = arith.constant 0 : index
    %c1024 = arith.constant 1024 : index
    %31 = vector.load %arg8[%c0_43, %c1024] : memref<256x1152xf32, #tpu.memory_space<vmem>>, vector<256x128xf32>
    tpu.vector_store %arg8[%c0_43, %c1024], %30 {strides = array<i32>} : memref<256x1152xf32, #tpu.memory_space<vmem>>, vector<256x128xf32>,
    %c0_44 = arith.constant 0 : index
    %c0_45 = arith.constant 0 : index
    %32 = vector.load %arg8[%c0_44, %c0_45] : memref<256x1152xf32, #tpu.memory_space<vmem>>, vector<256x1152xf32>
    %c0_46 = arith.constant 0 : index
    %c0_47 = arith.constant 0 : index
    %33 = vector.load %arg2[%c0_46, %c0_47] : memref<1152x128xf32, #tpu.memory_space<vmem>>, vector<1152x128xf32>
    %cst_48 = arith.constant dense<0.000000e+00> : vector<256x128xf32>
    %34 = tpu.matmul %32, %33, %cst_48 {dimension_numbers = #tpu.dot_dimension_numbers<[1], [0], [0], [1], [0, 0, 1, 1], [], []>} : vector<256x1152xf32>, vector<1152x128xf32>, vector<256x128xf32> -> vector<256x128xf32>
    %c0_49 = arith.constant 0 : index
    %c0_50 = arith.constant 0 : index
    %35 = vector.load %arg3[%c0_49, %c0_50] : memref<1x128xf32, #tpu.memory_space<vmem>>, vector<1x128xf32>
    %36 = vector.broadcast %35 : vector<1x128xf32> to vector<256x128xf32>
    %37 = arith.addf %34, %36 : vector<256x128xf32>
    %cst_51 = arith.constant 0.000000e+00 : f32
    %38 = vector.broadcast %cst_51 : f32 to vector<256x128xf32>
    %39 = arith.maximumf %37, %38 : vector<256x128xf32>
    %cst_52 = arith.constant 0.000000e+00 : f32
    %40 = vector.broadcast %cst_52 : f32 to vector<18x18x128xf32>
    %c0_53 = arith.constant 0 : index
    %c0_54 = arith.constant 0 : index
    %c0_55 = arith.constant 0 : index
    %41 = vector.load %arg9[%c0_53, %c0_54, %c0_55] : memref<18x18x128xf32, #tpu.memory_space<vmem>>, vector<18x18x128xf32>
    tpu.vector_store %arg9[%c0_53, %c0_54, %c0_55], %40 {strides = array<i32>} : memref<18x18x128xf32, #tpu.memory_space<vmem>>, vector<18x18x128xf32>,
    %42 = vector.shape_cast %39 : vector<256x128xf32> to vector<16x16x128xf32>
    %c1_56 = arith.constant 1 : index
    %c1_57 = arith.constant 1 : index
    %c0_58 = arith.constant 0 : index
    %43 = vector.load %arg9[%c1_56, %c1_57, %c0_58] : memref<18x18x128xf32, #tpu.memory_space<vmem>>, vector<16x16x128xf32>
    tpu.vector_store %arg9[%c1_56, %c1_57, %c0_58], %42 {strides = array<i32>} : memref<18x18x128xf32, #tpu.memory_space<vmem>>, vector<16x16x128xf32>,
    %c0_59 = arith.constant 0 : index
    %c0_60 = arith.constant 0 : index
    %c0_61 = arith.constant 0 : index
    %44 = vector.load %arg9[%c0_59, %c0_60, %c0_61] : memref<18x18x128xf32, #tpu.memory_space<vmem>>, vector<16x16x128xf32>
    %45 = vector.shape_cast %44 : vector<16x16x128xf32> to vector<256x128xf32>
    %c0_62 = arith.constant 0 : index
    %c0_63 = arith.constant 0 : index
    %46 = vector.load %arg10[%c0_62, %c0_63] : memref<256x1152xf32, #tpu.memory_space<vmem>>, vector<256x128xf32>
    tpu.vector_store %arg10[%c0_62, %c0_63], %45 {strides = array<i32>} : memref<256x1152xf32, #tpu.memory_space<vmem>>, vector<256x128xf32>,
    %c0_64 = arith.constant 0 : index
    %c1_65 = arith.constant 1 : index
    %c0_66 = arith.constant 0 : index
    %47 = vector.load %arg9[%c0_64, %c1_65, %c0_66] : memref<18x18x128xf32, #tpu.memory_space<vmem>>, vector<16x16x128xf32>
    %48 = vector.shape_cast %47 : vector<16x16x128xf32> to vector<256x128xf32>
    %c0_67 = arith.constant 0 : index
    %c128_68 = arith.constant 128 : index
    %49 = vector.load %arg10[%c0_67, %c128_68] : memref<256x1152xf32, #tpu.memory_space<vmem>>, vector<256x128xf32>
    tpu.vector_store %arg10[%c0_67, %c128_68], %48 {strides = array<i32>} : memref<256x1152xf32, #tpu.memory_space<vmem>>, vector<256x128xf32>,
    %c0_69 = arith.constant 0 : index
    %c2_70 = arith.constant 2 : index
    %c0_71 = arith.constant 0 : index
    %50 = vector.load %arg9[%c0_69, %c2_70, %c0_71] : memref<18x18x128xf32, #tpu.memory_space<vmem>>, vector<16x16x128xf32>
    %51 = vector.shape_cast %50 : vector<16x16x128xf32> to vector<256x128xf32>
    %c0_72 = arith.constant 0 : index
    %c256_73 = arith.constant 256 : index
    %52 = vector.load %arg10[%c0_72, %c256_73] : memref<256x1152xf32, #tpu.memory_space<vmem>>, vector<256x128xf32>
    tpu.vector_store %arg10[%c0_72, %c256_73], %51 {strides = array<i32>} : memref<256x1152xf32, #tpu.memory_space<vmem>>, vector<256x128xf32>,
    %c1_74 = arith.constant 1 : index
    %c0_75 = arith.constant 0 : index
    %c0_76 = arith.constant 0 : index
    %53 = vector.load %arg9[%c1_74, %c0_75, %c0_76] : memref<18x18x128xf32, #tpu.memory_space<vmem>>, vector<16x16x128xf32>
    %54 = vector.shape_cast %53 : vector<16x16x128xf32> to vector<256x128xf32>
    %c0_77 = arith.constant 0 : index
    %c384_78 = arith.constant 384 : index
    %55 = vector.load %arg10[%c0_77, %c384_78] : memref<256x1152xf32, #tpu.memory_space<vmem>>, vector<256x128xf32>
    tpu.vector_store %arg10[%c0_77, %c384_78], %54 {strides = array<i32>} : memref<256x1152xf32, #tpu.memory_space<vmem>>, vector<256x128xf32>,
    %c1_79 = arith.constant 1 : index
    %c1_80 = arith.constant 1 : index
    %c0_81 = arith.constant 0 : index
    %56 = vector.load %arg9[%c1_79, %c1_80, %c0_81] : memref<18x18x128xf32, #tpu.memory_space<vmem>>, vector<16x16x128xf32>
    %57 = vector.shape_cast %56 : vector<16x16x128xf32> to vector<256x128xf32>
    %c0_82 = arith.constant 0 : index
    %c512_83 = arith.constant 512 : index
    %58 = vector.load %arg10[%c0_82, %c512_83] : memref<256x1152xf32, #tpu.memory_space<vmem>>, vector<256x128xf32>
    tpu.vector_store %arg10[%c0_82, %c512_83], %57 {strides = array<i32>} : memref<256x1152xf32, #tpu.memory_space<vmem>>, vector<256x128xf32>,
    %c1_84 = arith.constant 1 : index
    %c2_85 = arith.constant 2 : index
    %c0_86 = arith.constant 0 : index
    %59 = vector.load %arg9[%c1_84, %c2_85, %c0_86] : memref<18x18x128xf32, #tpu.memory_space<vmem>>, vector<16x16x128xf32>
    %60 = vector.shape_cast %59 : vector<16x16x128xf32> to vector<256x128xf32>
    %c0_87 = arith.constant 0 : index
    %c640_88 = arith.constant 640 : index
    %61 = vector.load %arg10[%c0_87, %c640_88] : memref<256x1152xf32, #tpu.memory_space<vmem>>, vector<256x128xf32>
    tpu.vector_store %arg10[%c0_87, %c640_88], %60 {strides = array<i32>} : memref<256x1152xf32, #tpu.memory_space<vmem>>, vector<256x128xf32>,
    %c2_89 = arith.constant 2 : index
    %c0_90 = arith.constant 0 : index
    %c0_91 = arith.constant 0 : index
    %62 = vector.load %arg9[%c2_89, %c0_90, %c0_91] : memref<18x18x128xf32, #tpu.memory_space<vmem>>, vector<16x16x128xf32>
    %63 = vector.shape_cast %62 : vector<16x16x128xf32> to vector<256x128xf32>
    %c0_92 = arith.constant 0 : index
    %c768_93 = arith.constant 768 : index
    %64 = vector.load %arg10[%c0_92, %c768_93] : memref<256x1152xf32, #tpu.memory_space<vmem>>, vector<256x128xf32>
    tpu.vector_store %arg10[%c0_92, %c768_93], %63 {strides = array<i32>} : memref<256x1152xf32, #tpu.memory_space<vmem>>, vector<256x128xf32>,
    %c2_94 = arith.constant 2 : index
    %c1_95 = arith.constant 1 : index
    %c0_96 = arith.constant 0 : index
    %65 = vector.load %arg9[%c2_94, %c1_95, %c0_96] : memref<18x18x128xf32, #tpu.memory_space<vmem>>, vector<16x16x128xf32>
    %66 = vector.shape_cast %65 : vector<16x16x128xf32> to vector<256x128xf32>
    %c0_97 = arith.constant 0 : index
    %c896_98 = arith.constant 896 : index
    %67 = vector.load %arg10[%c0_97, %c896_98] : memref<256x1152xf32, #tpu.memory_space<vmem>>, vector<256x128xf32>
    tpu.vector_store %arg10[%c0_97, %c896_98], %66 {strides = array<i32>} : memref<256x1152xf32, #tpu.memory_space<vmem>>, vector<256x128xf32>,
    %c2_99 = arith.constant 2 : index
    %c2_100 = arith.constant 2 : index
    %c0_101 = arith.constant 0 : index
    %68 = vector.load %arg9[%c2_99, %c2_100, %c0_101] : memref<18x18x128xf32, #tpu.memory_space<vmem>>, vector<16x16x128xf32>
    %69 = vector.shape_cast %68 : vector<16x16x128xf32> to vector<256x128xf32>
    %c0_102 = arith.constant 0 : index
    %c1024_103 = arith.constant 1024 : index
    %70 = vector.load %arg10[%c0_102, %c1024_103] : memref<256x1152xf32, #tpu.memory_space<vmem>>, vector<256x128xf32>
    tpu.vector_store %arg10[%c0_102, %c1024_103], %69 {strides = array<i32>} : memref<256x1152xf32, #tpu.memory_space<vmem>>, vector<256x128xf32>,
    %c0_104 = arith.constant 0 : index
    %c0_105 = arith.constant 0 : index
    %71 = vector.load %arg10[%c0_104, %c0_105] : memref<256x1152xf32, #tpu.memory_space<vmem>>, vector<256x1152xf32>
    %c0_106 = arith.constant 0 : index
    %c0_107 = arith.constant 0 : index
    %72 = vector.load %arg4[%c0_106, %c0_107] : memref<1152x128xf32, #tpu.memory_space<vmem>>, vector<1152x128xf32>
    %cst_108 = arith.constant dense<0.000000e+00> : vector<256x128xf32>
    %73 = tpu.matmul %71, %72, %cst_108 {dimension_numbers = #tpu.dot_dimension_numbers<[1], [0], [0], [1], [0, 0, 1, 1], [], []>} : vector<256x1152xf32>, vector<1152x128xf32>, vector<256x128xf32> -> vector<256x128xf32>
    %c0_109 = arith.constant 0 : index
    %c0_110 = arith.constant 0 : index
    %74 = vector.load %arg5[%c0_109, %c0_110] : memref<1x128xf32, #tpu.memory_space<vmem>>, vector<1x128xf32>
    %75 = vector.broadcast %74 : vector<1x128xf32> to vector<256x128xf32>
    %76 = arith.addf %73, %75 : vector<256x128xf32>
    %cst_111 = arith.constant 0.000000e+00 : f32
    %77 = vector.broadcast %cst_111 : f32 to vector<256x128xf32>
    %78 = arith.maximumf %76, %77 : vector<256x128xf32>
    %79 = tpu.transpose %78, [1, 0] : vector<256x128xf32> -> vector<128x256xf32>
    %80 = vector.extract_strided_slice %79 {offsets = [0, 0], sizes = [8, 256], strides = [1, 1]} : vector<128x256xf32> to vector<8x256xf32>
    %c0_112 = arith.constant 0 : index
    %c0_113 = arith.constant 0 : index
    %c0_114 = arith.constant 0 : index
    %81 = vector.load %arg6[%c0_112, %c0_113, %c0_114] : memref<1x8x256xf32, #tpu.memory_space<vmem>>, vector<1x8x256xf32>
    %82 = vector.shape_cast %81 : vector<1x8x256xf32> to vector<8x256xf32>
    %83 = vector.shape_cast %80 : vector<8x256xf32> to vector<1x8x256xf32>
    tpu.vector_store %arg6[%c0_112, %c0_113, %c0_114], %83 {strides = array<i32>} : memref<1x8x256xf32, #tpu.memory_space<vmem>>, vector<1x8x256xf32>,
    return
  }
  func.func @transform_0(%arg0: i32) -> (i32, i32, i32, i32) {
    %c0_i32 = arith.constant 0 : i32
    %c0_i32_0 = arith.constant 0 : i32
    %c0_i32_1 = arith.constant 0 : i32
    %c0_i32_2 = arith.constant 0 : i32
    return %arg0, %c0_i32, %c0_i32_0, %c0_i32_1 : i32, i32, i32, i32
  }
  func.func @transform_1(%arg0: i32) -> (i32, i32) {
    %c0_i32 = arith.constant 0 : i32
    %c0_i32_0 = arith.constant 0 : i32
    %c0_i32_1 = arith.constant 0 : i32
    return %c0_i32, %c0_i32_0 : i32, i32
  }
  func.func @transform_2(%arg0: i32) -> (i32, i32) {
    %c0_i32 = arith.constant 0 : i32
    %c0_i32_0 = arith.constant 0 : i32
    %c0_i32_1 = arith.constant 0 : i32
    return %c0_i32, %c0_i32_0 : i32, i32
  }
  func.func @transform_3(%arg0: i32) -> (i32, i32) {
    %c0_i32 = arith.constant 0 : i32
    %c0_i32_0 = arith.constant 0 : i32
    %c0_i32_1 = arith.constant 0 : i32
    return %c0_i32, %c0_i32_0 : i32, i32
  }
  func.func @transform_4(%arg0: i32) -> (i32, i32) {
    %c0_i32 = arith.constant 0 : i32
    %c0_i32_0 = arith.constant 0 : i32
    %c0_i32_1 = arith.constant 0 : i32
    return %c0_i32, %c0_i32_0 : i32, i32
  }
  func.func @transform_5(%arg0: i32) -> (i32, i32, i32) {
    %c0_i32 = arith.constant 0 : i32
    %c0_i32_0 = arith.constant 0 : i32
    %c0_i32_1 = arith.constant 0 : i32
    return %arg0, %c0_i32, %c0_i32_0 : i32, i32, i32
  }
}

</mosaic_0001>

<bundles_post_ra>
// kernel: up_forward.1
= control target key start
LH: loop header
LB: loop body
LE: loop exit
PB: predicated region body
PF: predicated region fallthrough
CT: control target
= control target key end

     0   :  { %s5222_s18 = smov 0   ;;  %s7914_s0 = inlined_call_operand.vmem [shape: f32[2,16,16,8], index: 0, kind: input, shape index: {}]   ;;  %s7915_s1 = inlined_call_operand.vmem [shape: f32[1152,128], index: 1, kind: input, shape index: {}]   ;;  %s7916_s2 = inlined_call_operand.vmem [shape: f32[1,128], index: 2, kind: input, shape index: {}]   ;;  %s7917_s3 = inlined_call_operand.vmem [shape: f32[1152,128], index: 3, kind: input, shape index: {}]   ;;  %s7918_s4 = inlined_call_operand.vmem [shape: f32[1,128], index: 4, kind: input, shape index: {}]   ;;  %s7919_s5 = inlined_call_operand.vmem [shape: f32[2,8,256], index: 5, kind: output, shape index: {}]  }
   0x1 LB: > { %s4899_s19 = sadd.s32 4294967295, %s5189_s18   ;;  %p4903_p0 = scmp.ge.s32.totalorder %s5189_s18, 1  ;;  %s5189_s18 = sphi %s5222_s18, %s15_s18  }
   0x2   : > { %p187_p1 = scmp.lt.s32.totalorder %s5189_s18, 3 }
   0x4   : > { %p188_p2 = pnand %p4903_p0, %p187_p1 }
   0x6   : > { %191 = sbr.rel (%p188_p2) target bundleno = 1144 (0x478), region = 40 }
   0xb   : > { %v5233_v0 = vld [vmem:[%s7915_s1 + $0x78] sm:$0xff]  ;;  %v5191_v2 = vmov 0.0   ;;  %v1224_v3 = vld [vmem:[%s7915_s1 + $0x70] sm:$0xff]  ;;  %v1223_v5 = vld [vmem:[%s7915_s1 + $0x68] sm:$0xff]  ;;  %p215_p3 = scmp.lt.s32.totalorder %s4899_s19, 1  ;;  %vm312_vm0 = vcmask 64512  }
   0xc   : > { %v5238_v1 = vld [vmem:[%s7915_s1 + $0x178] sm:$0xff]  ;;  %1361 = vmatprep.subr.mxu0 %v5191_v2  ;;  %225 = vst [vmem:[#allocation2] sm:$0xff] %v5191_v2  ;;  %226 = vst [vmem:[#allocation2 + $0x8] sm:$0xff] %v5191_v2  ;;  %1586 = vmatprep.subr.mxu1 %v5191_v2  ;;  %v1256_v4 = vld [vmem:[%s7915_s1 + $0x170] sm:$0xff] }
   0xd   : > { %227 = vst [vmem:[#allocation2 + $0x10] sm:$0x3] %v5191_v2  ;;  %228 = vst [vmem:[#allocation2 + $0x18] sm:$0xff] %v5191_v2  ;;  %1362 = vmatpush1.msra.mxu0 %v5233_v0  ;;  %1587 = vmatpush1.msra.mxu1 %v5238_v1  ;;  %v1255_v6 = vld [vmem:[%s7915_s1 + $0x168] sm:$0xff]  ;;  %v1222_v7 = vld [vmem:[%s7915_s1 + $0x60] sm:$0xff]  ;;  %s8034_s19 = smov (!%p215_p3, %s4899_s19), 1 }
   0xe   : > { %229 = vst [vmem:[#allocation2 + $0x20] sm:$0xff] %v5191_v2  ;;  %230 = vst [vmem:[#allocation2 + $0x28] sm:$0x3] %v5191_v2  ;;  %1363 = vmatprep.subr.mxu0 %v5191_v2  ;;  %1588 = vmatprep.subr.mxu1 %v5191_v2  ;;  %v1254_v8 = vld [vmem:[%s7915_s1 + $0x160] sm:$0xff]  ;;  %v1221_v9 = vld [vmem:[%s7915_s1 + $0x58] sm:$0xff]  ;;  %s4912_s8 = sshll.u32 %s8034_s19, 8 }
   0xf   : > { %231 = vst [vmem:[#allocation2 + $0x30] sm:$0xff] %v5191_v2  ;;  %232 = vst [vmem:[#allocation2 + $0x38] sm:$0xff] %v5191_v2  ;;  %1364 = vmatpush1.msra.mxu0 %v1224_v3  ;;  %1589 = vmatpush1.msra.mxu1 %v1256_v4  ;;  %v1253_v10 = vld [vmem:[%s7915_s1 + $0x158] sm:$0xff]  ;;  %v1220_v11 = vld [vmem:[%s7915_s1 + $0x50] sm:$0xff]  ;;  %s5432_s15 = scalar_lea.vmem %s7914_s0, %s4912_s8  ;;  %s4913_s8 = sshll.u32 %s8034_s19, 4 }
  0x10   : > { %233 = vst [vmem:[#allocation2 + $0x40] sm:$0x3] %v5191_v2  ;;  %234 = vst [vmem:[#allocation2 + $0x48] sm:$0xff] %v5191_v2  ;;  %1365 = vmatprep.subr.mxu0 %v5191_v2  ;;  %1590 = vmatprep.subr.mxu1 %v5191_v2  ;;  %v1252_v12 = vld [vmem:[%s7915_s1 + $0x150] sm:$0xff]  ;;  %v1219_v13 = vld [vmem:[%s7915_s1 + $0x48] sm:$0xff] }
  0x11   : > { %235 = vst [vmem:[#allocation2 + $0x50] sm:$0xff] %v5191_v2  ;;  %236 = vst [vmem:[#allocation2 + $0x58] sm:$0x3] %v5191_v2  ;;  %1366 = vmatpush1.msra.mxu0 %v1223_v5  ;;  %1591 = vmatpush1.msra.mxu1 %v1255_v6  ;;  %v1251_v14 = vld [vmem:[%s7915_s1 + $0x148] sm:$0xff]  ;;  %v1218_v15 = vld [vmem:[%s7915_s1 + $0x40] sm:$0xff] }
  0x12   : > { %237 = vst [vmem:[#allocation2 + $0x60] sm:$0xff] %v5191_v2  ;;  %238 = vst [vmem:[#allocation2 + $0x68] sm:$0xff] %v5191_v2  ;;  %1367 = vmatprep.subr.mxu0 %v5191_v2  ;;  %1592 = vmatprep.subr.mxu1 %v5191_v2  ;;  %v1250_v16 = vld [vmem:[%s7915_s1 + $0x140] sm:$0xff]  ;;  %v1217_v17 = vld [vmem:[%s7915_s1 + $0x38] sm:$0xff] }
  0x13   : > { %239 = vst [vmem:[#allocation2 + $0x70] sm:$0x3] %v5191_v2  ;;  %240 = vst [vmem:[#allocation2 + $0x78] sm:$0xff] %v5191_v2  ;;  %1368 = vmatpush1.msra.mxu0 %v1222_v7  ;;  %1593 = vmatpush1.msra.mxu1 %v1254_v8  ;;  %v1249_v18 = vld [vmem:[%s7915_s1 + $0x138] sm:$0xff]  ;;  %v1216_v19 = vld [vmem:[%s7915_s1 + $0x30] sm:$0xff] }
  0x14   : > { %241 = vst [vmem:[#allocation2 + $0x80] sm:$0xff] %v5191_v2  ;;  %242 = vst [vmem:[#allocation2 + $0x88] sm:$0x3] %v5191_v2  ;;  %1369 = vmatprep.subr.mxu0 %v5191_v2  ;;  %1594 = vmatprep.subr.mxu1 %v5191_v2  ;;  %v1248_v20 = vld [vmem:[%s7915_s1 + $0x130] sm:$0xff]  ;;  %v1215_v21 = vld [vmem:[%s7915_s1 + $0x28] sm:$0xff] }
  0x15   : > { %243 = vst [vmem:[#allocation2 + $0x90] sm:$0xff] %v5191_v2  ;;  %244 = vst [vmem:[#allocation2 + $0x98] sm:$0xff] %v5191_v2  ;;  %1370 = vmatpush1.msra.mxu0 %v1221_v9  ;;  %1595 = vmatpush1.msra.mxu1 %v1253_v10  ;;  %v1247_v22 = vld [vmem:[%s7915_s1 + $0x128] sm:$0xff]  ;;  %v1214_v23 = vld [vmem:[%s7915_s1 + $0x20] sm:$0xff] }
  0x16   : > { %245 = vst [vmem:[#allocation2 + $0xa0] sm:$0x3] %v5191_v2  ;;  %246 = vst [vmem:[#allocation2 + $0xa8] sm:$0xff] %v5191_v2  ;;  %1371 = vmatprep.subr.mxu0 %v5191_v2  ;;  %1596 = vmatprep.subr.mxu1 %v5191_v2  ;;  %v1246_v24 = vld [vmem:[%s7915_s1 + $0x120] sm:$0xff]  ;;  %v1213_v26 = vld [vmem:[%s7915_s1 + $0x18] sm:$0xff] }
  0x17   : > { %247 = vst [vmem:[#allocation2 + $0xb0] sm:$0xff] %v5191_v2  ;;  %248 = vst [vmem:[#allocation2 + $0xb8] sm:$0x3] %v5191_v2  ;;  %1372 = vmatpush1.msra.mxu0 %v1220_v11  ;;  %1597 = vmatpush1.msra.mxu1 %v1252_v12  ;;  %v279_v25 = vld [vmem:[%s5432_s15] sm:$0xff]  ;;  %v1245_v27 = vld [vmem:[%s7915_s1 + $0x118] sm:$0xff] }
  0x18   : > { %249 = vst [vmem:[#allocation2 + $0xc0] sm:$0xff] %v5191_v2  ;;  %250 = vst [vmem:[#allocation2 + $0xc8] sm:$0xff] %v5191_v2  ;;  %1373 = vmatprep.subr.mxu0 %v5191_v2  ;;  %1598 = vmatprep.subr.mxu1 %v5191_v2  ;;  %v280_v28 = vld [vmem:[%s5432_s15 + $0x8] sm:$0xff]  ;;  %v281_v29 = vld [vmem:[%s5432_s15 + $0x10] sm:$0xff] }
  0x19   : > { %251 = vst [vmem:[#allocation2 + $0xd0] sm:$0x3] %v5191_v2  ;;  %252 = vst [vmem:[#allocation2 + $0xd8] sm:$0xff] %v5191_v2  ;;  %1374 = vmatpush1.msra.mxu0 %v1219_v13  ;;  %1599 = vmatpush1.msra.mxu1 %v1251_v14  ;;  %v282_v30 = vld [vmem:[%s5432_s15 + $0x18] sm:$0xff]  ;;  %v1212_v31 = vld [vmem:[%s7915_s1 + $0x10] sm:$0xff] }
  0x1a   : > { %253 = vst [vmem:[#allocation2 + $0xe0] sm:$0xff] %v5191_v2  ;;  %254 = vst [vmem:[#allocation2 + $0xe8] sm:$0x3] %v5191_v2  ;;  %1375 = vmatprep.subr.mxu0 %v5191_v2  ;;  %1600 = vmatprep.subr.mxu1 %v5191_v2  ;;  %v1244_v32 = vld [vmem:[%s7915_s1 + $0x110] sm:$0xff]  ;;  %v283_v33 = vld [vmem:[%s5432_s15 + $0x20] sm:$0xff] }
  0x1b   : > { %255 = vst [vmem:[#allocation2 + $0xf0] sm:$0xff] %v5191_v2  ;;  %256 = vst [vmem:[#allocation2 + $0xf8] sm:$0xff] %v5191_v2  ;;  %1376 = vmatpush1.msra.mxu0 %v1218_v15  ;;  %1601 = vmatpush1.msra.mxu1 %v1250_v16  ;;  %v284_v34 = vld [vmem:[%s5432_s15 + $0x28] sm:$0xff]  ;;  %v285_v35 = vld [vmem:[%s5432_s15 + $0x30] sm:$0xff] }
  0x1c   : > { %257 = vst [vmem:[#allocation2 + $0x100] sm:$0x3] %v5191_v2  ;;  %258 = vst [vmem:[#allocation2 + $0x108] sm:$0xff] %v5191_v2  ;;  %1377 = vmatprep.subr.mxu0 %v5191_v2  ;;  %1602 = vmatprep.subr.mxu1 %v5191_v2  ;;  %v1211_v36 = vld [vmem:[%s7915_s1 + $0x8] sm:$0xff]  ;;  %v286_v38 = vld [vmem:[%s5432_s15 + $0x38] sm:$0xff] }
  0x1d   : > { %259 = vst [vmem:[#allocation2 + $0x110] sm:$0xff] %v5191_v2  ;;  %260 = vst [vmem:[#allocation2 + $0x118] sm:$0x3] %v5191_v2  ;;  %1378 = vmatpush1.msra.mxu0 %v1217_v17  ;;  %1603 = vmatpush1.msra.mxu1 %v1249_v18  ;;  %v1243_v37 = vld [vmem:[%s7915_s1 + $0x108] sm:$0xff]  ;;  %v287_v39 = vld [vmem:[%s5432_s15 + $0x40] sm:$0xff] }
  0x1e   : > { %261 = vst [vmem:[#allocation2 + $0x120] sm:$0xff] %v5191_v2  ;;  %262 = vst [vmem:[#allocation2 + $0x128] sm:$0xff] %v5191_v2  ;;  %1379 = vmatprep.subr.mxu0 %v5191_v2  ;;  %1604 = vmatprep.subr.mxu1 %v5191_v2  ;;  %v288_v40 = vld [vmem:[%s5432_s15 + $0x48] sm:$0xff]  ;;  %v1210_v41 = vld [vmem:[%s7915_s1] sm:$0xff] }
  0x1f   : > { %263 = vst [vmem:[#allocation2 + $0x130] sm:$0x3] %v5191_v2  ;;  %264 = vst [vmem:[#allocation2 + $0x138] sm:$0xff] %v5191_v2  ;;  %1380 = vmatpush1.msra.mxu0 %v1216_v19  ;;  %1605 = vmatpush1.msra.mxu1 %v1248_v20  ;;  %v1242_v42 = vld [vmem:[%s7915_s1 + $0x100] sm:$0xff]  ;;  %v289_v43 = vld [vmem:[%s5432_s15 + $0x50] sm:$0xff] }
  0x20   : > { %265 = vst [vmem:[#allocation2 + $0x140] sm:$0xff] %v5191_v2  ;;  %266 = vst [vmem:[#allocation2 + $0x148] sm:$0x3] %v5191_v2  ;;  %1381 = vmatprep.subr.mxu0 %v5191_v2  ;;  %1606 = vmatprep.subr.mxu1 %v5191_v2  ;;  %v290_v44 = vld [vmem:[%s5432_s15 + $0x58] sm:$0xff]  ;;  %v1240_v47 = vld [vmem:[%s7915_s1 + $0xf0] sm:$0xff] }
  0x21   : > { %267 = vst [vmem:[#allocation2 + $0x150] sm:$0xff] %v5191_v2  ;;  %268 = vst [vmem:[#allocation2 + $0x158] sm:$0xff] %v5191_v2  ;;  %1382 = vmatpush1.msra.mxu0 %v1215_v21  ;;  %1607 = vmatpush1.msra.mxu1 %v1247_v22  ;;  %v1241_v45 = vld [vmem:[%s7915_s1 + $0xf8] sm:$0xff]  ;;  %v1272_v48 = vld [vmem:[%s7915_s1 + $0x1f0] sm:$0xff] }
  0x22   : > { %269 = vst [vmem:[#allocation2 + $0x160] sm:$0x3] %v5191_v2  ;;  %270 = vst [vmem:[#allocation2 + $0x168] sm:$0xff] %v5191_v2  ;;  %1383 = vmatprep.subr.mxu0 %v5191_v2  ;;  %1608 = vmatprep.subr.mxu1 %v5191_v2  ;;  %v1273_v46 = vld [vmem:[%s7915_s1 + $0x1f8] sm:$0xff]  ;;  %v1239_v49 = vld [vmem:[%s7915_s1 + $0xe8] sm:$0xff] }
  0x23   : > { %271 = vst [vmem:[#allocation2 + $0x170] sm:$0xff] %v5191_v2  ;;  %272 = vst [vmem:[#allocation2 + $0x178] sm:$0x3] %v5191_v2  ;;  %1384 = vmatpush1.msra.mxu0 %v1214_v23  ;;  %1609 = vmatpush1.msra.mxu1 %v1246_v24  ;;  %v1271_v50 = vld [vmem:[%s7915_s1 + $0x1e8] sm:$0xff]  ;;  %v1238_v51 = vld [vmem:[%s7915_s1 + $0xe0] sm:$0xff] }
  0x24   : > { %273 = vst [vmem:[#allocation2 + $0x180] sm:$0xff] %v5191_v2  ;;  %274 = vst [vmem:[#allocation2 + $0x188] sm:$0xff] %v5191_v2  ;;  %1385 = vmatprep.subr.mxu0 %v5191_v2  ;;  %1610 = vmatprep.subr.mxu1 %v5191_v2  ;;  %v1270_v52 = vld [vmem:[%s7915_s1 + $0x1e0] sm:$0xff]  ;;  %v1237_v53 = vld [vmem:[%s7915_s1 + $0xd8] sm:$0xff] }
  0x25   : > { %275 = vst [vmem:[#allocation2 + $0x190] sm:$0x3] %v5191_v2  ;;  %276 = vst [vmem:[#allocation2 + $0x198] sm:$0xff] %v5191_v2  ;;  %1386 = vmatpush1.msra.mxu0 %v1213_v26  ;;  %1611 = vmatpush1.msra.mxu1 %v1245_v27  ;;  %v1269_v54 = vld [vmem:[%s7915_s1 + $0x1d8] sm:$0xff]  ;;  %v1236_v55 = vld [vmem:[%s7915_s1 + $0xd0] sm:$0xff] }
  0x26   : > { %277 = vst [vmem:[#allocation2 + $0x1a0] sm:$0xff] %v5191_v2  ;;  %278 = vst [vmem:[#allocation2 + $0x1a8] sm:$0x3] %v5191_v2  ;;  %1387 = vmatprep.subr.mxu0 %v5191_v2  ;;  %1612 = vmatprep.subr.mxu1 %v5191_v2  ;;  %v1268_v56 = vld [vmem:[%s7915_s1 + $0x1d0] sm:$0xff]  ;;  %v291_v57 = vld [vmem:[%s5432_s15 + $0x60] sm:$0xff] }
  0x27   : > { %2518 = vst [vmem:[#allocation4] sm:$0xff] %v5191_v2  ;;  %2519 = vst [vmem:[#allocation4 + $0x8] sm:$0xff] %v5191_v2  ;;  %1388 = vmatpush1.msra.mxu0 %v1212_v31  ;;  %1613 = vmatpush1.msra.mxu1 %v1244_v32  ;;  %v1235_v58 = vld [vmem:[%s7915_s1 + $0xc8] sm:$0xff]  ;;  %v293_v61 = vld [vmem:[%s5432_s15 + $0x70] sm:$0xff] }
  0x28   : > { %2520 = vst [vmem:[#allocation4 + $0x10] sm:$0x3] %v5191_v2  ;;  %2521 = vst [vmem:[#allocation4 + $0x18] sm:$0xff] %v5191_v2  ;;  %1389 = vmatprep.subr.mxu0 %v5191_v2  ;;  %1614 = vmatprep.subr.mxu1 %v5191_v2  ;;  %v1267_v59 = vld [vmem:[%s7915_s1 + $0x1c8] sm:$0xff]  ;;  %v294_v62 = vld [vmem:[%s5432_s15 + $0x78] sm:$0xff] }
  0x29   : > { %2522 = vst [vmem:[#allocation4 + $0x20] sm:$0xff] %v5191_v2  ;;  %2523 = vst [vmem:[#allocation4 + $0x28] sm:$0x3] %v5191_v2  ;;  %1390 = vmatpush1.msra.mxu0 %v1211_v36  ;;  %1615 = vmatpush1.msra.mxu1 %v1243_v37  ;;  %v292_v60 = vld [vmem:[%s5432_s15 + $0x68] sm:$0xff]  ;;  %v1234_v63 = vld [vmem:[%s7915_s1 + $0xc0] sm:$0xff] }
  0x2a   : > { %2524 = vst [vmem:[#allocation4 + $0x30] sm:$0xff] %v5191_v2  ;;  %2525 = vst [vmem:[#allocation4 + $0x38] sm:$0xff] %v5191_v2  ;;  %1391 = vmatprep.subr.mxu0 %v5191_v2  ;;  %1616 = vmatprep.subr.mxu1 %v5191_v2  ;;  %v1266_v0 = vld [vmem:[%s7915_s1 + $0x1c0] sm:$0xff]  ;;  %v296_v3 = vld [vmem:[%s5432_s15 + $0x88] sm:$0xff] }
  0x2b   : > { %2526 = vst [vmem:[#allocation4 + $0x40] sm:$0x3] %v5191_v2  ;;  %2527 = vst [vmem:[#allocation4 + $0x48] sm:$0xff] %v5191_v2  ;;  %1392 = vmatpush1.msra.mxu0 %v1210_v41  ;;  %1617 = vmatpush1.msra.mxu1 %v1242_v42  ;;  %v295_v1 = vld [vmem:[%s5432_s15 + $0x80] sm:$0xff]  ;;  %v1233_v4 = vld [vmem:[%s7915_s1 + $0xb8] sm:$0xff] }
  0x2c   : > { %2528 = vst [vmem:[#allocation4 + $0x50] sm:$0xff] %v5191_v2  ;;  %2529 = vst [vmem:[#allocation4 + $0x58] sm:$0x3] %v5191_v2  ;;  %1393 = vmatprep.subr.mxu0 %v5191_v2  ;;  %1618 = vmatprep.subr.mxu1 %v5191_v2  ;;  %v1265_v5 = vld [vmem:[%s7915_s1 + $0x1b8] sm:$0xff]  ;;  %v297_v6 = vld [vmem:[%s5432_s15 + $0x90] sm:$0xff] }
  0x2d   : > { %2530 = vst [vmem:[#allocation4 + $0x60] sm:$0xff] %v5191_v2  ;;  %2531 = vst [vmem:[#allocation4 + $0x68] sm:$0xff] %v5191_v2  ;;  %1394 = vmatpush2.msra.mxu0 %v1241_v45  ;;  %1619 = vmatpush2.msra.mxu1 %v1273_v46  ;;  %v1232_v7 = vld [vmem:[%s7915_s1 + $0xb0] sm:$0xff]  ;;  %v298_v9 = vld [vmem:[%s5432_s15 + $0x98] sm:$0xff] }
  0x2e   : > { %2532 = vst [vmem:[#allocation4 + $0x70] sm:$0x3] %v5191_v2  ;;  %2533 = vst [vmem:[#allocation4 + $0x78] sm:$0xff] %v5191_v2  ;;  %1395 = vmatprep.subr.mxu0 %v5191_v2  ;;  %1620 = vmatprep.subr.mxu1 %v5191_v2  ;;  %v1264_v8 = vld [vmem:[%s7915_s1 + $0x1b0] sm:$0xff]  ;;  %v1231_v10 = vld [vmem:[%s7915_s1 + $0xa8] sm:$0xff] }
  0x2f   : > { %2534 = vst [vmem:[#allocation4 + $0x80] sm:$0xff] %v5191_v2  ;;  %2535 = vst [vmem:[#allocation4 + $0x88] sm:$0x3] %v5191_v2  ;;  %1396 = vmatpush2.msra.mxu0 %v1240_v47  ;;  %1621 = vmatpush2.msra.mxu1 %v1272_v48  ;;  %v1263_v11 = vld [vmem:[%s7915_s1 + $0x1a8] sm:$0xff]  ;;  %v1230_v12 = vld [vmem:[%s7915_s1 + $0xa0] sm:$0xff] }
  0x30   : > { %2536 = vst [vmem:[#allocation4 + $0x90] sm:$0xff] %v5191_v2  ;;  %2537 = vst [vmem:[#allocation4 + $0x98] sm:$0xff] %v5191_v2  ;;  %1397 = vmatprep.subr.mxu0 %v5191_v2  ;;  %1622 = vmatprep.subr.mxu1 %v5191_v2  ;;  %v1262_v13 = vld [vmem:[%s7915_s1 + $0x1a0] sm:$0xff]  ;;  %v1229_v14 = vld [vmem:[%s7915_s1 + $0x98] sm:$0xff] }
  0x31   : > { %2538 = vst [vmem:[#allocation4 + $0xa0] sm:$0x3] %v5191_v2  ;;  %2539 = vst [vmem:[#allocation4 + $0xa8] sm:$0xff] %v5191_v2  ;;  %1398 = vmatpush2.msra.mxu0 %v1239_v49  ;;  %1623 = vmatpush2.msra.mxu1 %v1271_v50  ;;  %v1261_v15 = vld [vmem:[%s7915_s1 + $0x198] sm:$0xff]  ;;  %v1228_v16 = vld [vmem:[%s7915_s1 + $0x90] sm:$0xff] }
  0x32   : > { %2540 = vst [vmem:[#allocation4 + $0xb0] sm:$0xff] %v5191_v2  ;;  %2541 = vst [vmem:[#allocation4 + $0xb8] sm:$0x3] %v5191_v2  ;;  %1399 = vmatprep.subr.mxu0 %v5191_v2  ;;  %1624 = vmatprep.subr.mxu1 %v5191_v2  ;;  %v1260_v17 = vld [vmem:[%s7915_s1 + $0x190] sm:$0xff]  ;;  %v299_v18 = vld [vmem:[%s5432_s15 + $0xa0] sm:$0xff] }
  0x33   : > { %2542 = vst [vmem:[#allocation4 + $0xc0] sm:$0xff] %v5191_v2  ;;  %2543 = vst [vmem:[#allocation4 + $0xc8] sm:$0xff] %v5191_v2  ;;  %1400 = vmatpush2.msra.mxu0 %v1238_v51  ;;  %1625 = vmatpush2.msra.mxu1 %v1270_v52  ;;  %v1227_v19 = vld [vmem:[%s7915_s1 + $0x88] sm:$0xff]  ;;  %v1226_v23 = vld [vmem:[%s7915_s1 + $0x80] sm:$0xff] }
  0x34   : > { %2544 = vst [vmem:[#allocation4 + $0xd0] sm:$0x3] %v5191_v2  ;;  %2545 = vst [vmem:[#allocation4 + $0xd8] sm:$0xff] %v5191_v2  ;;  %1401 = vmatprep.subr.mxu0 %v5191_v2  ;;  %1626 = vmatprep.subr.mxu1 %v5191_v2  ;;  %v409_v20 = vld [vmem:[#allocation2 + $0x1] sm:$0xff]  ;;  %v301_v24 = vld [vmem:[%s5432_s15 + $0xb0] sm:$0xff] }
  0x35   : > { %2546 = vst [vmem:[#allocation4 + $0xe0] sm:$0xff] %v5191_v2  ;;  %2547 = vst [vmem:[#allocation4 + $0xe8] sm:$0x3] %v5191_v2  ;;  %1402 = vmatpush2.msra.mxu0 %v1237_v53  ;;  %1627 = vmatpush2.msra.mxu1 %v1269_v54  ;;  %v300_v21 = vld [vmem:[%s5432_s15 + $0xa8] sm:$0xff]  ;;  %v1258_v26 = vld [vmem:[%s7915_s1 + $0x180] sm:$0xff] }
  0x36   : > { %2548 = vst [vmem:[#allocation4 + $0xf0] sm:$0xff] %v5191_v2  ;;  %2549 = vst [vmem:[#allocation4 + $0xf8] sm:$0xff] %v5191_v2  ;;  %1403 = vmatprep.subr.mxu0 %v5191_v2  ;;  %1628 = vmatprep.subr.mxu1 %v5191_v2  ;;  %v1259_v22 = vld [vmem:[%s7915_s1 + $0x188] sm:$0xff]  ;;  %v305_v37 = vld [vmem:[%s5432_s15 + $0xd0] sm:$0xff] }
  0x37   : > { %2550 = vst [vmem:[#allocation4 + $0x100] sm:$0x3] %v5191_v2  ;;  %2551 = vst [vmem:[#allocation4 + $0x108] sm:$0xff] %v5191_v2  ;;  %1404 = vmatpush2.msra.mxu0 %v1236_v55  ;;  %1629 = vmatpush2.msra.mxu1 %v1268_v56  ;;  %v410_v31 = vld [vmem:[#allocation2 + $0x9] sm:$0xff]  ;;  %v1286_v41 = vld [vmem:[%s7915_s1 + $0x260] sm:$0xff] }
  0x38   : > { %2552 = vst [vmem:[#allocation4 + $0x110] sm:$0xff] %v5191_v2  ;;  %2553 = vst [vmem:[#allocation4 + $0x118] sm:$0x3] %v5191_v2  ;;  %1405 = vmatprep.subr.mxu0 %v5191_v2  ;;  %1630 = vmatprep.subr.mxu1 %v5191_v2  ;;  %v304_v32 = vld [vmem:[%s5432_s15 + $0xc8] sm:$0xff]  ;;  %v1285_v45 = vld [vmem:[%s7915_s1 + $0x258] sm:$0xff] }
  0x39   : > { %2554 = vst [vmem:[#allocation4 + $0x120] sm:$0xff] %v5191_v2  ;;  %2555 = vst [vmem:[#allocation4 + $0x128] sm:$0xff] %v5191_v2  ;;  %1406 = vmatpush2.msra.mxu0 %v1235_v58  ;;  %1631 = vmatpush2.msra.mxu1 %v1267_v59  ;;  %v474_v36 = vld [vmem:[#allocation2 + $0xa] sm:$0xff]  ;;  %v307_v48 = vld [vmem:[%s5432_s15 + $0xe0] sm:$0xff] }
  0x3a   : > { %2556 = vst [vmem:[#allocation4 + $0x130] sm:$0x3] %v5191_v2  ;;  %2557 = vst [vmem:[#allocation4 + $0x138] sm:$0xff] %v5191_v2  ;;  %1407 = vmatprep.subr.mxu0 %v5191_v2  ;;  %1632 = vmatprep.subr.mxu1 %v5191_v2  ;;  %v1284_v47 = vld [vmem:[%s7915_s1 + $0x250] sm:$0xff]  ;;  %v1283_v51 = vld [vmem:[%s7915_s1 + $0x248] sm:$0xff] }
  0x3b   : > { %2558 = vst [vmem:[#allocation4 + $0x140] sm:$0xff] %v5191_v2  ;;  %2559 = vst [vmem:[#allocation4 + $0x148] sm:$0x3] %v5191_v2  ;;  %1408 = vmatpush2.msra.mxu0 %v1234_v63  ;;  %1633 = vmatpush2.msra.mxu1 %v1266_v0  ;;  %v308_v52 = vld [vmem:[%s5432_s15 + $0xe8] sm:$0xff]  ;;  %v309_v53 = vld [vmem:[%s5432_s15 + $0xf0] sm:$0xff] }
  0x3c   : > { %2560 = vst [vmem:[#allocation4 + $0x150] sm:$0xff] %v5191_v2  ;;  %2561 = vst [vmem:[#allocation4 + $0x158] sm:$0xff] %v5191_v2  ;;  %1409 = vmatprep.subr.mxu0 %v5191_v2  ;;  %1634 = vmatprep.subr.mxu1 %v5191_v2  ;;  %v1282_v55 = vld [vmem:[%s7915_s1 + $0x240] sm:$0xff]  ;;  %v310_v56 = vld [vmem:[%s5432_s15 + $0xf8] sm:$0xff] }
  0x3d   : > { %2562 = vst [vmem:[#allocation4 + $0x160] sm:$0x3] %v5191_v2  ;;  %2563 = vst [vmem:[#allocation4 + $0x168] sm:$0xff] %v5191_v2  ;;  %1410 = vmatpush2.msra.mxu0 %v1233_v4  ;;  %1635 = vmatpush2.msra.mxu1 %v1265_v5  ;;  %v1281_v59 = vld [vmem:[%s7915_s1 + $0x238] sm:$0xff]  ;;  %v1279_v0 = vld [vmem:[%s7915_s1 + $0x228] sm:$0xff] }
  0x3e   : > { %2564 = vst [vmem:[#allocation4 + $0x170] sm:$0xff] %v5191_v2  ;;  %2565 = vst [vmem:[#allocation4 + $0x178] sm:$0x3] %v5191_v2  ;;  %1411 = vmatprep.subr.mxu0 %v5191_v2  ;;  %1636 = vmatprep.subr.mxu1 %v5191_v2 }
  0x3f   : > { %2566 = vst [vmem:[#allocation4 + $0x180] sm:$0xff] %v5191_v2  ;;  %2567 = vst [vmem:[#allocation4 + $0x188] sm:$0xff] %v5191_v2  ;;  %1412 = vmatpush2.msra.mxu0 %v1232_v7  ;;  %1637 = vmatpush2.msra.mxu1 %v1264_v8  ;;  %v1276_v8 = vld [vmem:[%s7915_s1 + $0x210] sm:$0xff] }
  0x40   : > { %2568 = vst [vmem:[#allocation4 + $0x190] sm:$0x3] %v5191_v2  ;;  %2569 = vst [vmem:[#allocation4 + $0x198] sm:$0xff] %v5191_v2  ;;  %1413 = vmatprep.subr.mxu0 %v5191_v2  ;;  %1638 = vmatprep.subr.mxu1 %v5191_v2 }
  0x41   : > { %2570 = vst [vmem:[#allocation4 + $0x1a0] sm:$0xff] %v5191_v2  ;;  %2571 = vst [vmem:[#allocation4 + $0x1a8] sm:$0x3] %v5191_v2  ;;  %1414 = vmatpush2.msra.mxu0 %v1231_v10  ;;  %1639 = vmatpush2.msra.mxu1 %v1263_v11  ;;  %v1275_v11 = vld [vmem:[%s7915_s1 + $0x208] sm:$0xff] }
  0x42   : > { %313 = vst.msk [vmem:[#allocation2 + $0x19] sm:$0xff] %vm312_vm0, %v279_v25  ;;  %314 = vst.msk [vmem:[#allocation2 + $0x21] sm:$0xff] %vm312_vm0, %v280_v28  ;;  %1415 = vmatprep.subr.mxu0 %v5191_v2  ;;  %1640 = vmatprep.subr.mxu1 %v5191_v2  ;;  %v302_v25 = vld [vmem:[%s5432_s15 + $0xb8] sm:$0xff]  ;;  %v303_v28 = vld [vmem:[%s5432_s15 + $0xc0] sm:$0xff] }
  0x43   : > { %315 = vst.msk [vmem:[#allocation2 + $0x31] sm:$0xff] %vm312_vm0, %v281_v29  ;;  %316 = vst.msk [vmem:[#allocation2 + $0x39] sm:$0xff] %vm312_vm0, %v282_v30  ;;  %1416 = vmatpush2.msra.mxu0 %v1230_v12  ;;  %1641 = vmatpush2.msra.mxu1 %v1262_v13  ;;  %v1289_v29 = vld [vmem:[%s7915_s1 + $0x278] sm:$0xff]  ;;  %v473_v30 = vld [vmem:[#allocation2 + $0x2] sm:$0xff] }
  0x44   : > { %317 = vst.msk [vmem:[#allocation2 + $0x49] sm:$0xff] %vm312_vm0, %v283_v33  ;;  %318 = vst.msk [vmem:[#allocation2 + $0x51] sm:$0xff] %vm312_vm0, %v284_v34  ;;  %1417 = vmatprep.subr.mxu0 %v5191_v2  ;;  %1642 = vmatprep.subr.mxu1 %v5191_v2  ;;  %v1288_v34 = vld [vmem:[%s7915_s1 + $0x270] sm:$0xff]  ;;  %v1274_v13 = vld [vmem:[%s7915_s1 + $0x200] sm:$0xff] }
  0x45   : > { %319 = vst.msk [vmem:[#allocation2 + $0x61] sm:$0xff] %vm312_vm0, %v285_v35  ;;  %320 = vst.msk [vmem:[#allocation2 + $0x69] sm:$0xff] %vm312_vm0, %v286_v38  ;;  %1418 = vmatpush2.msra.mxu0 %v1229_v14  ;;  %1643 = vmatpush2.msra.mxu1 %v1261_v15 }
  0x46   : > { %321 = vst.msk [vmem:[#allocation2 + $0x79] sm:$0xff] %vm312_vm0, %v287_v39  ;;  %322 = vst.msk [vmem:[#allocation2 + $0x81] sm:$0xff] %vm312_vm0, %v288_v40  ;;  %1419 = vmatprep.subr.mxu0 %v5191_v2  ;;  %1644 = vmatprep.subr.mxu1 %v5191_v2  ;;  %v1287_v39 = vld [vmem:[%s7915_s1 + $0x268] sm:$0xff] }
  0x47   : > { %323 = vst.msk [vmem:[#allocation2 + $0x91] sm:$0xff] %vm312_vm0, %v289_v43  ;;  %324 = vst.msk [vmem:[#allocation2 + $0x99] sm:$0xff] %vm312_vm0, %v290_v44  ;;  %1420 = vmatpush2.msra.mxu0 %v1228_v16  ;;  %1645 = vmatpush2.msra.mxu1 %v1260_v17  ;;  %v306_v43 = vld [vmem:[%s5432_s15 + $0xd8] sm:$0xff]  ;;  %s224_s15 = scalar_lea.vmem %s7919_s5, %s4913_s8 }
  0x48   : > { %325 = vst.msk [vmem:[#allocation2 + $0xa9] sm:$0xff] %vm312_vm0, %v291_v57  ;;  %326 = vst.msk [vmem:[#allocation2 + $0xb1] sm:$0xff] %vm312_vm0, %v292_v60  ;;  %1421 = vmatprep.subr.mxu0 %v5191_v2  ;;  %1646 = vmatprep.subr.mxu1 %v5191_v2  ;;  %v1305_v16 = vld [vmem:[%s7915_s1 + $0x2f8] sm:$0xff] }
  0x49   : > { %327 = vst.msk [vmem:[#allocation2 + $0xc1] sm:$0xff] %vm312_vm0, %v293_v61  ;;  %328 = vst.msk [vmem:[#allocation2 + $0xc9] sm:$0xff] %vm312_vm0, %v294_v62  ;;  %1422 = vmatpush2.msra.mxu0 %v1227_v19  ;;  %1425 = vmatprep.mubr.f32.mxu0 %v409_v20  ;;  %v537_v27 = vld [vmem:[#allocation2 + $0x18] sm:$0xff]  ;;  %v538_v33 = vld [vmem:[#allocation2 + $0x20] sm:$0xff] }
  0x4a   : > { %329 = vst.msk [vmem:[#allocation2 + $0xd9] sm:$0xff] %vm312_vm0, %v295_v1  ;;  %330 = vst.msk [vmem:[#allocation2 + $0xe1] sm:$0xff] %vm312_vm0, %v296_v3  ;;  %1423 = vmatprep.subr.mxu0 %v5191_v2  ;;  %1647 = vmatpush2.msra.mxu1 %v1259_v22  ;;  %v5672_v35 = vld [vmem:[#allocation2 + $0x19] sm:$0xff]  ;;  %v5677_v38 = vld [vmem:[#allocation2 + $0x30] sm:$0xff] }
  0x4b   : > { %331 = vst.msk [vmem:[#allocation2 + $0xf1] sm:$0xff] %vm312_vm0, %v297_v6  ;;  %332 = vst.msk [vmem:[#allocation2 + $0xf9] sm:$0xff] %vm312_vm0, %v298_v9  ;;  %1424 = vmatpush2.msra.mxu0 %v1226_v23  ;;  %1648 = vmatprep.subr.mxu1 %v5191_v2  ;;  %v5685_v40 = vld [vmem:[#allocation2 + $0x21] sm:$0xff]  ;;  %v5695_v44 = vld [vmem:[#allocation2 + $0x38] sm:$0xff] }
  0x4c   : > { %333 = vst.msk [vmem:[#allocation2 + $0x109] sm:$0xff] %vm312_vm0, %v299_v18  ;;  %334 = vst.msk [vmem:[#allocation2 + $0x111] sm:$0xff] %vm312_vm0, %v300_v21  ;;  %1426 = vmatmul.mubr.f32.vlgmr.msra.gmra.mxu0 %v5191_v2  ;;  %1811 = vmatprep.subr.mxu0 %v5191_v2  ;;  %v5691_v42 = vld [vmem:[#allocation2 + $0x1a] sm:$0xff]  ;;  %v5703_v46 = vld [vmem:[#allocation2 + $0x31] sm:$0xff] }
  0x4d   : > { %335 = vst.msk [vmem:[#allocation2 + $0x121] sm:$0xff] %vm312_vm0, %v301_v24  ;;  %336 = vst.msk [vmem:[#allocation2 + $0x129] sm:$0xff] %vm312_vm0, %v302_v25  ;;  %1649 = vmatpush2.msra.mxu1 %v1258_v26  ;;  %1650 = vmatprep.mubr.f32.mxu1 %v537_v27  ;;  %v5711_v49 = vld [vmem:[#allocation2 + $0x22] sm:$0xff]  ;;  %v5725_v54 = vld [vmem:[#allocation2 + $0x39] sm:$0xff] }
  0x4e   : > { %337 = vst.msk [vmem:[#allocation2 + $0x139] sm:$0xff] %vm312_vm0, %v303_v28  ;;  %338 = vst.msk [vmem:[#allocation2 + $0x141] sm:$0xff] %vm312_vm0, %v304_v32  ;;  %1812 = vmatpush1.msra.mxu0 %v1289_v29  ;;  %1651 = vmatmul.mubr.f32.vlgmr.msra.gmra.mxu1 %v473_v30  ;;  %v5714_v50 = vld [vmem:[#allocation2 + $0x48] sm:$0xff]  ;;  %v5734_v57 = vld [vmem:[#allocation2 + $0x32] sm:$0xff] }
  0x4f   : > { %1430 = vmatprep.mubr.f32.mxu0 %v410_v31  ;;  %1813 = vmatprep.subr.mxu0 %v5191_v2  ;;  %339 = vst.msk [vmem:[#allocation2 + $0x151] sm:$0xff] %vm312_vm0, %v305_v37  ;;  %340 = vst.msk [vmem:[#allocation2 + $0x159] sm:$0xff] %vm312_vm0, %v306_v43  ;;  %v5738_v58 = vld [vmem:[#allocation2 + $0x50] sm:$0xff]  ;;  %v5753_v62 = vld [vmem:[#allocation2 + $0x3a] sm:$0xff] }
  0x50   : > { %1431 = vmatmul.mubr.f32.gmra.mxu0 %v5191_v2  ;;  %1655 = vmatprep.mubr.f32.mxu1 %v538_v33  ;;  %341 = vst.msk [vmem:[#allocation2 + $0x169] sm:$0xff] %vm312_vm0, %v307_v48  ;;  %342 = vst.msk [vmem:[#allocation2 + $0x171] sm:$0xff] %vm312_vm0, %v308_v52  ;;  %v5746_v60 = vld [vmem:[#allocation2 + $0x49] sm:$0xff]  ;;  %v5756_v63 = vld [vmem:[#allocation2 + $0x60] sm:$0xff] }
  0x51   : > { %1814 = vmatpush1.msra.mxu0 %v1288_v34  ;;  %1435 = vmatprep.mubr.f32.mxu0 %v5672_v35  ;;  %343 = vst.msk [vmem:[#allocation2 + $0x181] sm:$0xff] %vm312_vm0, %v309_v53  ;;  %344 = vst.msk [vmem:[#allocation2 + $0x189] sm:$0xff] %vm312_vm0, %v310_v56  ;;  %v1280_v61 = vld [vmem:[%s7915_s1 + $0x230] sm:$0xff]  ;;  %v1278_v3 = vld [vmem:[%s7915_s1 + $0x220] sm:$0xff] }
  0x52   : > { %1656 = vmatmul.mubr.f32.gmra.mxu1 %v474_v36  ;;  %1815 = vmatprep.subr.mxu0 %v5191_v2  ;;  %v5764_v1 = vld [vmem:[#allocation2 + $0x51] sm:$0xff]  ;;  %v5774_v5 = vld [vmem:[#allocation2 + $0x68] sm:$0xff]  ;;  %v5810_v15 = vld [vmem:[#allocation2 + $0x80] sm:$0xff] }
  0x53   : > { %1660 = vmatprep.mubr.f32.mxu1 %v5677_v38  ;;  %1816 = vmatpush1.msra.mxu0 %v1287_v39  ;;  %v5771_v4 = vld [vmem:[#allocation2 + $0x4a] sm:$0xff]  ;;  %v1277_v6 = vld [vmem:[%s7915_s1 + $0x218] sm:$0xff]  ;;  %v5782_v7 = vld [vmem:[#allocation2 + $0x61] sm:$0xff] }
  0x54   : > { %1436 = vmatmul.mubr.f32.gmra.mxu0 %v537_v27  ;;  %1817 = vmatprep.subr.mxu0 %v5191_v2  ;;  %v5789_v9 = vld [vmem:[#allocation2 + $0x52] sm:$0xff]  ;;  %v5800_v12 = vld [vmem:[#allocation2 + $0x69] sm:$0xff]  ;;  %v5836_v22 = vld [vmem:[#allocation2 + $0x81] sm:$0xff] }
  0x55   : > { %1440 = vmatprep.mubr.f32.mxu0 %v5685_v40  ;;  %1818 = vmatpush1.msra.mxu0 %v1286_v41  ;;  %v5792_v10 = vld [vmem:[#allocation2 + $0x78] sm:$0xff]  ;;  %v5807_v14 = vld [vmem:[#allocation2 + $0x62] sm:$0xff]  ;;  %v5825_v19 = vld [vmem:[#allocation2 + $0x6a] sm:$0xff] }
  0x56   : > { %1661 = vmatmul.mubr.f32.gmra.mxu1 %v5691_v42  ;;  %1819 = vmatprep.subr.mxu0 %v5191_v2  ;;  %v5818_v17 = vld [vmem:[#allocation2 + $0x79] sm:$0xff]  ;;  %v5828_v20 = vld [vmem:[#allocation2 + $0x90] sm:$0xff]  ;;  %v1319_v26 = vld [vmem:[%s7915_s1 + $0x368] sm:$0xff] }
  0x57   : > { %1665 = vmatprep.mubr.f32.mxu1 %v5695_v44  ;;  %1820 = vmatpush1.msra.mxu0 %v1285_v45  ;;  %v1321_v18 = vld [vmem:[%s7915_s1 + $0x378] sm:$0xff]  ;;  %v1320_v21 = vld [vmem:[%s7915_s1 + $0x370] sm:$0xff]  ;;  %v5858_v28 = vld [vmem:[#allocation2 + $0x82] sm:$0xff] }
  0x58   : > { %1441 = vmatmul.mubr.f32.gmra.mxu0 %v538_v33  ;;  %1821 = vmatprep.subr.mxu0 %v5191_v2  ;;  %v1304_v23 = vld [vmem:[%s7915_s1 + $0x2f0] sm:$0xff]  ;;  %v5843_v24 = vld [vmem:[#allocation2 + $0x7a] sm:$0xff]  ;;  %v1303_v29 = vld [vmem:[%s7915_s1 + $0x2e8] sm:$0xff] }
  0x59   : > { %1445 = vmatprep.mubr.f32.mxu0 %v5703_v46  ;;  %1822 = vmatpush1.msra.mxu0 %v1284_v47  ;;  %v5847_v25 = vld [vmem:[#allocation2 + $0x98] sm:$0xff]  ;;  %v5864_v30 = vld [vmem:[#allocation2 + $0xa8] sm:$0xff]  ;;  %v5866_v31 = vld [vmem:[#allocation2] sm:$0xff] }
  0x5a   : > { %1666 = vmatmul.mubr.f32.gmra.mxu1 %v5711_v49  ;;  %1823 = vmatprep.subr.mxu0 %v5191_v2  ;;  %v5854_v27 = vld [vmem:[#allocation2 + $0x91] sm:$0xff]  ;;  %v5875_v32 = vld [vmem:[#allocation2 + $0x99] sm:$0xff]  ;;  %v5892_v39 = vld [vmem:[#allocation2 + $0xa9] sm:$0xff] }
  0x5b   : > { %1670 = vmatprep.mubr.f32.mxu1 %v5714_v50  ;;  %1824 = vmatpush1.msra.mxu0 %v1283_v51  ;;  %v1317_v33 = vld [vmem:[%s7915_s1 + $0x358] sm:$0xff]  ;;  %v5884_v36 = vld [vmem:[#allocation2 + $0xb0] sm:$0xff]  ;;  %v1302_v41 = vld [vmem:[%s7915_s1 + $0x2e0] sm:$0xff] }
  0x5c   : > { %1446 = vmatmul.mubr.f32.gmra.mxu0 %v5677_v38  ;;  %1825 = vmatprep.subr.mxu0 %v5191_v2  ;;  %v5881_v34 = vld [vmem:[#allocation2 + $0x92] sm:$0xff]  ;;  %v5899_v43 = vld [vmem:[#allocation2 + $0x9a] sm:$0xff]  ;;  %v1315_v47 = vld [vmem:[%s7915_s1 + $0x348] sm:$0xff] }
  0x5d   : > { %1450 = vmatprep.mubr.f32.mxu0 %v5725_v54  ;;  %1826 = vmatpush1.msra.mxu0 %v1282_v55  ;;  %v1316_v37 = vld [vmem:[%s7915_s1 + $0x350] sm:$0xff]  ;;  %v5903_v45 = vld [vmem:[#allocation2 + $0xc0] sm:$0xff]  ;;  %v1301_v52 = vld [vmem:[%s7915_s1 + $0x2d8] sm:$0xff] }
  0x5e   : > { %1671 = vmatmul.mubr.f32.gmra.mxu1 %v5734_v57  ;;  %1827 = vmatprep.subr.mxu0 %v5191_v2  ;;  %v5910_v48 = vld [vmem:[#allocation2 + $0xb1] sm:$0xff]  ;;  %v5920_v53 = vld [vmem:[#allocation2 + $0xc8] sm:$0xff]  ;;  %v1314_v55 = vld [vmem:[%s7915_s1 + $0x340] sm:$0xff] }
  0x5f   : > { %1675 = vmatprep.mubr.f32.mxu1 %v5738_v58  ;;  %1828 = vmatpush1.msra.mxu0 %v1281_v59  ;;  %v5914_v51 = vld [vmem:[#allocation2 + $0xaa] sm:$0xff]  ;;  %v5929_v56 = vld [vmem:[#allocation2 + $0xc1] sm:$0xff]  ;;  %v1313_v59 = vld [vmem:[%s7915_s1 + $0x338] sm:$0xff] }
  0x60   : > { %1451 = vmatmul.mubr.f32.gmra.mxu0 %v5695_v44  ;;  %1829 = vmatprep.subr.mxu0 %v5191_v2 }
  0x61   : > { %1455 = vmatprep.mubr.f32.mxu0 %v5746_v60  ;;  %1830 = vmatpush1.msra.mxu0 %v1280_v61  ;;  %v5935_v61 = vld [vmem:[#allocation2 + $0xb2] sm:$0xff] }
  0x62   : > { %1676 = vmatmul.mubr.f32.gmra.mxu1 %v5753_v62  ;;  %1831 = vmatprep.subr.mxu0 %v5191_v2 }
  0x63   : > { %1680 = vmatprep.mubr.f32.mxu1 %v5756_v63  ;;  %1832 = vmatpush1.msra.mxu0 %v1279_v0  ;;  %v5938_v0 = vld [vmem:[#allocation2 + $0xd8] sm:$0xff] }
  0x64   : > { %1456 = vmatmul.mubr.f32.gmra.mxu0 %v5714_v50  ;;  %1833 = vmatprep.subr.mxu0 %v5191_v2 }
  0x65   : > { %1460 = vmatprep.mubr.f32.mxu0 %v5764_v1  ;;  %1834 = vmatpush1.msra.mxu0 %v1278_v3  ;;  %v1312_v3 = vld [vmem:[%s7915_s1 + $0x330] sm:$0xff] }
  0x66   : > { %1681 = vmatmul.mubr.f32.gmra.mxu1 %v5771_v4  ;;  %1835 = vmatprep.subr.mxu0 %v5191_v2 }
  0x67   : > { %1685 = vmatprep.mubr.f32.mxu1 %v5774_v5  ;;  %1836 = vmatpush1.msra.mxu0 %v1277_v6  ;;  %v5946_v6 = vld [vmem:[#allocation2 + $0xc9] sm:$0xff] }
  0x68   : > { %1461 = vmatmul.mubr.f32.gmra.mxu0 %v5738_v58  ;;  %1837 = vmatprep.subr.mxu0 %v5191_v2 }
  0x69   : > { %1465 = vmatprep.mubr.f32.mxu0 %v5782_v7  ;;  %1838 = vmatpush1.msra.mxu0 %v1276_v8  ;;  %v1300_v8 = vld [vmem:[%s7915_s1 + $0x2d0] sm:$0xff] }
  0x6a   : > { %1686 = vmatmul.mubr.f32.gmra.mxu1 %v5789_v9  ;;  %1839 = vmatprep.subr.mxu0 %v5191_v2 }
  0x6b   : > { %1690 = vmatprep.mubr.f32.mxu1 %v5792_v10  ;;  %1840 = vmatpush1.msra.mxu0 %v1275_v11  ;;  %v5953_v11 = vld [vmem:[#allocation2 + $0xc2] sm:$0xff] }
  0x6c   : > { %1466 = vmatmul.mubr.f32.gmra.mxu0 %v5756_v63  ;;  %1841 = vmatprep.subr.mxu0 %v5191_v2 }
  0x6d   : > { %1470 = vmatprep.mubr.f32.mxu0 %v5800_v12  ;;  %1842 = vmatpush1.msra.mxu0 %v1274_v13  ;;  %v5957_v13 = vld [vmem:[#allocation2 + $0xe0] sm:$0xff] }
  0x6e   : > { %1691 = vmatmul.mubr.f32.gmra.mxu1 %v5807_v14  ;;  %1843 = vmatprep.subr.mxu0 %v5191_v2 }
  0x6f   : > { %1695 = vmatprep.mubr.f32.mxu1 %v5810_v15  ;;  %1844 = vmatpush2.msra.mxu0 %v1305_v16  ;;  %v1311_v16 = vld [vmem:[%s7915_s1 + $0x328] sm:$0xff] }
  0x70   : > { %1471 = vmatmul.mubr.f32.gmra.mxu0 %v5774_v5  ;;  %2036 = vmatprep.subr.mxu1 %v5191_v2 }
  0x71   : > { %1475 = vmatprep.mubr.f32.mxu0 %v5818_v17  ;;  %2037 = vmatpush1.msra.mxu1 %v1321_v18  ;;  %v5964_v18 = vld [vmem:[#allocation2 + $0xd9] sm:$0xff] }
  0x72   : > { %1696 = vmatmul.mubr.f32.gmra.mxu1 %v5825_v19  ;;  %1845 = vmatprep.subr.mxu0 %v5191_v2 }
  0x73   : > { %1700 = vmatprep.mubr.f32.mxu1 %v5828_v20  ;;  %2038 = vmatprep.subr.mxu1 %v5191_v2 }
  0x74   : > { %1476 = vmatmul.mubr.f32.gmra.mxu0 %v5792_v10  ;;  %2039 = vmatpush1.msra.mxu1 %v1320_v21  ;;  %v5968_v21 = vld [vmem:[#allocation2 + $0xca] sm:$0xff] }
  0x75   : > { %1480 = vmatprep.mubr.f32.mxu0 %v5836_v22  ;;  %1846 = vmatpush2.msra.mxu0 %v1304_v23  ;;  %v1299_v23 = vld [vmem:[%s7915_s1 + $0x2c8] sm:$0xff] }
  0x76   : > { %1701 = vmatmul.mubr.f32.gmra.mxu1 %v5843_v24  ;;  %2040 = vmatprep.subr.mxu1 %v5191_v2  ;;  %v1318_v2 = vld [vmem:[%s7915_s1 + $0x360] sm:$0xff] }
  0x77   : > { %1705 = vmatprep.mubr.f32.mxu1 %v5847_v25  ;;  %2041 = vmatpush1.msra.mxu1 %v1319_v26  ;;  %v5974_v26 = vld [vmem:[#allocation2 + $0xf0] sm:$0xff] }
  0x78   : > { %1481 = vmatmul.mubr.f32.gmra.mxu0 %v5810_v15  ;;  %1847 = vmatprep.subr.mxu0 %v5866_v31  ;;  %7965 = vst [vmem:[#allocation6_spill] sm:$0xff] %v5974_v26 }
  0x79   : > { %1485 = vmatprep.mubr.f32.mxu0 %v5854_v27  ;;  %2042 = vmatprep.subr.mxu1 %v5866_v31 }
  0x7a   : > { %1706 = vmatmul.mubr.f32.gmra.mxu1 %v5858_v28  ;;  %1848 = vmatpush2.msra.mxu0 %v1303_v29  ;;  %v1310_v29 = vld [vmem:[%s7915_s1 + $0x320] sm:$0xff] }
  0x7b   : > { %1710 = vmatprep.mubr.f32.mxu1 %v5864_v30  ;;  %2043 = vmatpush1.msra.mxu1 %v1318_v2  ;;  %v5983_v2 = vld [vmem:[#allocation2 + $0xe1] sm:$0xff] }
  0x7c   : > { %1486 = vmatmul.mubr.f32.gmra.mxu0 %v5828_v20  ;;  %2044 = vmatprep.subr.mxu1 %v5866_v31 }
  0x7d   : > { %1490 = vmatprep.mubr.f32.mxu0 %v5875_v32  ;;  %2045 = vmatpush1.msra.mxu1 %v1317_v33  ;;  %v1309_v33 = vld [vmem:[%s7915_s1 + $0x318] sm:$0xff] }
  0x7e   : > { %1711 = vmatmul.mubr.f32.gmra.mxu1 %v5881_v34  ;;  %1849 = vmatprep.subr.mxu0 %v5866_v31 }
  0x7f   : > { %1715 = vmatprep.mubr.f32.mxu1 %v5884_v36  ;;  %2046 = vmatprep.subr.mxu1 %v5866_v31 }
  0x80   : > { %1491 = vmatmul.mubr.f32.gmra.mxu0 %v5847_v25  ;;  %2047 = vmatpush1.msra.mxu1 %v1316_v37  ;;  %v5989_v37 = vld [vmem:[#allocation2 + $0xda] sm:$0xff] }
  0x81   : > { %1495 = vmatprep.mubr.f32.mxu0 %v5892_v39  ;;  %1850 = vmatpush2.msra.mxu0 %v1302_v41  ;;  %v5992_v41 = vld [vmem:[#allocation2 + $0xf8] sm:$0xff] }
  0x82   : > { %1716 = vmatmul.mubr.f32.gmra.mxu1 %v5899_v43  ;;  %2048 = vmatprep.subr.mxu1 %v5866_v31  ;;  %7966 = vst [vmem:[#allocation7_spill] sm:$0xff] %v5992_v41 }
  0x83   : > { %1720 = vmatprep.mubr.f32.mxu1 %v5903_v45  ;;  %2049 = vmatpush1.msra.mxu1 %v1315_v47  ;;  %v1308_v47 = vld [vmem:[%s7915_s1 + $0x310] sm:$0xff] }
  0x84   : > { %1496 = vmatmul.mubr.f32.gmra.mxu0 %v5864_v30  ;;  %1851 = vmatprep.subr.mxu0 %v5866_v31 }
  0x85   : > { %1500 = vmatprep.mubr.f32.mxu0 %v5910_v48  ;;  %2050 = vmatprep.subr.mxu1 %v5866_v31 }
  0x86   : > { %1721 = vmatmul.mubr.f32.gmra.mxu1 %v5914_v51  ;;  %1852 = vmatpush2.msra.mxu0 %v1301_v52  ;;  %v6000_v52 = vld [vmem:[#allocation2 + $0xf1] sm:$0xff] }
  0x87   : > { %1725 = vmatprep.mubr.f32.mxu1 %v5920_v53  ;;  %2051 = vmatpush1.msra.mxu1 %v1314_v55  ;;  %v1298_v55 = vld [vmem:[%s7915_s1 + $0x2c0] sm:$0xff] }
  0x88   : > { %1501 = vmatmul.mubr.f32.gmra.mxu0 %v5884_v36  ;;  %2052 = vmatprep.subr.mxu1 %v5866_v31 }
  0x89   : > { %1505 = vmatprep.mubr.f32.mxu0 %v5929_v56  ;;  %2053 = vmatpush1.msra.mxu1 %v1313_v59  ;;  %v6007_v59 = vld [vmem:[#allocation2 + $0xe2] sm:$0xff] }
  0x8a   : > { %1726 = vmatmul.mubr.f32.gmra.mxu1 %v5935_v61  ;;  %1853 = vmatprep.subr.mxu0 %v5866_v31  ;;  %7967 = vst [vmem:[#allocation8_spill] sm:$0xff] %v6007_v59 }
  0x8b   : > { %1730 = vmatprep.mubr.f32.mxu1 %v5938_v0  ;;  %2054 = vmatprep.subr.mxu1 %v5866_v31 }
  0x8c   : > { %1506 = vmatmul.mubr.f32.gmra.mxu0 %v5903_v45  ;;  %2055 = vmatpush1.msra.mxu1 %v1312_v3  ;;  %v6011_v3 = vld [vmem:[#allocation2 + $0x108] sm:$0xff] }
  0x8d   : > { %1510 = vmatprep.mubr.f32.mxu0 %v5946_v6  ;;  %1854 = vmatpush2.msra.mxu0 %v1300_v8  ;;  %7968 = vst [vmem:[#allocation9_spill] sm:$0xff] %v6011_v3  ;;  %v1307_v8 = vld [vmem:[%s7915_s1 + $0x308] sm:$0xff] }
  0x8e   : > { %1731 = vmatmul.mubr.f32.gmra.mxu1 %v5953_v11  ;;  %2056 = vmatprep.subr.mxu1 %v5866_v31 }
  0x8f   : > { %1735 = vmatprep.mubr.f32.mxu1 %v5957_v13  ;;  %2057 = vmatpush1.msra.mxu1 %v1311_v16  ;;  %v6018_v16 = vld [vmem:[#allocation2 + $0xf9] sm:$0xff] }
  0x90   : > { %1511 = vmatmul.mubr.f32.gmra.mxu0 %v5920_v53  ;;  %1855 = vmatprep.subr.mxu0 %v5866_v31  ;;  %7969 = vst [vmem:[#allocation10_spill] sm:$0xff] %v6018_v16 }
  0x91   : > { %1515 = vmatprep.mubr.f32.mxu0 %v5964_v18  ;;  %2058 = vmatprep.subr.mxu1 %v5866_v31 }
  0x92   : > { %1736 = vmatmul.mubr.f32.gmra.mxu1 %v5968_v21  ;;  %1856 = vmatpush2.msra.mxu0 %v1299_v23  ;;  %v6022_v23 = vld [vmem:[#allocation2 + $0xf2] sm:$0xff] }
  0x93   : > { %1740 = vmatprep.mubr.f32.mxu1 %v5974_v26  ;;  %2059 = vmatpush1.msra.mxu1 %v1310_v29  ;;  %7970 = vst [vmem:[#allocation11_spill] sm:$0xff] %v6022_v23  ;;  %v1297_v29 = vld [vmem:[%s7915_s1 + $0x2b8] sm:$0xff] }
  0x94   : > { %1516 = vmatmul.mubr.f32.gmra.mxu0 %v5938_v0  ;;  %2060 = vmatprep.subr.mxu1 %v5866_v31 }
  0x95   : > { %1520 = vmatprep.mubr.f32.mxu0 %v5983_v2  ;;  %2061 = vmatpush1.msra.mxu1 %v1309_v33  ;;  %v6028_v33 = vld [vmem:[#allocation2 + $0x110] sm:$0xff] }
  0x96   : > { %1741 = vmatmul.mubr.f32.gmra.mxu1 %v5989_v37  ;;  %1857 = vmatprep.subr.mxu0 %v5866_v31  ;;  %7971 = vst [vmem:[#allocation12_spill] sm:$0xff] %v6028_v33 }
  0x97   : > { %1745 = vmatprep.mubr.f32.mxu1 %v5992_v41  ;;  %2062 = vmatprep.subr.mxu1 %v5866_v31 }
  0x98   : > { %1521 = vmatmul.mubr.f32.gmra.mxu0 %v5957_v13  ;;  %2063 = vmatpush1.msra.mxu1 %v1308_v47  ;;  %v1306_v47 = vld [vmem:[%s7915_s1 + $0x300] sm:$0xff] }
  0x99   : > { %1525 = vmatprep.mubr.f32.mxu0 %v6000_v52  ;;  %1858 = vmatpush2.msra.mxu0 %v1298_v55  ;;  %v6037_v55 = vld [vmem:[#allocation2 + $0x109] sm:$0xff] }
  0x9a   : > { %1746 = vmatmul.mubr.f32.gmra.mxu1 %v6007_v59  ;;  %2064 = vmatprep.subr.mxu1 %v5866_v31  ;;  %7972 = vst [vmem:[#allocation13_spill] sm:$0xff] %v6037_v55  ;;  %v6046_v59 = vld [vmem:[#allocation2 + $0x120] sm:$0xff] }
  0x9b   : > { %1750 = vmatprep.mubr.f32.mxu1 %v6011_v3  ;;  %2065 = vmatpush1.msra.mxu1 %v1307_v8  ;;  %v1337_v8 = vld [vmem:[%s7915_s1 + $0x3f8] sm:$0xff]  ;;  %7974 = vst [vmem:[#allocation15_spill] sm:$0xff] %v6046_v59 }
  0x9c   : > { %1526 = vmatmul.mubr.f32.gmra.mxu0 %v5974_v26  ;;  %1859 = vmatprep.subr.mxu0 %v5866_v31  ;;  %v6043_v26 = vld [vmem:[#allocation2 + $0xfa] sm:$0xff] }
  0x9d   : > { %1530 = vmatprep.mubr.f32.mxu0 %v6018_v16  ;;  %2066 = vmatprep.subr.mxu1 %v5866_v31  ;;  %7973 = vst [vmem:[#allocation14_spill] sm:$0xff] %v6043_v26  ;;  %v6076_v16 = vld [vmem:[#allocation2 + $0x112] sm:$0xff] }
  0x9e   : > { %1751 = vmatmul.mubr.f32.gmra.mxu1 %v6022_v23  ;;  %1860 = vmatpush2.msra.mxu0 %v1297_v29  ;;  %v1336_v29 = vld [vmem:[%s7915_s1 + $0x3f0] sm:$0xff]  ;;  %7979 = vst [vmem:[#allocation20_spill] sm:$0xff] %v6076_v16 }
  0x9f   : > { %1755 = vmatprep.mubr.f32.mxu1 %v6028_v33  ;;  %2067 = vmatpush1.msra.mxu1 %v1306_v47  ;;  %v6054_v23 = vld [vmem:[#allocation2 + $0x111] sm:$0xff] }
  0xa0   : > { %1531 = vmatmul.mubr.f32.gmra.mxu0 %v5992_v41  ;;  %2068 = vmatprep.subr.mxu1 %v5866_v31  ;;  %7975 = vst [vmem:[#allocation16_spill] sm:$0xff] %v6054_v23  ;;  %v1296_v47 = vld [vmem:[%s7915_s1 + $0x2b0] sm:$0xff] }
  0xa1   : > { %1535 = vmatprep.mubr.f32.mxu0 %v6037_v55  ;;  %2069 = vmatpush2.msra.mxu1 %v1337_v8  ;;  %v6061_v41 = vld [vmem:[#allocation2 + $0x10a] sm:$0xff]  ;;  %v6072_v55 = vld [vmem:[#allocation2 + $0x121] sm:$0xff] }
  0xa2   : > { %1756 = vmatmul.mubr.f32.gmra.mxu1 %v6043_v26  ;;  %1861 = vmatprep.subr.mxu0 %v5866_v31  ;;  %7976 = vst [vmem:[#allocation17_spill] sm:$0xff] %v6061_v41  ;;  %v6065_v8 = vld [vmem:[#allocation2 + $0x128] sm:$0xff]  ;;  %7978 = vst [vmem:[#allocation19_spill] sm:$0xff] %v6072_v55 }
  0xa3   : > { %1760 = vmatprep.mubr.f32.mxu1 %v6046_v59  ;;  %2070 = vmatprep.subr.mxu1 %v5866_v31  ;;  %7977 = vst [vmem:[#allocation18_spill] sm:$0xff] %v6065_v8  ;;  %v1335_v26 = vld [vmem:[%s7915_s1 + $0x3e8] sm:$0xff] }
  0xa4   : > { %1536 = vmatmul.mubr.f32.gmra.mxu0 %v6011_v3  ;;  %2071 = vmatpush2.msra.mxu1 %v1336_v29  ;;  %v1295_v29 = vld [vmem:[%s7915_s1 + $0x2a8] sm:$0xff]  ;;  %v6082_v3 = vld [vmem:[#allocation2 + $0x138] sm:$0xff] }
  0xa5   : > { %1540 = vmatprep.mubr.f32.mxu0 %v6054_v23  ;;  %1862 = vmatpush2.msra.mxu0 %v1296_v47  ;;  %7980 = vst [vmem:[#allocation21_spill] sm:$0xff] %v6082_v3  ;;  %v1334_v47 = vld [vmem:[%s7915_s1 + $0x3e0] sm:$0xff] }
  0xa6   : > { %1761 = vmatmul.mubr.f32.gmra.mxu1 %v6061_v41  ;;  %2072 = vmatprep.subr.mxu1 %v5866_v31  ;;  %v6097_v41 = vld [vmem:[#allocation2 + $0x122] sm:$0xff] }
  0xa7   : > { %1765 = vmatprep.mubr.f32.mxu1 %v6065_v8  ;;  %2073 = vmatpush2.msra.mxu1 %v1335_v26  ;;  %v6091_v26 = vld [vmem:[#allocation2 + $0x129] sm:$0xff]  ;;  %7982 = vst [vmem:[#allocation23_spill] sm:$0xff] %v6097_v41  ;;  %v6100_v23 = vld [vmem:[#allocation2 + $0x140] sm:$0xff] }
  0xa8   : > { %1541 = vmatmul.mubr.f32.gmra.mxu0 %v6028_v33  ;;  %1863 = vmatprep.subr.mxu0 %v5866_v31  ;;  %7981 = vst [vmem:[#allocation22_spill] sm:$0xff] %v6091_v26  ;;  %v1333_v33 = vld [vmem:[%s7915_s1 + $0x3d8] sm:$0xff]  ;;  %7983 = vst [vmem:[#allocation24_spill] sm:$0xff] %v6100_v23 }
  0xa9   : > { %1545 = vmatprep.mubr.f32.mxu0 %v6072_v55  ;;  %2074 = vmatprep.subr.mxu1 %v5866_v31  ;;  %v6130_v55 = vld [vmem:[#allocation2 + $0x13a] sm:$0xff] }
  0xaa   : > { %1766 = vmatmul.mubr.f32.gmra.mxu1 %v6076_v16  ;;  %1864 = vmatpush2.msra.mxu0 %v1295_v29  ;;  %v1332_v29 = vld [vmem:[%s7915_s1 + $0x3d0] sm:$0xff]  ;;  %v6108_v16 = vld [vmem:[#allocation2 + $0x139] sm:$0xff]  ;;  %7987 = vst [vmem:[#allocation28_spill] sm:$0xff] %v6130_v55 }
  0xab   : > { %1770 = vmatprep.mubr.f32.mxu1 %v6082_v3  ;;  %2075 = vmatpush2.msra.mxu1 %v1334_v47  ;;  %7984 = vst [vmem:[#allocation25_spill] sm:$0xff] %v6108_v16  ;;  %v1294_v47 = vld [vmem:[%s7915_s1 + $0x2a0] sm:$0xff] }
  0xac   : > { %1546 = vmatmul.mubr.f32.gmra.mxu0 %v6046_v59  ;;  %2076 = vmatprep.subr.mxu1 %v5866_v31  ;;  %v6115_v59 = vld [vmem:[#allocation2 + $0x12a] sm:$0xff] }
  0xad   : > { %1550 = vmatprep.mubr.f32.mxu0 %v6091_v26  ;;  %2077 = vmatpush2.msra.mxu1 %v1333_v33  ;;  %7985 = vst [vmem:[#allocation26_spill] sm:$0xff] %v6115_v59  ;;  %v6119_v33 = vld [vmem:[#allocation2 + $0x150] sm:$0xff]  ;;  %v6126_v26 = vld [vmem:[#allocation2 + $0x141] sm:$0xff] }
  0xae   : > { %1771 = vmatmul.mubr.f32.gmra.mxu1 %v6097_v41  ;;  %1865 = vmatprep.subr.mxu0 %v5866_v31  ;;  %v1331_v41 = vld [vmem:[%s7915_s1 + $0x3c8] sm:$0xff]  ;;  %7986 = vst [vmem:[#allocation27_spill] sm:$0xff] %v6126_v26 }
  0xaf   : > { %1775 = vmatprep.mubr.f32.mxu1 %v6100_v23  ;;  %2078 = vmatprep.subr.mxu1 %v5866_v31 }
  0xb0   : > { %1551 = vmatmul.mubr.f32.gmra.mxu0 %v6065_v8  ;;  %2079 = vmatpush2.msra.mxu1 %v1332_v29  ;;  %v1293_v29 = vld [vmem:[%s7915_s1 + $0x298] sm:$0xff] }
  0xb1   : > { %1555 = vmatprep.mubr.f32.mxu0 %v6108_v16  ;;  %1866 = vmatpush2.msra.mxu0 %v1294_v47  ;;  %v6136_v8 = vld [vmem:[#allocation2 + $0x158] sm:$0xff]  ;;  %v1330_v47 = vld [vmem:[%s7915_s1 + $0x3c0] sm:$0xff]  ;;  %v6154_v16 = vld [vmem:[#allocation2 + $0x168] sm:$0xff] }
  0xb2   : > { %1776 = vmatmul.mubr.f32.gmra.mxu1 %v6115_v59  ;;  %2080 = vmatprep.subr.mxu1 %v5866_v31  ;;  %7988 = vst [vmem:[#allocation29_spill] sm:$0xff] %v6136_v8  ;;  %v6151_v59 = vld [vmem:[#allocation2 + $0x142] sm:$0xff] }
  0xb3   : > { %1780 = vmatprep.mubr.f32.mxu1 %v6119_v33  ;;  %2081 = vmatpush2.msra.mxu1 %v1331_v41  ;;  %v6145_v41 = vld [vmem:[#allocation2 + $0x151] sm:$0xff]  ;;  %7990 = vst [vmem:[#allocation31_spill] sm:$0xff] %v6151_v59 }
  0xb4   : > { %1556 = vmatmul.mubr.f32.gmra.mxu0 %v6082_v3  ;;  %1867 = vmatprep.subr.mxu0 %v5866_v31  ;;  %7989 = vst [vmem:[#allocation30_spill] sm:$0xff] %v6145_v41  ;;  %v1329_v3 = vld [vmem:[%s7915_s1 + $0x3b8] sm:$0xff] }
  0xb5   : > { %1560 = vmatprep.mubr.f32.mxu0 %v6126_v26  ;;  %2082 = vmatprep.subr.mxu1 %v5866_v31  ;;  %v6184_v26 = vld [vmem:[#allocation2 + $0x15a] sm:$0xff] }
  0xb6   : > { %1781 = vmatmul.mubr.f32.gmra.mxu1 %v6130_v55  ;;  %1868 = vmatpush2.msra.mxu0 %v1293_v29  ;;  %v1328_v29 = vld [vmem:[%s7915_s1 + $0x3b0] sm:$0xff]  ;;  %v6162_v55 = vld [vmem:[#allocation2 + $0x159] sm:$0xff] }
  0xb7   : > { %1785 = vmatprep.mubr.f32.mxu1 %v6136_v8  ;;  %2083 = vmatpush2.msra.mxu1 %v1330_v47  ;;  %7991 = vst [vmem:[#allocation32_spill] sm:$0xff] %v6162_v55  ;;  %v1292_v47 = vld [vmem:[%s7915_s1 + $0x290] sm:$0xff] }
  0xb8   : > { %1561 = vmatmul.mubr.f32.gmra.mxu0 %v6100_v23  ;;  %2084 = vmatprep.subr.mxu1 %v5866_v31  ;;  %v6169_v23 = vld [vmem:[#allocation2 + $0x152] sm:$0xff] }
  0xb9   : > { %1565 = vmatprep.mubr.f32.mxu0 %v6145_v41  ;;  %2085 = vmatpush2.msra.mxu1 %v1329_v3  ;;  %7992 = vst [vmem:[#allocation33_spill] sm:$0xff] %v6169_v23  ;;  %v6173_v3 = vld [vmem:[#allocation2 + $0x170] sm:$0xff] }
  0xba   : > { %1786 = vmatmul.mubr.f32.gmra.mxu1 %v6151_v59  ;;  %1869 = vmatprep.subr.mxu0 %v5866_v31  ;;  %v1327_v59 = vld [vmem:[%s7915_s1 + $0x3a8] sm:$0xff] }
  0xbb   : > { %1790 = vmatprep.mubr.f32.mxu1 %v6154_v16  ;;  %2086 = vmatprep.subr.mxu1 %v5866_v31  ;;  %v6181_v41 = vld [vmem:[#allocation2 + $0x169] sm:$0xff] }
  0xbc   : > { %1566 = vmatmul.mubr.f32.gmra.mxu0 %v6119_v33  ;;  %2087 = vmatpush2.msra.mxu1 %v1328_v29  ;;  %7993 = vst [vmem:[#allocation34_spill] sm:$0xff] %v6181_v41  ;;  %v1291_v29 = vld [vmem:[%s7915_s1 + $0x288] sm:$0xff] }
  0xbd   : > { %1570 = vmatprep.mubr.f32.mxu0 %v6162_v55  ;;  %1870 = vmatpush2.msra.mxu0 %v1292_v47  ;;  %v6191_v47 = vld [vmem:[#allocation2 + $0x180] sm:$0xff]  ;;  %v6205_v55 = vld [vmem:[#allocation2 + $0x16a] sm:$0xff] }
  0xbe   : > { %1791 = vmatmul.mubr.f32.gmra.mxu1 %v6169_v23  ;;  %2088 = vmatprep.subr.mxu1 %v5866_v31  ;;  %7994 = vst [vmem:[#allocation35_spill] sm:$0xff] %v6191_v47  ;;  %v1326_v23 = vld [vmem:[%s7915_s1 + $0x3a0] sm:$0xff]  ;;  %7995 = vst [vmem:[#allocation36_spill] sm:$0xff] %v6205_v55 }
  0xbf   : > { %1795 = vmatprep.mubr.f32.mxu1 %v6173_v3  ;;  %2089 = vmatpush2.msra.mxu1 %v1327_v59  ;;  %v6199_v59 = vld [vmem:[#allocation2 + $0x171] sm:$0xff] }
  0xc0   : > { %1571 = vmatmul.mubr.f32.gmra.mxu0 %v6136_v8  ;;  %1871 = vmatprep.subr.mxu0 %v5866_v31  ;;  %v1325_v8 = vld [vmem:[%s7915_s1 + $0x398] sm:$0xff] }
  0xc1   : > { %1575 = vmatprep.mubr.f32.mxu0 %v6181_v41  ;;  %2090 = vmatprep.subr.mxu1 %v5866_v31  ;;  %v6209_v41 = vld [vmem:[#allocation2 + $0x188] sm:$0xff] }
  0xc2   : > { %1796 = vmatmul.mubr.f32.gmra.mxu1 %v6184_v26  ;;  %1872 = vmatpush2.msra.mxu0 %v1291_v29  ;;  %7996 = vst [vmem:[#allocation37_spill] sm:$0xff] %v6209_v41  ;;  %v1324_v29 = vld [vmem:[%s7915_s1 + $0x390] sm:$0xff] }
  0xc3   : > { %1800 = vmatprep.mubr.f32.mxu1 %v6191_v47  ;;  %2091 = vmatpush2.msra.mxu1 %v1326_v23  ;;  %v1290_v23 = vld [vmem:[%s7915_s1 + $0x280] sm:$0xff]  ;;  %v6222_v47 = vld [vmem:[#allocation2 + $0x172] sm:$0xff] }
  0xc4   : > { %1576 = vmatmul.mubr.f32.gmra.mxu0 %v6154_v16  ;;  %2092 = vmatprep.subr.mxu1 %v5866_v31 }
  0xc5   : > { %1580 = vmatprep.mubr.f32.mxu0 %v6199_v59  ;;  %2093 = vmatpush2.msra.mxu1 %v1325_v8  ;;  %v1323_v8 = vld [vmem:[%s7915_s1 + $0x388] sm:$0xff] }
  0xc6   : > { %1801 = vmatmul.mubr.f32.gmra.mxu1 %v6205_v55  ;;  %1873 = vmatprep.subr.mxu0 %v5866_v31  ;;  %v1353_v55 = vld [vmem:[%s7915_s1 + $0x478] sm:$0xff] }
  0xc7   : > { %2094 = vmatprep.subr.mxu1 %v5866_v31  ;;  %1805 = vmatprep.mubr.f32.mxu1 %v6209_v41  ;;  %v1322_v41 = vld [vmem:[%s7915_s1 + $0x380] sm:$0xff] }
  0xc8   : > { %1581 = vmatmul.mubr.f32.gmra.mxu0 %v6173_v3  ;;  %2095 = vmatpush2.msra.mxu1 %v1324_v29  ;;  %v1352_v29 = vld [vmem:[%s7915_s1 + $0x470] sm:$0xff] }
  0xc9   : > { %1874 = vmatpush2.msra.mxu0 %v1290_v23  ;;  %2096 = vmatprep.subr.mxu1 %v5866_v31 }
  0xca   : > { %1806 = vmatmul.mubr.f32.gmra.mxu1 %v6222_v47  ;;  %1875 = vmatprep.mubr.f32.mxu0 %v5691_v42  ;;  %v1350_v42 = vld [vmem:[%s7915_s1 + $0x460] sm:$0xff] }
  0xcb   : > { %2097 = vmatpush2.msra.mxu1 %v1323_v8  ;;  %5010 = vmatprep.subr.mxu0 %v1353_v55  ;;  %v8009_v8 = vld [vmem:[#allocation20_spill] sm:$0xff] }
  0xcc   : > { %1876 = vmatmul.mubr.f32.vlgmr.msra.gmra.mxu0 %v5672_v35  ;;  %2098 = vmatprep.subr.mxu1 %v5866_v31  ;;  %v1351_v35 = vld [vmem:[%s7915_s1 + $0x468] sm:$0xff] }
  0xcd   : > { %2099 = vmatpush2.msra.mxu1 %v1322_v41  ;;  %2100 = vmatprep.mubr.f32.mxu1 %v5703_v46 }
  0xce   : > { %5011 = vmatpush3.msra.mxu0 %v1353_v55  ;;  %2101 = vmatmul.mubr.f32.vlgmr.msra.gmra.mxu1 %v5677_v38  ;;  %v1349_v38 = vld [vmem:[%s7915_s1 + $0x458] sm:$0xff] }
  0xcf   : > { %1880 = vmatprep.mubr.f32.mxu0 %v5711_v49  ;;  %2105 = vmatprep.mubr.f32.mxu1 %v5725_v54  ;;  %v1345_v49 = vld [vmem:[%s7915_s1 + $0x438] sm:$0xff] }
  0xd0   : > { %1881 = vmatmul.mubr.f32.gmra.mxu0 %v5685_v40  ;;  %5012 = vmatprep.subr.mxu0 %v1352_v29  ;;  %v1348_v40 = vld [vmem:[%s7915_s1 + $0x450] sm:$0xff] }
  0xd1   : > { %1885 = vmatprep.mubr.f32.mxu0 %v5734_v57  ;;  %5013 = vmatpush3.msra.mxu0 %v1352_v29  ;;  %v1342_v57 = vld [vmem:[%s7915_s1 + $0x420] sm:$0xff]  ;;  %v3483_v29 = vld [vmem:[%s7917_s3 + $0x68] sm:$0xff] }
  0xd2   : > { %2106 = vmatmul.mubr.f32.gmra.mxu1 %v5695_v44  ;;  %5014 = vmatprep.subr.mxu0 %v1351_v35  ;;  %v1347_v44 = vld [vmem:[%s7915_s1 + $0x448] sm:$0xff] }
  0xd3   : > { %2110 = vmatprep.mubr.f32.mxu1 %v5746_v60  ;;  %5015 = vmatpush3.msra.mxu0 %v1351_v35 }
  0xd4   : > { %1886 = vmatmul.mubr.f32.gmra.mxu0 %v5703_v46  ;;  %5016 = vmatprep.subr.mxu0 %v1350_v42  ;;  %v1346_v46 = vld [vmem:[%s7915_s1 + $0x440] sm:$0xff] }
  0xd5   : > { %1890 = vmatprep.mubr.f32.mxu0 %v5753_v62  ;;  %5017 = vmatpush3.msra.mxu0 %v1350_v42  ;;  %v1339_v62 = vld [vmem:[%s7915_s1 + $0x408] sm:$0xff] }
  0xd6   : > { %2111 = vmatmul.mubr.f32.gmra.mxu1 %v5714_v50  ;;  %5018 = vmatprep.subr.mxu0 %v1349_v38  ;;  %v1344_v50 = vld [vmem:[%s7915_s1 + $0x430] sm:$0xff] }
  0xd7   : > { %2115 = vmatprep.mubr.f32.mxu1 %v5764_v1  ;;  %5019 = vmatpush3.msra.mxu0 %v1349_v38  ;;  %v8010_v38 = vld [vmem:[#allocation15_spill] sm:$0xff] }
  0xd8   : > { %1891 = vmatmul.mubr.f32.gmra.mxu0 %v5725_v54  ;;  %5020 = vmatprep.subr.mxu0 %v1348_v40  ;;  %v1343_v54 = vld [vmem:[%s7915_s1 + $0x428] sm:$0xff] }
  0xd9   : > { %1895 = vmatprep.mubr.f32.mxu0 %v5771_v4  ;;  %5021 = vmatpush3.msra.mxu0 %v1348_v40 }
  0xda   : > { %2116 = vmatmul.mubr.f32.gmra.mxu1 %v5738_v58  ;;  %5022 = vmatprep.subr.mxu0 %v1347_v44  ;;  %v1341_v58 = vld [vmem:[%s7915_s1 + $0x418] sm:$0xff] }
  0xdb   : > { %2120 = vmatprep.mubr.f32.mxu1 %v5782_v7  ;;  %5023 = vmatpush3.msra.mxu0 %v1347_v44  ;;  %v8011_v44 = vld [vmem:[#allocation22_spill] sm:$0xff] }
  0xdc   : > { %1896 = vmatmul.mubr.f32.gmra.mxu0 %v5746_v60  ;;  %5024 = vmatprep.subr.mxu0 %v1346_v46  ;;  %v1340_v60 = vld [vmem:[%s7915_s1 + $0x410] sm:$0xff] }
  0xdd   : > { %1900 = vmatprep.mubr.f32.mxu0 %v5789_v9  ;;  %5025 = vmatpush3.msra.mxu0 %v1346_v46 }
  0xde   : > { %2121 = vmatmul.mubr.f32.gmra.mxu1 %v5756_v63  ;;  %5026 = vmatprep.subr.mxu0 %v1345_v49  ;;  %v1338_v63 = vld [vmem:[%s7915_s1 + $0x400] sm:$0xff] }
  0xdf   : > { %2125 = vmatprep.mubr.f32.mxu1 %v5800_v12  ;;  %5027 = vmatpush3.msra.mxu0 %v1345_v49 }
  0xe0   : > { %1901 = vmatmul.mubr.f32.gmra.mxu0 %v5764_v1  ;;  %5028 = vmatprep.subr.mxu0 %v1344_v50  ;;  %v6352_v1 = vld [vmem:[%s7916_s2] ss:$0 sm:$0xff] }
  0xe1   : > { %1905 = vmatprep.mubr.f32.mxu0 %v5807_v14  ;;  %5029 = vmatpush3.msra.mxu0 %v1344_v50 }
  0xe2   : > { %2126 = vmatmul.mubr.f32.gmra.mxu1 %v5774_v5  ;;  %5030 = vmatprep.subr.mxu0 %v1343_v54 }
  0xe3   : > { %2130 = vmatprep.mubr.f32.mxu1 %v5818_v17  ;;  %5031 = vmatpush3.msra.mxu0 %v1343_v54  ;;  %v8012_v54 = vld [vmem:[#allocation23_spill] sm:$0xff] }
  0xe4   : > { %1906 = vmatmul.mubr.f32.gmra.mxu0 %v5782_v7  ;;  %5032 = vmatprep.subr.mxu0 %v1342_v57  ;;  %v7997_v7 = vld [vmem:[#allocation8_spill] sm:$0xff] }
  0xe5   : > { %1910 = vmatprep.mubr.f32.mxu0 %v5825_v19  ;;  %5033 = vmatpush3.msra.mxu0 %v1342_v57  ;;  %v3482_v57 = vld [vmem:[%s7917_s3 + $0x60] sm:$0xff] }
  0xe6   : > { %2131 = vmatmul.mubr.f32.gmra.mxu1 %v5792_v10  ;;  %5034 = vmatprep.subr.mxu0 %v1341_v58 }
  0xe7   : > { %2135 = vmatprep.mubr.f32.mxu1 %v5836_v22  ;;  %5035 = vmatpush3.msra.mxu0 %v1341_v58 }
  0xe8   : > { %1911 = vmatmul.mubr.f32.gmra.mxu0 %v5800_v12  ;;  %5036 = vmatprep.subr.mxu0 %v1340_v60  ;;  %v7998_v12 = vld [vmem:[#allocation6_spill] sm:$0xff] }
  0xe9   : > { %1915 = vmatprep.mubr.f32.mxu0 %v5843_v24  ;;  %5037 = vmatpush3.msra.mxu0 %v1340_v60 }
  0xea   : > { %2136 = vmatmul.mubr.f32.gmra.mxu1 %v5810_v15  ;;  %5038 = vmatprep.subr.mxu0 %v1339_v62  ;;  %v7999_v15 = vld [vmem:[#allocation10_spill] sm:$0xff] }
  0xeb   : > { %2140 = vmatprep.mubr.f32.mxu1 %v5854_v27  ;;  %5039 = vmatpush3.msra.mxu0 %v1339_v62  ;;  %v8013_v62 = vld [vmem:[#allocation18_spill] sm:$0xff] }
  0xec   : > { %1916 = vmatmul.mubr.f32.gmra.mxu0 %v5818_v17  ;;  %5040 = vmatprep.subr.mxu0 %v1338_v63 }
  0xed   : > { %1920 = vmatprep.mubr.f32.mxu0 %v5858_v28  ;;  %5041 = vmatpush3.msra.mxu0 %v1338_v63 }
  0xee   : > { %2141 = vmatmul.mubr.f32.gmra.mxu1 %v5828_v20  ;;  %3621 = vmatprep.subr.mxu1 %v5866_v31 }
  0xef   : > { %2145 = vmatprep.mubr.f32.mxu1 %v5875_v32  ;;  %3846 = vmatprep.subr.mxu0 %v5866_v31 }
  0xf0   : > { %1921 = vmatmul.mubr.f32.gmra.mxu0 %v5836_v22  ;;  %v8000_v22 = vld [vmem:[#allocation11_spill] sm:$0xff] }
  0xf1   : > { %1925 = vmatprep.mubr.f32.mxu0 %v5881_v34 }
  0xf2   : > { %2146 = vmatmul.mubr.f32.gmra.mxu1 %v5847_v25 }
  0xf3   : > { %2150 = vmatprep.mubr.f32.mxu1 %v5892_v39 }
  0xf4   : > { %1926 = vmatmul.mubr.f32.gmra.mxu0 %v5854_v27  ;;  %v8001_v27 = vld [vmem:[#allocation7_spill] sm:$0xff] }
  0xf5   : > { %1930 = vmatprep.mubr.f32.mxu0 %v5899_v43  ;;  %v3485_v43 = vld [vmem:[%s7917_s3 + $0x78] sm:$0xff] }
  0xf6   : > { %2151 = vmatmul.mubr.f32.gmra.mxu1 %v5864_v30  ;;  %v8002_v30 = vld [vmem:[#allocation13_spill] sm:$0xff] }
  0xf7   : > { %2155 = vmatprep.mubr.f32.mxu1 %v5910_v48  ;;  %3622 = vmatpush1.msra.mxu1 %v3485_v43 }
  0xf8   : > { %1931 = vmatmul.mubr.f32.gmra.mxu0 %v5875_v32  ;;  %3623 = vmatprep.subr.mxu1 %v5866_v31 }
  0xf9   : > { %1935 = vmatprep.mubr.f32.mxu0 %v5914_v51  ;;  %v8004_v51 = vld [vmem:[#allocation9_spill] sm:$0xff] }
  0xfa   : > { %2156 = vmatmul.mubr.f32.gmra.mxu1 %v5884_v36 }
  0xfb   : > { %2160 = vmatprep.mubr.f32.mxu1 %v5929_v56 }
  0xfc   : > { %1936 = vmatmul.mubr.f32.gmra.mxu0 %v5892_v39  ;;  %v8003_v39 = vld [vmem:[#allocation14_spill] sm:$0xff] }
  0xfd   : > { %1940 = vmatprep.mubr.f32.mxu0 %v5935_v61 }
  0xfe   : > { %2161 = vmatmul.mubr.f32.gmra.mxu1 %v5903_v45 }
  0xff   : > { %2165 = vmatprep.mubr.f32.mxu1 %v5946_v6 }
 0x100   : > { %1941 = vmatmul.mubr.f32.gmra.mxu0 %v5910_v48 }
 0x101   : > { %1945 = vmatprep.mubr.f32.mxu0 %v5953_v11  ;;  %v8006_v11 = vld [vmem:[#allocation17_spill] sm:$0xff] }
 0x102   : > { %2166 = vmatmul.mubr.f32.gmra.mxu1 %v5920_v53 }
 0x103   : > { %2170 = vmatprep.mubr.f32.mxu1 %v5964_v18 }
 0x104   : > { %1946 = vmatmul.mubr.f32.gmra.mxu0 %v5929_v56  ;;  %v8005_v56 = vld [vmem:[#allocation16_spill] sm:$0xff] }
 0x105   : > { %1950 = vmatprep.mubr.f32.mxu0 %v5968_v21 }
 0x106   : > { %2171 = vmatmul.mubr.f32.gmra.mxu1 %v5938_v0 }
 0x107   : > { %2175 = vmatprep.mubr.f32.mxu1 %v5983_v2 }
 0x108   : > { %1951 = vmatmul.mubr.f32.gmra.mxu0 %v5946_v6 }
 0x109   : > { %1955 = vmatprep.mubr.f32.mxu0 %v5989_v37 }
 0x10a   : > { %2176 = vmatmul.mubr.f32.gmra.mxu1 %v5957_v13  ;;  %v3484_v13 = vld [vmem:[%s7917_s3 + $0x70] sm:$0xff] }
 0x10b   : > { %2180 = vmatprep.mubr.f32.mxu1 %v6000_v52  ;;  %3624 = vmatpush1.msra.mxu1 %v3484_v13 }
 0x10c   : > { %v1427_v4 = vpop.f32.mrf.mxu0  ;;  %1956 = vmatmul.mubr.f32.gmra.mxu0 %v5964_v18  ;;  %3625 = vmatprep.subr.mxu1 %v5866_v31 }
 0x10d   : > { %v1428_v5 = vadd.f32 %v6352_v1, %v1427_v4  ;;  %1960 = vmatprep.mubr.f32.mxu0 %v7997_v7  ;;  %3626 = vmatpush1.msra.mxu1 %v3483_v29  ;;  %v8014_v4 = vld [vmem:[#allocation25_spill] sm:$0xff] }
 0x10e   : > { %v1429_v9 = vpop.f32.mrf.mxu0  ;;  %v1652_v10 = vpop.f32.mrf.mxu1  ;;  %2181 = vmatmul.mubr.f32.gmra.mxu1 %v7998_v12  ;;  %3627 = vmatprep.subr.mxu1 %v5866_v31  ;;  %v3481_v12 = vld [vmem:[%s7917_s3 + $0x58] sm:$0xff] }
 0x10f   : > { %v6359_v14 = vadd.f32 %v1652_v10, %v1428_v5  ;;  %2185 = vmatprep.mubr.f32.mxu1 %v7999_v15  ;;  %3628 = vmatpush1.msra.mxu1 %v3482_v57  ;;  %v8015_v10 = vld [vmem:[#allocation26_spill] sm:$0xff] }
 0x110   : > { %v1432_v17 = vpop.f32.mrf.mxu0  ;;  %v1654_v19 = vpop.f32.mrf.mxu1  ;;  %1961 = vmatmul.mubr.f32.gmra.mxu0 %v5983_v2  ;;  %v8007_v2 = vld [vmem:[#allocation12_spill] sm:$0xff]  ;;  %3629 = vmatprep.subr.mxu1 %v5866_v31 }
 0x111   : > { %v1433_v20 = vadd.f32 %v6352_v1, %v1432_v17  ;;  %1965 = vmatprep.mubr.f32.mxu0 %v8000_v22  ;;  %v8016_v19 = vld [vmem:[#allocation21_spill] sm:$0xff]  ;;  %v8017_v22 = vld [vmem:[#allocation27_spill] sm:$0xff]  ;;  %3630 = vmatpush1.msra.mxu1 %v3481_v12 }
 0x112   : > { %v1434_v24 = vpop.f32.mrf.mxu0  ;;  %v1657_v25 = vpop.f32.mrf.mxu1  ;;  %2186 = vmatmul.mubr.f32.gmra.mxu1 %v8001_v27  ;;  %3631 = vmatprep.subr.mxu1 %v5866_v31  ;;  %v823_v12 = vld [vmem:[#allocation2 + $0x189] sm:$0xff] }
 0x113   : > { %v6366_v28 = vadd.f32 %v1657_v25, %v1433_v20  ;;  %2190 = vmatprep.mubr.f32.mxu1 %v8002_v30 }
 0x114   : > { %v1437_v32 = vpop.f32.mrf.mxu0  ;;  %v1659_v34 = vpop.f32.mrf.mxu1  ;;  %1966 = vmatmul.mubr.f32.gmra.mxu0 %v6000_v52  ;;  %v8008_v52 = vld [vmem:[#allocation19_spill] sm:$0xff] }
 0x115   : > { %v1438_v36 = vadd.f32 %v6352_v1, %v1437_v32  ;;  %1970 = vmatprep.mubr.f32.mxu0 %v8003_v39  ;;  %v3480_v32 = vld [vmem:[%s7917_s3 + $0x50] sm:$0xff] }
 0x116   : > { %v1439_v45 = vpop.f32.mrf.mxu0  ;;  %v1662_v48 = vpop.f32.mrf.mxu1  ;;  %2191 = vmatmul.mubr.f32.gmra.mxu1 %v8004_v51  ;;  %v8019_v39 = vld [vmem:[#allocation24_spill] sm:$0xff] }
 0x117   : > { %v6376_v53 = vadd.f32 %v1662_v48, %v1438_v36  ;;  %2195 = vmatprep.mubr.f32.mxu1 %v8005_v56  ;;  %v8020_v45 = vld [vmem:[#allocation30_spill] sm:$0xff]  ;;  %3632 = vmatpush1.msra.mxu1 %v3480_v32 }
 0x118   : > { %v1442_v61 = vpop.f32.mrf.mxu0  ;;  %v1664_v0 = vpop.f32.mrf.mxu1  ;;  %1971 = vmatmul.mubr.f32.gmra.mxu0 %v7999_v15  ;;  %3633 = vmatprep.subr.mxu1 %v5866_v31  ;;  %v824_v32 = vld [vmem:[#allocation2 + $0x199] sm:$0xff] }
 0x119   : > { %v1443_v6 = vadd.f32 %v6352_v1, %v1442_v61  ;;  %1975 = vmatprep.mubr.f32.mxu0 %v8006_v11  ;;  %v8021_v61 = vld [vmem:[#allocation31_spill] sm:$0xff] }
 0x11a   : > { %v1444_v18 = vpop.f32.mrf.mxu0  ;;  %v1667_v21 = vpop.f32.mrf.mxu1  ;;  %2196 = vmatmul.mubr.f32.gmra.mxu1 %v8007_v2  ;;  %v3479_v0 = vld [vmem:[%s7917_s3 + $0x48] sm:$0xff] }
 0x11b   : > { %v6387_v37 = vadd.f32 %v1667_v21, %v1443_v6  ;;  %2200 = vmatprep.mubr.f32.mxu1 %v8008_v52  ;;  %v8022_v18 = vld [vmem:[#allocation32_spill] sm:$0xff]  ;;  %3634 = vmatpush1.msra.mxu1 %v3479_v0 }
 0x11c   : > { %v1447_v55 = vpop.f32.mrf.mxu0  ;;  %v1669_v41 = vpop.f32.mrf.mxu1  ;;  %1976 = vmatmul.mubr.f32.gmra.mxu0 %v8002_v30  ;;  %v8018_v30 = vld [vmem:[#allocation28_spill] sm:$0xff]  ;;  %3635 = vmatprep.subr.mxu1 %v5866_v31 }
 0x11d   : > { %v1448_v23 = vadd.f32 %v6352_v1, %v1447_v55  ;;  %1980 = vmatprep.mubr.f32.mxu0 %v8009_v8  ;;  %v8023_v55 = vld [vmem:[#allocation33_spill] sm:$0xff]  ;;  %v3478_v41 = vld [vmem:[%s7917_s3 + $0x40] sm:$0xff] }
 0x11e   : > { %v1449_v35 = vpop.f32.mrf.mxu0  ;;  %v1672_v42 = vpop.f32.mrf.mxu1  ;;  %2201 = vmatmul.mubr.f32.gmra.mxu1 %v8010_v38  ;;  %v8024_v8 = vld [vmem:[#allocation29_spill] sm:$0xff] }
 0x11f   : > { %v6398_v40 = vadd.f32 %v1672_v42, %v1448_v23  ;;  %2205 = vmatprep.mubr.f32.mxu1 %v8011_v44  ;;  %v8025_v35 = vld [vmem:[#allocation34_spill] sm:$0xff]  ;;  %3636 = vmatpush1.msra.mxu1 %v3478_v41 }
 0x120   : > { %v1452_v46 = vpop.f32.mrf.mxu0  ;;  %v1674_v49 = vpop.f32.mrf.mxu1  ;;  %1981 = vmatmul.mubr.f32.gmra.mxu0 %v8005_v56  ;;  %3637 = vmatprep.subr.mxu1 %v5866_v31  ;;  %v822_v31 = vld [vmem:[#allocation2 + $0x181] sm:$0xff] }
 0x121   : > { %v1453_v50 = vadd.f32 %v6352_v1, %v1452_v46  ;;  %1985 = vmatprep.mubr.f32.mxu0 %v8012_v54  ;;  %v3477_v46 = vld [vmem:[%s7917_s3 + $0x38] sm:$0xff] }
 0x122   : > { %v1454_v58 = vpop.f32.mrf.mxu0  ;;  %v1677_v60 = vpop.f32.mrf.mxu1  ;;  %2206 = vmatmul.mubr.f32.gmra.mxu1 %v8013_v62  ;;  %v8026_v62 = vld [vmem:[#allocation36_spill] sm:$0xff] }
 0x123   : > { %v6409_v63 = vadd.f32 %v1677_v60, %v1453_v50  ;;  %2210 = vmatprep.mubr.f32.mxu1 %v8014_v4  ;;  %3638 = vmatpush1.msra.mxu1 %v3477_v46  ;;  %v6468_v60 = vld [vmem:[#allocation2] sm:$0xff] }
 0x124   : > { %v1457_v5 = vpop.f32.mrf.mxu0  ;;  %v1679_v7 = vpop.f32.mrf.mxu1  ;;  %1986 = vmatmul.mubr.f32.gmra.mxu0 %v8008_v52  ;;  %3639 = vmatprep.subr.mxu1 %v6468_v60 }
 0x125   : > { %v1458_v9 = vadd.f32 %v6352_v1, %v1457_v5  ;;  %1990 = vmatprep.mubr.f32.mxu0 %v8015_v10 }
 0x126   : > { %v1459_v15 = vpop.f32.mrf.mxu0  ;;  %v1682_v17 = vpop.f32.mrf.mxu1  ;;  %2211 = vmatmul.mubr.f32.gmra.mxu1 %v8016_v19 }
 0x127   : > { %v6420_v20 = vadd.f32 %v1682_v17, %v1458_v9  ;;  %2215 = vmatprep.mubr.f32.mxu1 %v8017_v22  ;;  %v3475_v17 = vld [vmem:[%s7917_s3 + $0x28] sm:$0xff] }
 0x128   : > { %v1462_v24 = vpop.f32.mrf.mxu0  ;;  %v1684_v25 = vpop.f32.mrf.mxu1  ;;  %1991 = vmatmul.mubr.f32.gmra.mxu0 %v8011_v44 }
 0x129   : > { %v1463_v27 = vadd.f32 %v6352_v1, %v1462_v24  ;;  %1995 = vmatprep.mubr.f32.mxu0 %v8018_v30  ;;  %v6487_v24 = vld [vmem:[#allocation2 + $0x182] sm:$0xff] }
 0x12a   : > { %v1464_v34 = vpop.f32.mrf.mxu0  ;;  %v1687_v36 = vpop.f32.mrf.mxu1  ;;  %2216 = vmatmul.mubr.f32.gmra.mxu1 %v8019_v39 }
 0x12b   : > { %v6431_v43 = vadd.f32 %v1687_v36, %v1463_v27  ;;  %2220 = vmatprep.mubr.f32.mxu1 %v8020_v45  ;;  %v3474_v34 = vld [vmem:[%s7917_s3 + $0x20] sm:$0xff] }
 0x12c   : > { %v1467_v48 = vpop.f32.mrf.mxu0  ;;  %v1689_v51 = vpop.f32.mrf.mxu1  ;;  %1996 = vmatmul.mubr.f32.gmra.mxu0 %v8014_v4 }
 0x12d   : > { %v1468_v56 = vadd.f32 %v6352_v1, %v1467_v48  ;;  %2000 = vmatprep.mubr.f32.mxu0 %v8021_v61  ;;  %v6499_v48 = vld [vmem:[#allocation2 + $0x18a] sm:$0xff]  ;;  %v825_v61 = vld [vmem:[#allocation2 + $0x1a1] sm:$0xff] }
 0x12e   : > { %v1469_v6 = vpop.f32.mrf.mxu0  ;;  %v1692_v11 = vpop.f32.mrf.mxu1  ;;  %2221 = vmatmul.mubr.f32.gmra.mxu1 %v6119_v33 }
 0x12f   : > { %v6442_v13 = vadd.f32 %v1692_v11, %v1468_v56  ;;  %2225 = vmatprep.mubr.f32.mxu1 %v8022_v18  ;;  %v3473_v6 = vld [vmem:[%s7917_s3 + $0x18] sm:$0xff] }
 0x130   : > { %v1472_v21 = vpop.f32.mrf.mxu0  ;;  %v1694_v2 = vpop.f32.mrf.mxu1  ;;  %2001 = vmatmul.mubr.f32.gmra.mxu0 %v8017_v22  ;;  %v8027_v22 = vld [vmem:[#allocation35_spill] sm:$0xff] }
 0x131   : > { %v1473_v52 = vadd.f32 %v6352_v1, %v1472_v21  ;;  %2005 = vmatprep.mubr.f32.mxu0 %v8023_v55  ;;  %v858_v21 = vld [vmem:[#allocation2 + $0x32] sm:$0xff] }
 0x132   : > { %v1474_v33 = vpop.f32.mrf.mxu0  ;;  %v1697_v23 = vpop.f32.mrf.mxu1  ;;  %2226 = vmatmul.mubr.f32.gmra.mxu1 %v8024_v8 }
 0x133   : > { %v6453_v29 = vadd.f32 %v1697_v23, %v1473_v52  ;;  %2230 = vmatprep.mubr.f32.mxu1 %v8025_v35  ;;  %v859_v33 = vld [vmem:[#allocation2 + $0x3a] sm:$0xff]  ;;  %v3472_v23 = vld [vmem:[%s7917_s3 + $0x10] sm:$0xff] }
 0x134   : > { %v1477_v42 = vpop.f32.mrf.mxu0  ;;  %v1699_v38 = vpop.f32.mrf.mxu1  ;;  %2006 = vmatmul.mubr.f32.gmra.mxu0 %v8020_v45  ;;  %v8028_v45 = vld [vmem:[#allocation37_spill] sm:$0xff] }
 0x135   : > { %v1478_v44 = vadd.f32 %v6352_v1, %v1477_v42  ;;  %2010 = vmatprep.mubr.f32.mxu0 %v6184_v26  ;;  %v860_v42 = vld [vmem:[#allocation2 + $0x4a] sm:$0xff] }
 0x136   : > { %v1479_v49 = vpop.f32.mrf.mxu0  ;;  %v1702_v50 = vpop.f32.mrf.mxu1  ;;  %2231 = vmatmul.mubr.f32.gmra.mxu1 %v6154_v16  ;;  %v3476_v16 = vld [vmem:[%s7917_s3 + $0x30] sm:$0xff] }
 0x137   : > { %v6464_v54 = vadd.f32 %v1702_v50, %v1478_v44  ;;  %2235 = vmatprep.mubr.f32.mxu1 %v6199_v59  ;;  %3640 = vmatpush1.msra.mxu1 %v3476_v16  ;;  %v861_v50 = vld [vmem:[#allocation2 + $0x52] sm:$0xff] }
 0x138   : > { %v1482_v57 = vpop.f32.mrf.mxu0  ;;  %v1704_v58 = vpop.f32.mrf.mxu1  ;;  %2011 = vmatmul.mubr.f32.gmra.mxu0 %v8022_v18  ;;  %3641 = vmatprep.subr.mxu1 %v6468_v60 }
 0x139   : > { %v1483_v26 = vadd.f32 %v6352_v1, %v1482_v57  ;;  %2015 = vmatprep.mubr.f32.mxu0 %v8026_v62  ;;  %3642 = vmatpush1.msra.mxu1 %v3475_v17  ;;  %v3471_v57 = vld [vmem:[%s7917_s3 + $0x8] sm:$0xff]  ;;  %v864_v17 = vld [vmem:[#allocation2 + $0x7a] sm:$0xff] }
 0x13a   : > { %v1484_v4 = vpop.f32.mrf.mxu0  ;;  %v1707_v5 = vpop.f32.mrf.mxu1  ;;  %2236 = vmatmul.mubr.f32.gmra.mxu1 %v6173_v3  ;;  %3643 = vmatprep.subr.mxu1 %v6468_v60 }
 0x13b   : > { %v6477_v7 = vadd.f32 %v1707_v5, %v1483_v26  ;;  %2240 = vmatprep.mubr.f32.mxu1 %v822_v31  ;;  %3644 = vmatpush1.msra.mxu1 %v3474_v34  ;;  %v862_v26 = vld [vmem:[#allocation2 + $0x62] sm:$0xff] }
 0x13c   : > { %v1487_v9 = vpop.f32.mrf.mxu0  ;;  %v1709_v10 = vpop.f32.mrf.mxu1  ;;  %2016 = vmatmul.mubr.f32.gmra.mxu0 %v8025_v35  ;;  %3645 = vmatprep.subr.mxu1 %v6468_v60 }
 0x13d   : > { %v1488_v15 = vadd.f32 %v6352_v1, %v1487_v9  ;;  %2020 = vmatprep.mubr.f32.mxu0 %v6222_v47  ;;  %3646 = vmatpush1.msra.mxu1 %v3473_v6  ;;  %v863_v9 = vld [vmem:[#allocation2 + $0x6a] sm:$0xff]  ;;  %v3470_v10 = vld [vmem:[%s7917_s3] sm:$0xff] }
 0x13e   : > { %v1489_v3 = vpop.f32.mrf.mxu0  ;;  %v1712_v19 = vpop.f32.mrf.mxu1  ;;  %2241 = vmatmul.mubr.f32.gmra.mxu1 %v8027_v22  ;;  %3647 = vmatprep.subr.mxu1 %v6468_v60 }
 0x13f   : > { %v6489_v25 = vadd.f32 %v1712_v19, %v1488_v15  ;;  %2245 = vmatprep.mubr.f32.mxu1 %v823_v12  ;;  %3648 = vmatpush1.msra.mxu1 %v3472_v23  ;;  %v869_v23 = vld [vmem:[#allocation2 + $0xb2] sm:$0xff] }
 0x140   : > { %v1492_v27 = vpop.f32.mrf.mxu0  ;;  %v1714_v30 = vpop.f32.mrf.mxu1  ;;  %2021 = vmatmul.mubr.f32.gmra.mxu0 %v6199_v59  ;;  %3649 = vmatprep.subr.mxu1 %v6468_v60 }
 0x141   : > { %v1493_v47 = vadd.f32 %v6352_v1, %v1492_v27  ;;  %2025 = vmatprep.mubr.f32.mxu0 %v6487_v24  ;;  %3650 = vmatpush1.msra.mxu1 %v3471_v57  ;;  %v865_v30 = vld [vmem:[#allocation2 + $0x82] sm:$0xff] }
 0x142   : > { %v1494_v36 = vpop.f32.mrf.mxu0  ;;  %v1717_v39 = vpop.f32.mrf.mxu1  ;;  %2246 = vmatmul.mubr.f32.gmra.mxu1 %v8028_v45  ;;  %3651 = vmatprep.subr.mxu1 %v6468_v60 }
 0x143   : > { %v6501_v51 = vadd.f32 %v1717_v39, %v1493_v47  ;;  %2250 = vmatprep.mubr.f32.mxu1 %v824_v32  ;;  %3652 = vmatpush1.msra.mxu1 %v3470_v10  ;;  %v3501_v32 = vld [vmem:[%s7917_s3 + $0xf8] sm:$0xff]  ;;  %v3514_v10 = vld [vmem:[%s7917_s3 + $0x160] sm:$0xff] }
 0x144   : > { %v1497_v59 = vpop.f32.mrf.mxu0  ;;  %v1719_v56 = vpop.f32.mrf.mxu1  ;;  %2026 = vmatmul.mubr.f32.gmra.mxu0 %v822_v31  ;;  %3653 = vmatprep.subr.mxu1 %v6468_v60  ;;  %v866_v36 = vld [vmem:[#allocation2 + $0x92] sm:$0xff] }
 0x145   : > { %v1498_v0 = vadd.f32 %v6352_v1, %v1497_v59  ;;  %2030 = vmatprep.mubr.f32.mxu0 %v6499_v48  ;;  %3654 = vmatpush2.msra.mxu1 %v3501_v32 }
 0x146   : > { %v1499_v11 = vpop.f32.mrf.mxu0  ;;  %v1722_v18 = vpop.f32.mrf.mxu1  ;;  %2251 = vmatmul.mubr.f32.gmra.mxu1 %v6468_v60  ;;  %3655 = vmatprep.subr.mxu1 %v6468_v60 }
 0x147   : > { %v6510_v2 = vadd.f32 %v1722_v18, %v1498_v0  ;;  %2255 = vmatprep.mubr.f32.mxu1 %v825_v61  ;;  %v867_v61 = vld [vmem:[#allocation2 + $0x9a] sm:$0xff]  ;;  %v3500_v0 = vld [vmem:[%s7917_s3 + $0xf0] sm:$0xff] }
 0x148   : > { %v1502_v52 = vpop.f32.mrf.mxu0  ;;  %v1724_v55 = vpop.f32.mrf.mxu1  ;;  %2031 = vmatmul.mubr.f32.gmra.mxu0 %v823_v12  ;;  %v868_v18 = vld [vmem:[#allocation2 + $0xaa] sm:$0xff]  ;;  %3656 = vmatpush2.msra.mxu1 %v3500_v0 }
 0x149   : > { %v1503_v41 = vadd.f32 %v6352_v1, %v1502_v52  ;;  %5042 = vmatprep.mubr.f32.mxu0 %v858_v21  ;;  %3657 = vmatprep.subr.mxu1 %v6468_v60 }
 0x14a   : > { %v1504_v8 = vpop.f32.mrf.mxu0  ;;  %v1727_v35 = vpop.f32.mrf.mxu1  ;;  %2256 = vmatmul.mubr.f32.gmra.mxu1 %v6468_v60 }
 0x14b   : > { %v6518_v38 = vadd.f32 %v1727_v35, %v1503_v41  ;;  %v3517_v41 = vld [vmem:[%s7917_s3 + $0x178] sm:$0xff]  ;;  %v3499_v8 = vld [vmem:[%s7917_s3 + $0xe8] sm:$0xff] }
 0x14c   : > { %v1507_v44 = vpop.f32.mrf.mxu0  ;;  %v1729_v46 = vpop.f32.mrf.mxu1  ;;  %5043 = vmatmul.mubr.f32.vlgmr.msra.gmra.mxu0 %v859_v33  ;;  %3658 = vmatpush2.msra.mxu1 %v3499_v8 }
 0x14d   : > { %v1508_v49 = vadd.f32 %v6352_v1, %v1507_v44  ;;  %5045 = vmatprep.mubr.f32.mxu0 %v860_v42  ;;  %3847 = vmatpush1.msra.mxu0 %v3517_v41  ;;  %v870_v44 = vld [vmem:[#allocation2 + $0xc2] sm:$0xff]  ;;  %v3516_v46 = vld [vmem:[%s7917_s3 + $0x170] sm:$0xff] }
 0x14e   : > { %v1509_v58 = vpop.f32.mrf.mxu0  ;;  %v1732_v31 = vpop.f32.mrf.mxu1  ;;  %3848 = vmatprep.subr.mxu0 %v6468_v60  ;;  %3659 = vmatprep.subr.mxu1 %v6468_v60  ;;  %v3510_v41 = vld [vmem:[%s7917_s3 + $0x140] sm:$0xff] }
 0x14f   : > { %v6525_v62 = vadd.f32 %v1732_v31, %v1508_v49  ;;  %3849 = vmatpush1.msra.mxu0 %v3516_v46  ;;  %v3515_v58 = vld [vmem:[%s7917_s3 + $0x168] sm:$0xff] }
 0x150   : > { %v1512_v16 = vpop.f32.mrf.mxu0  ;;  %v1734_v4 = vpop.f32.mrf.mxu1  ;;  %5046 = vmatmul.mubr.f32.gmra.mxu0 %v861_v50  ;;  %3850 = vmatprep.subr.mxu0 %v6468_v60  ;;  %v3495_v46 = vld [vmem:[%s7917_s3 + $0xc8] sm:$0xff] }
 0x151   : > { %v1513_v5 = vadd.f32 %v6352_v1, %v1512_v16  ;;  %5048 = vmatprep.mubr.f32.mxu0 %v862_v26  ;;  %v871_v26 = vld [vmem:[#allocation2 + $0xca] sm:$0xff]  ;;  %v3498_v16 = vld [vmem:[%s7917_s3 + $0xe0] sm:$0xff]  ;;  %3851 = vmatpush1.msra.mxu0 %v3515_v58 }
 0x152   : > { %v1514_v12 = vpop.f32.mrf.mxu0  ;;  %v1737_v15 = vpop.f32.mrf.mxu1  ;;  %3660 = vmatpush2.msra.mxu1 %v3498_v16  ;;  %3852 = vmatprep.subr.mxu0 %v6468_v60  ;;  %v878_v58 = vld [vmem:[#allocation2 + $0x122] sm:$0xff] }
 0x153   : > { %v6532_v3 = vadd.f32 %v1737_v15, %v1513_v5  ;;  %3853 = vmatpush1.msra.mxu0 %v3514_v10  ;;  %3661 = vmatprep.subr.mxu1 %v6468_v60  ;;  %v879_v10 = vld [vmem:[#allocation2 + $0x12a] sm:$0xff] }
 0x154   : > { %v1517_v19 = vpop.f32.mrf.mxu0  ;;  %v1739_v22 = vpop.f32.mrf.mxu1  ;;  %5049 = vmatmul.mubr.f32.gmra.mxu0 %v863_v9  ;;  %v872_v9 = vld [vmem:[#allocation2 + $0xda] sm:$0xff]  ;;  %3854 = vmatprep.subr.mxu0 %v6468_v60 }
 0x155   : > { %v1518_v27 = vadd.f32 %v6352_v1, %v1517_v19  ;;  %5051 = vmatprep.mubr.f32.mxu0 %v864_v17  ;;  %v3513_v19 = vld [vmem:[%s7917_s3 + $0x158] sm:$0xff] }
 0x156   : > { %v1519_v47 = vpop.f32.mrf.mxu0  ;;  %v1742_v34 = vpop.f32.mrf.mxu1  ;;  %3855 = vmatpush1.msra.mxu0 %v3513_v19 }
 0x157   : > { %v6539_v39 = vadd.f32 %v1742_v34, %v1518_v27  ;;  %v873_v27 = vld [vmem:[#allocation2 + $0xe2] sm:$0xff]  ;;  %v874_v34 = vld [vmem:[#allocation2 + $0xf2] sm:$0xff]  ;;  %3856 = vmatprep.subr.mxu0 %v6468_v60 }
 0x158   : > { %v1522_v45 = vpop.f32.mrf.mxu0  ;;  %v1744_v59 = vpop.f32.mrf.mxu1  ;;  %5052 = vmatmul.mubr.f32.gmra.mxu0 %v865_v30  ;;  %v3497_v30 = vld [vmem:[%s7917_s3 + $0xd8] sm:$0xff] }
 0x159   : > { %v1523_v56 = vadd.f32 %v6352_v1, %v1522_v45  ;;  %5054 = vmatprep.mubr.f32.mxu0 %v866_v36  ;;  %3662 = vmatpush2.msra.mxu1 %v3497_v30  ;;  %v3512_v36 = vld [vmem:[%s7917_s3 + $0x150] sm:$0xff] }
 0x15a   : > { %v1524_v6 = vpop.f32.mrf.mxu0  ;;  %v1747_v11 = vpop.f32.mrf.mxu1  ;;  %3857 = vmatpush1.msra.mxu0 %v3512_v36  ;;  %3663 = vmatprep.subr.mxu1 %v6468_v60 }
 0x15b   : > { %v6546_v21 = vadd.f32 %v1747_v11, %v1523_v56  ;;  %3858 = vmatprep.subr.mxu0 %v6468_v60  ;;  %v875_v6 = vld [vmem:[#allocation2 + $0xfa] sm:$0xff]  ;;  %v3496_v11 = vld [vmem:[%s7917_s3 + $0xd0] sm:$0xff] }
 0x15c   : > { %v1527_v52 = vpop.f32.mrf.mxu0  ;;  %v1749_v55 = vpop.f32.mrf.mxu1  ;;  %5055 = vmatmul.mubr.f32.gmra.mxu0 %v867_v61  ;;  %v3511_v61 = vld [vmem:[%s7917_s3 + $0x148] sm:$0xff]  ;;  %3664 = vmatpush2.msra.mxu1 %v3496_v11  ;;  %v3504_v11 = vld [vmem:[%s7917_s3 + $0x110] sm:$0xff] }
 0x15d   : > { %v1528_v33 = vadd.f32 %v6352_v1, %v1527_v52  ;;  %5057 = vmatprep.mubr.f32.mxu0 %v868_v18  ;;  %3859 = vmatpush1.msra.mxu0 %v3511_v61  ;;  %v876_v55 = vld [vmem:[#allocation2 + $0x10a] sm:$0xff] }
 0x15e   : > { %v1529_v35 = vpop.f32.mrf.mxu0  ;;  %v1752_v42 = vpop.f32.mrf.mxu1  ;;  %3860 = vmatprep.subr.mxu0 %v6468_v60  ;;  %3665 = vmatprep.subr.mxu1 %v6468_v60 }
 0x15f   : > { %v6560_v49 = vadd.f32 %v1752_v42, %v1528_v33  ;;  %3861 = vmatpush1.msra.mxu0 %v3510_v41  ;;  %v3509_v35 = vld [vmem:[%s7917_s3 + $0x138] sm:$0xff]  ;;  %3666 = vmatpush2.msra.mxu1 %v3495_v46  ;;  %v3503_v41 = vld [vmem:[%s7917_s3 + $0x108] sm:$0xff] }
 0x160   : > { %v1532_v50 = vpop.f32.mrf.mxu0  ;;  %v1754_v57 = vpop.f32.mrf.mxu1  ;;  %5058 = vmatmul.mubr.f32.gmra.mxu0 %v869_v23  ;;  %3862 = vmatprep.subr.mxu0 %v6468_v60  ;;  %v884_v46 = vld [vmem:[#allocation2 + $0x16a] sm:$0xff] }
 0x161   : > { %v1533_v31 = vadd.f32 %v6352_v1, %v1532_v50  ;;  %5060 = vmatprep.mubr.f32.mxu0 %v870_v44  ;;  %v877_v44 = vld [vmem:[#allocation2 + $0x112] sm:$0xff]  ;;  %3863 = vmatpush1.msra.mxu0 %v3509_v35 }
 0x162   : > { %v1534_v4 = vpop.f32.mrf.mxu0  ;;  %v1757_v5 = vpop.f32.mrf.mxu1  ;;  %3864 = vmatprep.subr.mxu0 %v6468_v60  ;;  %3667 = vmatprep.subr.mxu1 %v6468_v60  ;;  %v3492_v35 = vld [vmem:[%s7917_s3 + $0xb0] sm:$0xff] }
 0x163   : > { %v6575_v12 = vadd.f32 %v1757_v5, %v1533_v31  ;;  %v3508_v31 = vld [vmem:[%s7917_s3 + $0x130] sm:$0xff]  ;;  %v3507_v5 = vld [vmem:[%s7917_s3 + $0x128] sm:$0xff] }
 0x164   : > { %v1537_v15 = vpop.f32.mrf.mxu0  ;;  %v1759_v17 = vpop.f32.mrf.mxu1  ;;  %5061 = vmatmul.mubr.f32.gmra.mxu0 %v871_v26 }
 0x165   : > { %v1538_v22 = vadd.f32 %v6352_v1, %v1537_v15  ;;  %5063 = vmatprep.mubr.f32.mxu0 %v872_v9  ;;  %3865 = vmatpush1.msra.mxu0 %v3508_v31  ;;  %v3494_v15 = vld [vmem:[%s7917_s3 + $0xc0] sm:$0xff] }
 0x166   : > { %v1539_v32 = vpop.f32.mrf.mxu0  ;;  %v1762_v47 = vpop.f32.mrf.mxu1  ;;  %3866 = vmatprep.subr.mxu0 %v6468_v60  ;;  %3668 = vmatpush2.msra.mxu1 %v3494_v15 }
 0x167   : > { %v6590_v45 = vadd.f32 %v1762_v47, %v1538_v22  ;;  %3867 = vmatpush1.msra.mxu0 %v3507_v5  ;;  %v880_v22 = vld [vmem:[#allocation2 + $0x13a] sm:$0xff]  ;;  %3669 = vmatprep.subr.mxu1 %v6468_v60  ;;  %v885_v5 = vld [vmem:[#allocation2 + $0x172] sm:$0xff] }
 0x168   : > { %v1542_v59 = vpop.f32.mrf.mxu0  ;;  %v1764_v56 = vpop.f32.mrf.mxu1  ;;  %5064 = vmatmul.mubr.f32.gmra.mxu0 %v873_v27  ;;  %3868 = vmatprep.subr.mxu0 %v6468_v60  ;;  %v3506_v27 = vld [vmem:[%s7917_s3 + $0x120] sm:$0xff] }
 0x169   : > { %v1543_v0 = vadd.f32 %v6352_v1, %v1542_v59  ;;  %5066 = vmatprep.mubr.f32.mxu0 %v874_v34  ;;  %3869 = vmatpush1.msra.mxu0 %v3506_v27  ;;  %v3505_v34 = vld [vmem:[%s7917_s3 + $0x118] sm:$0xff]  ;;  %v881_v59 = vld [vmem:[#allocation2 + $0x142] sm:$0xff] }
 0x16a   : > { %v1544_v18 = vpop.f32.mrf.mxu0  ;;  %v1767_v52 = vpop.f32.mrf.mxu1  ;;  %3870 = vmatprep.subr.mxu0 %v6468_v60  ;;  %v3493_v56 = vld [vmem:[%s7917_s3 + $0xb8] sm:$0xff] }
 0x16b   : > { %v6605_v33 = vadd.f32 %v1767_v52, %v1543_v0  ;;  %3871 = vmatpush1.msra.mxu0 %v3505_v34  ;;  %3670 = vmatpush2.msra.mxu1 %v3493_v56  ;;  %v3490_v34 = vld [vmem:[%s7917_s3 + $0xa0] sm:$0xff] }
 0x16c   : > { %v1547_v23 = vpop.f32.mrf.mxu0  ;;  %v1769_v8 = vpop.f32.mrf.mxu1  ;;  %5067 = vmatmul.mubr.f32.gmra.mxu0 %v875_v6  ;;  %v882_v6 = vld [vmem:[#allocation2 + $0x152] sm:$0xff]  ;;  %3872 = vmatprep.subr.mxu0 %v6468_v60  ;;  %v888_v56 = vld [vmem:[#allocation2 + $0x19a] sm:$0xff] }
 0x16d   : > { %v1548_v42 = vadd.f32 %v6352_v1, %v1547_v23  ;;  %5069 = vmatprep.mubr.f32.mxu0 %v876_v55  ;;  %3873 = vmatpush1.msra.mxu0 %v3504_v11  ;;  %v883_v8 = vld [vmem:[#allocation2 + $0x15a] sm:$0xff] }
 0x16e   : > { %v1549_v50 = vpop.f32.mrf.mxu0  ;;  %v1772_v57 = vpop.f32.mrf.mxu1  ;;  %3671 = vmatprep.subr.mxu1 %v6468_v60  ;;  %3874 = vmatprep.subr.mxu0 %v6468_v60  ;;  %v3529_v11 = vld [vmem:[%s7917_s3 + $0x1d8] sm:$0xff] }
 0x16f   : > { %v6620_v26 = vadd.f32 %v1772_v57, %v1548_v42  ;;  %3875 = vmatpush1.msra.mxu0 %v3503_v41  ;;  %3672 = vmatpush2.msra.mxu1 %v3492_v35  ;;  %v3502_v50 = vld [vmem:[%s7917_s3 + $0x100] sm:$0xff]  ;;  %v3489_v41 = vld [vmem:[%s7917_s3 + $0x98] sm:$0xff] }
 0x170   : > { %v1552_v16 = vpop.f32.mrf.mxu0  ;;  %v1774_v4 = vpop.f32.mrf.mxu1  ;;  %5070 = vmatmul.mubr.f32.gmra.mxu0 %v877_v44  ;;  %3876 = vmatprep.subr.mxu0 %v6468_v60 }
 0x171   : > { %v1553_v9 = vadd.f32 %v6352_v1, %v1552_v16  ;;  %5072 = vmatprep.mubr.f32.mxu0 %v878_v58  ;;  %3877 = vmatpush1.msra.mxu0 %v3502_v50  ;;  %v3533_v16 = vld [vmem:[%s7917_s3 + $0x1f8] sm:$0xff]  ;;  %v3527_v50 = vld [vmem:[%s7917_s3 + $0x1c8] sm:$0xff] }
 0x172   : > { %v1554_v17 = vpop.f32.mrf.mxu0  ;;  %v1777_v19 = vpop.f32.mrf.mxu1  ;;  %3673 = vmatprep.subr.mxu1 %v6468_v60  ;;  %3878 = vmatprep.subr.mxu0 %v6468_v60 }
 0x173   : > { %v6635_v30 = vadd.f32 %v1777_v19, %v1553_v9  ;;  %v3491_v9 = vld [vmem:[%s7917_s3 + $0xa8] sm:$0xff]  ;;  %3879 = vmatpush2.msra.mxu0 %v3533_v16  ;;  %v3532_v17 = vld [vmem:[%s7917_s3 + $0x1f0] sm:$0xff] }
 0x174   : > { %v1557_v32 = vpop.f32.mrf.mxu0  ;;  %v1779_v47 = vpop.f32.mrf.mxu1  ;;  %5073 = vmatmul.mubr.f32.gmra.mxu0 %v879_v10  ;;  %3674 = vmatpush2.msra.mxu1 %v3491_v9 }
 0x175   : > { %v1558_v36 = vadd.f32 %v6352_v1, %v1557_v32  ;;  %5075 = vmatprep.mubr.f32.mxu0 %v880_v22  ;;  %3880 = vmatprep.subr.mxu0 %v6468_v60  ;;  %v3531_v32 = vld [vmem:[%s7917_s3 + $0x1e8] sm:$0xff] }
 0x176   : > { %v1559_v61 = vpop.f32.mrf.mxu0  ;;  %v1782_v0 = vpop.f32.mrf.mxu1  ;;  %3881 = vmatpush2.msra.mxu0 %v3532_v17  ;;  %3675 = vmatprep.subr.mxu1 %v6468_v60  ;;  %v3486_v17 = vld [vmem:[%s7917_s3 + $0x80] sm:$0xff] }
 0x177   : > { %v6650_v18 = vadd.f32 %v1782_v0, %v1558_v36  ;;  %3882 = vmatprep.subr.mxu0 %v6468_v60  ;;  %3676 = vmatpush2.msra.mxu1 %v3490_v34  ;;  %v3530_v61 = vld [vmem:[%s7917_s3 + $0x1e0] sm:$0xff]  ;;  %v3524_v34 = vld [vmem:[%s7917_s3 + $0x1b0] sm:$0xff] }
 0x178   : > { %v1562_v52 = vpop.f32.mrf.mxu0  ;;  %v1784_v55 = vpop.f32.mrf.mxu1  ;;  %5076 = vmatmul.mubr.f32.gmra.mxu0 %v881_v59  ;;  %3677 = vmatprep.subr.mxu1 %v6468_v60 }
 0x179   : > { %v1563_v23 = vadd.f32 %v6352_v1, %v1562_v52  ;;  %5078 = vmatprep.mubr.f32.mxu0 %v882_v6  ;;  %3883 = vmatpush2.msra.mxu0 %v3531_v32  ;;  %v889_v55 = vld [vmem:[#allocation2 + $0x1a2] sm:$0xff] }
 0x17a   : > { %v1564_v42 = vpop.f32.mrf.mxu0  ;;  %v1787_v44 = vpop.f32.mrf.mxu1  ;;  %3884 = vmatprep.subr.mxu0 %v6468_v60  ;;  %3678 = vmatpush2.msra.mxu1 %v3489_v41 }
 0x17b   : > { %v6665_v57 = vadd.f32 %v1787_v44, %v1563_v23  ;;  %3885 = vmatpush2.msra.mxu0 %v3530_v61  ;;  %3679 = vmatprep.subr.mxu1 %v6468_v60  ;;  %v2670_v61 = vld [vmem:[#allocation4 + $0x9] sm:$0xff] }
 0x17c   : > { %v1567_v58 = vpop.f32.mrf.mxu0  ;;  %v1789_v31 = vpop.f32.mrf.mxu1  ;;  %5079 = vmatmul.mubr.f32.gmra.mxu0 %v883_v8  ;;  %3886 = vmatprep.subr.mxu0 %v6468_v60 }
 0x17d   : > { %v1568_v4 = vadd.f32 %v6352_v1, %v1567_v58  ;;  %5081 = vmatprep.mubr.f32.mxu0 %v884_v46  ;;  %3887 = vmatpush2.msra.mxu0 %v3529_v11  ;;  %v3488_v46 = vld [vmem:[%s7917_s3 + $0x90] sm:$0xff] }
 0x17e   : > { %v1569_v10 = vpop.f32.mrf.mxu0  ;;  %v1792_v15 = vpop.f32.mrf.mxu1  ;;  %3888 = vmatprep.subr.mxu0 %v6468_v60  ;;  %3680 = vmatpush2.msra.mxu1 %v3488_v46 }
 0x17f   : > { %v6680_v19 = vadd.f32 %v1792_v15, %v1568_v4  ;;  %v3526_v4 = vld [vmem:[%s7917_s3 + $0x1c0] sm:$0xff]  ;;  %3681 = vmatprep.subr.mxu1 %v6468_v60  ;;  %v3525_v15 = vld [vmem:[%s7917_s3 + $0x1b8] sm:$0xff] }
 0x180   : > { %v1572_v22 = vpop.f32.mrf.mxu0  ;;  %v1794_v27 = vpop.f32.mrf.mxu1  ;;  %5082 = vmatmul.mubr.f32.gmra.mxu0 %v885_v5  ;;  %v3487_v5 = vld [vmem:[%s7917_s3 + $0x88] sm:$0xff] }
 0x181   : > { %v1573_v47 = vadd.f32 %v6352_v1, %v1572_v22  ;;  %5084 = vmatprep.mubr.f32.mxu0 %v6487_v24  ;;  %3682 = vmatpush2.msra.mxu1 %v3487_v5  ;;  %v2669_v22 = vld [vmem:[#allocation4 + $0x1] sm:$0xff] }
 0x182   : > { %v1574_v36 = vpop.f32.mrf.mxu0  ;;  %v1797_v59 = vpop.f32.mrf.mxu1  ;;  %3683 = vmatprep.subr.mxu1 %v6468_v60  ;;  %3685 = vmatprep.mubr.f32.mxu1 %v2669_v22  ;;  %v3548_v22 = vld [vmem:[%s7917_s3 + $0x270] sm:$0xff] }
 0x183   : > { %v6696_v0 = vadd.f32 %v1797_v59, %v1573_v47  ;;  %3684 = vmatpush2.msra.mxu1 %v3486_v17 }
 0x184   : > { %v1577_v24 = vpop.f32.mrf.mxu0  ;;  %v1799_v6 = vpop.f32.mrf.mxu1  ;;  %5085 = vmatmul.mubr.f32.gmra.mxu0 %v6499_v48  ;;  %v3528_v48 = vld [vmem:[%s7917_s3 + $0x1d0] sm:$0xff]  ;;  %3686 = vmatmul.mubr.f32.vlgmr.msra.gmra.mxu1 %v6468_v60 }
 0x185   : > { %v1578_v52 = vadd.f32 %v6352_v1, %v1577_v24  ;;  %5087 = vmatprep.mubr.f32.mxu0 %v888_v56  ;;  %3889 = vmatpush2.msra.mxu0 %v3528_v48 }
 0x186   : > { %v1579_v23 = vpop.f32.mrf.mxu0  ;;  %v1802_v8 = vpop.f32.mrf.mxu1  ;;  %3890 = vmatprep.subr.mxu0 %v6468_v60  ;;  %4071 = vmatprep.subr.mxu1 %v6468_v60 }
 0x187   : > { %v6712_v35 = vadd.f32 %v1802_v8, %v1578_v52  ;;  %3891 = vmatpush2.msra.mxu0 %v3527_v50  ;;  %3690 = vmatprep.mubr.f32.mxu1 %v2670_v61  ;;  %v3522_v52 = vld [vmem:[%s7917_s3 + $0x1a0] sm:$0xff] }
 0x188   : > { %v1582_v42 = vpop.f32.mrf.mxu0  ;;  %v1804_v44 = vpop.f32.mrf.mxu1  ;;  %5088 = vmatmul.mubr.f32.gmra.mxu0 %v889_v55  ;;  %3892 = vmatprep.subr.mxu0 %v6468_v60 }
 0x189   : > { %v1583_v58 = vadd.f32 %v6352_v1, %v1582_v42  ;;  %3893 = vmatpush2.msra.mxu0 %v3526_v4  ;;  %3691 = vmatmul.mubr.f32.gmra.mxu1 %v6468_v60  ;;  %v3520_v44 = vld [vmem:[%s7917_s3 + $0x190] sm:$0xff] }
 0x18a   : > { %v1584_v31 = vpop.f32.mrf.mxu0  ;;  %v1807_v16 = vpop.f32.mrf.mxu1  ;;  %3894 = vmatprep.subr.mxu0 %v6468_v60 }
 0x18b   : > { %v6731_v9 = vadd.f32 %v1807_v16, %v1583_v58  ;;  %3895 = vmatpush2.msra.mxu0 %v3525_v15  ;;  %v3549_v16 = vld [vmem:[%s7917_s3 + $0x278] sm:$0xff] }
 0x18c   : > { %v1809_v1 = vpop.f32.mrf.mxu1  ;;  %v1877_v10 = vpop.f32.mrf.mxu0  ;;  %3896 = vmatprep.subr.mxu0 %v6468_v60  ;;  %4072 = vmatpush1.msra.mxu1 %v3549_v16 }
 0x18d   : > { %v1878_v27 = vadd.f32 %v1877_v10, %v6359_v14  ;;  %3897 = vmatpush2.msra.mxu0 %v3524_v34  ;;  %v3523_v14 = vld [vmem:[%s7917_s3 + $0x1a8] sm:$0xff]  ;;  %v3518_v1 = vld [vmem:[%s7917_s3 + $0x180] sm:$0xff]  ;;  %4073 = vmatprep.subr.mxu1 %v6468_v60 }
 0x18e   : > { %v1879_v32 = vpop.f32.mrf.mxu0  ;;  %v2102_v47 = vpop.f32.mrf.mxu1  ;;  %3898 = vmatprep.subr.mxu0 %v6468_v60  ;;  %4074 = vmatpush1.msra.mxu1 %v3548_v22  ;;  %v3543_v22 = vld [vmem:[%s7917_s3 + $0x248] sm:$0xff] }
 0x18f   : > { %v6746_v36 = vadd.f32 %v2102_v47, %v1878_v27  ;;  %3899 = vmatpush2.msra.mxu0 %v3523_v14  ;;  %4075 = vmatprep.subr.mxu1 %v6468_v60  ;;  %v3547_v14 = vld [vmem:[%s7917_s3 + $0x268] sm:$0xff] }
 0x190   : > { %v1882_v59 = vpop.f32.mrf.mxu0  ;;  %v2104_v56 = vpop.f32.mrf.mxu1  ;;  %3900 = vmatprep.subr.mxu0 %v6468_v60  ;;  %4076 = vmatpush1.msra.mxu1 %v3547_v14  ;;  %v3542_v14 = vld [vmem:[%s7917_s3 + $0x240] sm:$0xff] }
 0x191   : > { %v1883_v24 = vadd.f32 %v1882_v59, %v6366_v28  ;;  %3901 = vmatpush2.msra.mxu0 %v3522_v52  ;;  %v3521_v28 = vld [vmem:[%s7917_s3 + $0x198] sm:$0xff]  ;;  %4077 = vmatprep.subr.mxu1 %v6468_v60 }
 0x192   : > { %v1884_v6 = vpop.f32.mrf.mxu0  ;;  %v2107_v11 = vpop.f32.mrf.mxu1  ;;  %3902 = vmatprep.subr.mxu0 %v6468_v60 }
 0x193   : > { %v6759_v55 = vadd.f32 %v2107_v11, %v1883_v24  ;;  %3903 = vmatpush2.msra.mxu0 %v3521_v28 }
 0x194   : > { %v1887_v41 = vpop.f32.mrf.mxu0  ;;  %v2109_v23 = vpop.f32.mrf.mxu1  ;;  %3904 = vmatprep.subr.mxu0 %v6468_v60 }
 0x195   : > { %v1888_v8 = vadd.f32 %v1887_v41, %v6376_v53  ;;  %3905 = vmatpush2.msra.mxu0 %v3520_v44  ;;  %v3519_v53 = vld [vmem:[%s7917_s3 + $0x188] sm:$0xff]  ;;  %v3546_v41 = vld [vmem:[%s7917_s3 + $0x260] sm:$0xff]  ;;  %v3545_v44 = vld [vmem:[%s7917_s3 + $0x258] sm:$0xff] }
 0x196   : > { %v1889_v48 = vpop.f32.mrf.mxu0  ;;  %v2112_v42 = vpop.f32.mrf.mxu1  ;;  %3906 = vmatprep.subr.mxu0 %v6468_v60  ;;  %4078 = vmatpush1.msra.mxu1 %v3546_v41  ;;  %v3541_v41 = vld [vmem:[%s7917_s3 + $0x238] sm:$0xff] }
 0x197   : > { %v6771_v46 = vadd.f32 %v2112_v42, %v1888_v8  ;;  %3907 = vmatpush2.msra.mxu0 %v3519_v53  ;;  %4079 = vmatprep.subr.mxu1 %v6468_v60 }
 0x198   : > { %v1892_v50 = vpop.f32.mrf.mxu0  ;;  %v2114_v58 = vpop.f32.mrf.mxu1  ;;  %3908 = vmatprep.subr.mxu0 %v6468_v60  ;;  %4080 = vmatpush1.msra.mxu1 %v3545_v44  ;;  %v3540_v44 = vld [vmem:[%s7917_s3 + $0x230] sm:$0xff] }
 0x199   : > { %v1893_v31 = vadd.f32 %v1892_v50, %v6387_v37  ;;  %3909 = vmatpush2.msra.mxu0 %v3518_v1  ;;  %4081 = vmatprep.subr.mxu1 %v6468_v60 }
 0x19a   : > { %v1894_v4 = vpop.f32.mrf.mxu0  ;;  %v2117_v5 = vpop.f32.mrf.mxu1  ;;  %4296 = vmatprep.subr.mxu0 %v6468_v60 }
 0x19b   : > { %v6785_v10 = vadd.f32 %v2117_v5, %v1893_v31  ;;  %v3544_v4 = vld [vmem:[%s7917_s3 + $0x250] sm:$0xff] }
 0x19c   : > { %v1897_v37 = vpop.f32.mrf.mxu0  ;;  %v2119_v15 = vpop.f32.mrf.mxu1  ;;  %4082 = vmatpush1.msra.mxu1 %v3544_v4  ;;  %v3539_v4 = vld [vmem:[%s7917_s3 + $0x228] sm:$0xff] }
 0x19d   : > { %v1898_v17 = vadd.f32 %v1897_v37, %v6398_v40  ;;  %4083 = vmatprep.subr.mxu1 %v6468_v60 }
 0x19e   : > { %v1899_v27 = vpop.f32.mrf.mxu0  ;;  %v2122_v32 = vpop.f32.mrf.mxu1  ;;  %4084 = vmatpush1.msra.mxu1 %v3543_v22  ;;  %v3538_v22 = vld [vmem:[%s7917_s3 + $0x220] sm:$0xff] }
 0x19f   : > { %v6793_v47 = vadd.f32 %v2122_v32, %v1898_v17  ;;  %4085 = vmatprep.subr.mxu1 %v6468_v60 }
 0x1a0   : > { %v1902_v34 = vpop.f32.mrf.mxu0  ;;  %v2124_v59 = vpop.f32.mrf.mxu1  ;;  %4086 = vmatpush1.msra.mxu1 %v3542_v14  ;;  %v3537_v14 = vld [vmem:[%s7917_s3 + $0x218] sm:$0xff] }
 0x1a1   : > { %v1903_v56 = vadd.f32 %v1902_v34, %v6409_v63  ;;  %4087 = vmatprep.subr.mxu1 %v6468_v60 }
 0x1a2   : > { %v1904_v40 = vpop.f32.mrf.mxu0  ;;  %v2127_v61 = vpop.f32.mrf.mxu1  ;;  %4088 = vmatpush1.msra.mxu1 %v3541_v41 }
 0x1a3   : > { %v6800_v24 = vadd.f32 %v2127_v61, %v1903_v56  ;;  %4089 = vmatprep.subr.mxu1 %v6468_v60 }
 0x1a4   : > { %v1907_v6 = vpop.f32.mrf.mxu0  ;;  %v2129_v11 = vpop.f32.mrf.mxu1  ;;  %4090 = vmatpush1.msra.mxu1 %v3540_v44  ;;  %v3534_v44 = vld [vmem:[%s7917_s3 + $0x200] sm:$0xff] }
 0x1a5   : > { %v1908_v52 = vadd.f32 %v1907_v6, %v6420_v20  ;;  %4091 = vmatprep.subr.mxu1 %v6468_v60 }
 0x1a6   : > { %v1909_v63 = vpop.f32.mrf.mxu0  ;;  %v2132_v23 = vpop.f32.mrf.mxu1  ;;  %4092 = vmatpush1.msra.mxu1 %v3539_v4 }
 0x1a7   : > { %v6807_v28 = vadd.f32 %v2132_v23, %v1908_v52  ;;  %4093 = vmatprep.subr.mxu1 %v6468_v60 }
 0x1a8   : > { %v1912_v8 = vpop.f32.mrf.mxu0  ;;  %v2134_v48 = vpop.f32.mrf.mxu1  ;;  %4094 = vmatpush1.msra.mxu1 %v3538_v22 }
 0x1a9   : > { %v1913_v42 = vadd.f32 %v1912_v8, %v6431_v43  ;;  %4095 = vmatprep.subr.mxu1 %v6468_v60 }
 0x1aa   : > { %v1914_v20 = vpop.f32.mrf.mxu0  ;;  %v2137_v50 = vpop.f32.mrf.mxu1  ;;  %4096 = vmatpush1.msra.mxu1 %v3537_v14 }
 0x1ab   : > { %v6814_v58 = vadd.f32 %v2137_v50, %v1913_v42 }
 0x1ac   : > { %v1917_v53 = vpop.f32.mrf.mxu0  ;;  %v2139_v31 = vpop.f32.mrf.mxu1 }
 0x1ad   : > { %v1918_v16 = vadd.f32 %v1917_v53, %v6442_v13 }
 0x1ae   : > { %v1919_v43 = vpop.f32.mrf.mxu0  ;;  %v2142_v5 = vpop.f32.mrf.mxu1 }
 0x1af   : > { %v6821_v1 = vadd.f32 %v2142_v5, %v1918_v16 }
 0x1b0   : > { %v1922_v37 = vpop.f32.mrf.mxu0  ;;  %v2144_v15 = vpop.f32.mrf.mxu1 }
 0x1b1   : > { %v1923_v17 = vadd.f32 %v1922_v37, %v6453_v29 }
 0x1b2   : > { %v1924_v13 = vpop.f32.mrf.mxu0  ;;  %v2147_v27 = vpop.f32.mrf.mxu1 }
 0x1b3   : > { %v6828_v32 = vadd.f32 %v2147_v27, %v1923_v17 }
 0x1b4   : > { %v1927_v34 = vpop.f32.mrf.mxu0  ;;  %v2149_v59 = vpop.f32.mrf.mxu1 }
 0x1b5   : > { %v1928_v56 = vadd.f32 %v1927_v34, %v6464_v54 }
 0x1b6   : > { %v1929_v29 = vpop.f32.mrf.mxu0  ;;  %v2152_v40 = vpop.f32.mrf.mxu1 }
 0x1b7   : > { %v6835_v61 = vadd.f32 %v2152_v40, %v1928_v56 }
 0x1b8   : > { %v1932_v6 = vpop.f32.mrf.mxu0  ;;  %v2154_v11 = vpop.f32.mrf.mxu1 }
 0x1b9   : > { %v1933_v52 = vadd.f32 %v1932_v6, %v6477_v7  ;;  %v6872_v6 = vld [vmem:[#allocation2] sm:$0xff] }
 0x1ba   : > { %v1934_v54 = vpop.f32.mrf.mxu0  ;;  %v2157_v63 = vpop.f32.mrf.mxu1  ;;  %4097 = vmatprep.subr.mxu1 %v6872_v6 }
 0x1bb   : > { %v6842_v23 = vadd.f32 %v2157_v63, %v1933_v52 }
 0x1bc   : > { %v1937_v8 = vpop.f32.mrf.mxu0  ;;  %v2159_v48 = vpop.f32.mrf.mxu1 }
 0x1bd   : > { %v1938_v42 = vadd.f32 %v1937_v8, %v6489_v25  ;;  %v3535_v8 = vld [vmem:[%s7917_s3 + $0x208] sm:$0xff] }
 0x1be   : > { %v1939_v7 = vpop.f32.mrf.mxu0  ;;  %v2162_v20 = vpop.f32.mrf.mxu1 }
 0x1bf   : > { %v6849_v50 = vadd.f32 %v2162_v20, %v1938_v42 }
 0x1c0   : > { %v1942_v53 = vpop.f32.mrf.mxu0  ;;  %v2164_v31 = vpop.f32.mrf.mxu1 }
 0x1c1   : > { %v1943_v16 = vadd.f32 %v1942_v53, %v6501_v51 }
 0x1c2   : > { %v1944_v25 = vpop.f32.mrf.mxu0  ;;  %v2167_v43 = vpop.f32.mrf.mxu1 }
 0x1c3   : > { %v6856_v5 = vadd.f32 %v2167_v43, %v1943_v16 }
 0x1c4   : > { %v1947_v37 = vpop.f32.mrf.mxu0  ;;  %v2169_v15 = vpop.f32.mrf.mxu1 }
 0x1c5   : > { %v1948_v17 = vadd.f32 %v1947_v37, %v6510_v2 }
 0x1c6   : > { %v1949_v51 = vpop.f32.mrf.mxu0  ;;  %v2172_v13 = vpop.f32.mrf.mxu1 }
 0x1c7   : > { %v6863_v27 = vadd.f32 %v2172_v13, %v1948_v17  ;;  %v3564_v51 = vld [vmem:[%s7917_s3 + $0x2f0] sm:$0xff] }
 0x1c8   : > { %v1952_v34 = vpop.f32.mrf.mxu0  ;;  %v2174_v59 = vpop.f32.mrf.mxu1 }
 0x1c9   : > { %v1953_v56 = vadd.f32 %v1952_v34, %v6518_v38  ;;  %v3536_v38 = vld [vmem:[%s7917_s3 + $0x210] sm:$0xff] }
 0x1ca   : > { %v1954_v2 = vpop.f32.mrf.mxu0  ;;  %v2177_v29 = vpop.f32.mrf.mxu1  ;;  %4098 = vmatpush1.msra.mxu1 %v3536_v38 }
 0x1cb   : > { %v6870_v40 = vadd.f32 %v2177_v29, %v1953_v56  ;;  %4099 = vmatprep.subr.mxu1 %v6872_v6  ;;  %v3563_v2 = vld [vmem:[%s7917_s3 + $0x2e8] sm:$0xff] }
 0x1cc   : > { %v1957_v11 = vpop.f32.mrf.mxu0  ;;  %v2179_v52 = vpop.f32.mrf.mxu1  ;;  %4100 = vmatpush1.msra.mxu1 %v3535_v8 }
 0x1cd   : > { %v1958_v60 = vadd.f32 %v1957_v11, %v6525_v62  ;;  %4101 = vmatprep.subr.mxu1 %v6872_v6 }
 0x1ce   : > { %v1959_v41 = vpop.f32.mrf.mxu0  ;;  %v2182_v54 = vpop.f32.mrf.mxu1  ;;  %4102 = vmatpush1.msra.mxu1 %v3534_v44  ;;  %v3561_v44 = vld [vmem:[%s7917_s3 + $0x2d8] sm:$0xff] }
 0x1cf   : > { %v6879_v63 = vadd.f32 %v2182_v54, %v1958_v60  ;;  %4103 = vmatprep.subr.mxu1 %v6872_v6  ;;  %v3562_v41 = vld [vmem:[%s7917_s3 + $0x2e0] sm:$0xff] }
 0x1d0   : > { %v1962_v48 = vpop.f32.mrf.mxu0  ;;  %v2184_v42 = vpop.f32.mrf.mxu1 }
 0x1d1   : > { %v1963_v62 = vadd.f32 %v1962_v48, %v6532_v3  ;;  %v3565_v3 = vld [vmem:[%s7917_s3 + $0x2f8] sm:$0xff] }
 0x1d2   : > { %v1964_v7 = vpop.f32.mrf.mxu0  ;;  %v2187_v20 = vpop.f32.mrf.mxu1  ;;  %4104 = vmatpush2.msra.mxu1 %v3565_v3  ;;  %v3560_v3 = vld [vmem:[%s7917_s3 + $0x2d0] sm:$0xff] }
 0x1d3   : > { %v6890_v53 = vadd.f32 %v2187_v20, %v1963_v62  ;;  %4105 = vmatprep.subr.mxu1 %v6872_v6 }
 0x1d4   : > { %v1967_v31 = vpop.f32.mrf.mxu0  ;;  %v2189_v16 = vpop.f32.mrf.mxu1  ;;  %4106 = vmatpush2.msra.mxu1 %v3564_v51  ;;  %v3559_v51 = vld [vmem:[%s7917_s3 + $0x2c8] sm:$0xff] }
 0x1d5   : > { %v1968_v4 = vadd.f32 %v1967_v31, %v6539_v39  ;;  %4107 = vmatprep.subr.mxu1 %v6872_v6 }
 0x1d6   : > { %v1969_v25 = vpop.f32.mrf.mxu0  ;;  %v2192_v43 = vpop.f32.mrf.mxu1  ;;  %4108 = vmatpush2.msra.mxu1 %v3563_v2  ;;  %v3558_v2 = vld [vmem:[%s7917_s3 + $0x2c0] sm:$0xff] }
 0x1d7   : > { %v6897_v37 = vadd.f32 %v2192_v43, %v1968_v4  ;;  %4109 = vmatprep.subr.mxu1 %v6872_v6 }
 0x1d8   : > { %v1972_v15 = vpop.f32.mrf.mxu0  ;;  %v2194_v17 = vpop.f32.mrf.mxu1  ;;  %4110 = vmatpush2.msra.mxu1 %v3562_v41  ;;  %v3557_v41 = vld [vmem:[%s7917_s3 + $0x2b8] sm:$0xff] }
 0x1d9   : > { %v1973_v22 = vadd.f32 %v1972_v15, %v6546_v21  ;;  %4111 = vmatprep.subr.mxu1 %v6872_v6 }
 0x1da   : > { %v1974_v39 = vpop.f32.mrf.mxu0  ;;  %v2197_v13 = vpop.f32.mrf.mxu1  ;;  %4112 = vmatpush2.msra.mxu1 %v3561_v44  ;;  %v3556_v44 = vld [vmem:[%s7917_s3 + $0x2b0] sm:$0xff] }
 0x1db   : > { %v6904_v34 = vadd.f32 %v2197_v13, %v1973_v22  ;;  %4113 = vmatprep.subr.mxu1 %v6872_v6 }
 0x1dc   : > { %v1977_v59 = vpop.f32.mrf.mxu0  ;;  %v2199_v56 = vpop.f32.mrf.mxu1  ;;  %4114 = vmatpush2.msra.mxu1 %v3560_v3  ;;  %v3555_v3 = vld [vmem:[%s7917_s3 + $0x2a8] sm:$0xff] }
 0x1dd   : > { %v1978_v14 = vadd.f32 %v1977_v59, %v6560_v49  ;;  %4115 = vmatprep.subr.mxu1 %v6872_v6 }
 0x1de   : > { %v1979_v21 = vpop.f32.mrf.mxu0  ;;  %v2202_v29 = vpop.f32.mrf.mxu1  ;;  %4116 = vmatpush2.msra.mxu1 %v3559_v51  ;;  %v3554_v51 = vld [vmem:[%s7917_s3 + $0x2a0] sm:$0xff] }
 0x1df   : > { %v6911_v11 = vadd.f32 %v2202_v29, %v1978_v14  ;;  %4117 = vmatprep.subr.mxu1 %v6872_v6 }
 0x1e0   : > { %v1982_v52 = vpop.f32.mrf.mxu0  ;;  %v2204_v60 = vpop.f32.mrf.mxu1  ;;  %4118 = vmatpush2.msra.mxu1 %v3558_v2  ;;  %v3553_v2 = vld [vmem:[%s7917_s3 + $0x298] sm:$0xff] }
 0x1e1   : > { %v1983_v38 = vadd.f32 %v1982_v52, %v6575_v12  ;;  %4119 = vmatprep.subr.mxu1 %v6872_v6 }
 0x1e2   : > { %v1984_v49 = vpop.f32.mrf.mxu0  ;;  %v2207_v54 = vpop.f32.mrf.mxu1  ;;  %4120 = vmatpush2.msra.mxu1 %v3557_v41 }
 0x1e3   : > { %v6918_v8 = vadd.f32 %v2207_v54, %v1983_v38  ;;  %4121 = vmatprep.subr.mxu1 %v6872_v6 }
 0x1e4   : > { %v1987_v48 = vpop.f32.mrf.mxu0  ;;  %v2209_v42 = vpop.f32.mrf.mxu1  ;;  %4122 = vmatpush2.msra.mxu1 %v3556_v44 }
 0x1e5   : > { %v1988_v62 = vadd.f32 %v1987_v48, %v6590_v45  ;;  %4123 = vmatprep.subr.mxu1 %v6872_v6 }
 0x1e6   : > { %v1989_v12 = vpop.f32.mrf.mxu0  ;;  %v2212_v7 = vpop.f32.mrf.mxu1  ;;  %4124 = vmatpush2.msra.mxu1 %v3555_v3 }
 0x1e7   : > { %v6925_v20 = vadd.f32 %v2212_v7, %v1988_v62  ;;  %4125 = vmatprep.subr.mxu1 %v6872_v6 }
 0x1e8   : > { %v1992_v31 = vpop.f32.mrf.mxu0  ;;  %v2214_v16 = vpop.f32.mrf.mxu1  ;;  %4126 = vmatpush2.msra.mxu1 %v3554_v51 }
 0x1e9   : > { %v1993_v4 = vadd.f32 %v1992_v31, %v6605_v33  ;;  %4127 = vmatprep.subr.mxu1 %v6872_v6 }
 0x1ea   : > { %v1994_v45 = vpop.f32.mrf.mxu0  ;;  %v2217_v25 = vpop.f32.mrf.mxu1  ;;  %4128 = vmatpush2.msra.mxu1 %v3553_v2 }
 0x1eb   : > { %v6932_v43 = vadd.f32 %v2217_v25, %v1993_v4  ;;  %4129 = vmatprep.subr.mxu1 %v6872_v6 }
 0x1ec   : > { %v1997_v15 = vpop.f32.mrf.mxu0  ;;  %v2219_v17 = vpop.f32.mrf.mxu1 }
 0x1ed   : > { %v1998_v22 = vadd.f32 %v1997_v15, %v6620_v26 }
 0x1ee   : > { %v1999_v33 = vpop.f32.mrf.mxu0  ;;  %v2222_v39 = vpop.f32.mrf.mxu1 }
 0x1ef   : > { %v6939_v13 = vadd.f32 %v2222_v39, %v1998_v22 }
 0x1f0   : > { %v2002_v59 = vpop.f32.mrf.mxu0  ;;  %v2224_v56 = vpop.f32.mrf.mxu1 }
 0x1f1   : > { %v2003_v14 = vadd.f32 %v2002_v59, %v6635_v30 }
 0x1f2   : > { %v2004_v26 = vpop.f32.mrf.mxu0  ;;  %v2227_v21 = vpop.f32.mrf.mxu1 }
 0x1f3   : > { %v6946_v29 = vadd.f32 %v2227_v21, %v2003_v14 }
 0x1f4   : > { %v2007_v52 = vpop.f32.mrf.mxu0  ;;  %v2229_v60 = vpop.f32.mrf.mxu1 }
 0x1f5   : > { %v2008_v38 = vadd.f32 %v2007_v52, %v6650_v18 }
 0x1f6   : > { %v2009_v30 = vpop.f32.mrf.mxu0  ;;  %v2232_v49 = vpop.f32.mrf.mxu1 }
 0x1f7   : > { %v6953_v54 = vadd.f32 %v2232_v49, %v2008_v38  ;;  %v3552_v38 = vld [vmem:[%s7917_s3 + $0x290] sm:$0xff] }
 0x1f8   : > { %v2012_v48 = vpop.f32.mrf.mxu0  ;;  %v2234_v42 = vpop.f32.mrf.mxu1  ;;  %4130 = vmatpush2.msra.mxu1 %v3552_v38 }
 0x1f9   : > { %v2013_v62 = vadd.f32 %v2012_v48, %v6665_v57  ;;  %4131 = vmatprep.subr.mxu1 %v6872_v6  ;;  %v3551_v42 = vld [vmem:[%s7917_s3 + $0x288] sm:$0xff] }
 0x1fa   : > { %v2014_v18 = vpop.f32.mrf.mxu0  ;;  %v2237_v12 = vpop.f32.mrf.mxu1  ;;  %4132 = vmatpush2.msra.mxu1 %v3551_v42 }
 0x1fb   : > { %v6960_v7 = vadd.f32 %v2237_v12, %v2013_v62  ;;  %4133 = vmatprep.subr.mxu1 %v6872_v6 }
 0x1fc   : > { %v2017_v31 = vpop.f32.mrf.mxu0  ;;  %v2239_v16 = vpop.f32.mrf.mxu1 }
 0x1fd   : > { %v2018_v4 = vadd.f32 %v2017_v31, %v6680_v19 }
 0x1fe   : > { %v2019_v57 = vpop.f32.mrf.mxu0  ;;  %v2242_v45 = vpop.f32.mrf.mxu1 }
 0x1ff   : > { %v6967_v25 = vadd.f32 %v2242_v45, %v2018_v4  ;;  %v7009_v45 = vld [vmem:[%s7917_s3 + $0x478] sm:$0xff] }
 0x200   : > { %v2022_v15 = vpop.f32.mrf.mxu0  ;;  %v2244_v17 = vpop.f32.mrf.mxu1 }
 0x201   : > { %v2023_v22 = vadd.f32 %v2022_v15, %v6696_v0 }
 0x202   : > { %v2024_v19 = vpop.f32.mrf.mxu0  ;;  %v2247_v33 = vpop.f32.mrf.mxu1 }
 0x203   : > { %v6974_v39 = vadd.f32 %v2247_v33, %v2023_v22 }
 0x204   : > { %v2027_v59 = vpop.f32.mrf.mxu0  ;;  %v2249_v56 = vpop.f32.mrf.mxu1 }
 0x205   : > { %v2028_v14 = vadd.f32 %v2027_v59, %v6712_v35 }
 0x206   : > { %v2029_v0 = vpop.f32.mrf.mxu0  ;;  %v2252_v26 = vpop.f32.mrf.mxu1 }
 0x207   : > { %v6981_v21 = vadd.f32 %v2252_v26, %v2028_v14  ;;  %v3581_v14 = vld [vmem:[%s7917_s3 + $0x378] sm:$0xff]  ;;  %v3580_v26 = vld [vmem:[%s7917_s3 + $0x370] sm:$0xff] }
 0x208   : > { %v6984_v52 = vpop.f32.mrf.mxu0  ;;  %v2254_v60 = vpop.f32.mrf.mxu1 }
 0x20a   : > { %v2034_v41 = vpop.f32.mrf.mxu0  ;;  %v6989_v35 = vpop.f32.mrf.mxu1 }
 0x20c   : > { %v5044_v30 = vpop.f32.mrf.mxu0  ;;  %v2259_v49 = vpop.f32.mrf.mxu1 }
 0x20d   : > { %v2333_v48 = vadd.f32 %v5044_v30, %v6759_v55  ;;  %v3550_v55 = vld [vmem:[%s7917_s3 + $0x280] sm:$0xff] }
 0x20e   : > { %v2327_v62 = vpop.f32.mrf.mxu0  ;;  %4134 = vmatpush2.msra.mxu1 %v3550_v55 }
 0x20f   : > { %v2487_v44 = vmax.f32 %v2333_v48, 0.0  ;;  %v2328_v18 = vadd.f32 %v2327_v62, %v6746_v36  ;;  %5090 = vmatprep.subr.mxu1 %v7009_v45 }
 0x210   : > { %v5047_v12 = vpop.f32.mrf.mxu0 }
 0x211   : > { %2574 = vst [vmem:[#allocation4 + $0x21] sm:$0xff] %v2487_v44  ;;  %v2486_v31 = vmax.f32 %v2328_v18, 0.0  ;;  %v6999_v16 = vadd.f32 %v5047_v12, %v6785_v10  ;;  %v3578_v18 = vld [vmem:[%s7917_s3 + $0x360] sm:$0xff] }
 0x212   : > { %v2337_v4 = vpop.f32.mrf.mxu0 }
 0x213   : > { %2573 = vst [vmem:[#allocation4 + $0x19] sm:$0xff] %v2486_v31  ;;  %v2489_v3 = vmax.f32 %v6999_v16, 0.0  ;;  %v2338_v57 = vadd.f32 %v2337_v4, %v6771_v46  ;;  %3695 = vmatprep.mubr.f32.mxu1 %v2486_v31 }
 0x214   : > { %v5050_v36 = vpop.f32.mrf.mxu0 }
 0x215   : > { %2576 = vst [vmem:[#allocation4 + $0x39] sm:$0xff] %v2489_v3  ;;  %v2488_v10 = vmax.f32 %v2338_v57, 0.0  ;;  %v7014_v15 = vadd.f32 %v5050_v36, %v6800_v24  ;;  %v2733_v24 = vld [vmem:[#allocation4 + $0x2] sm:$0xff] }
 0x216   : > { %v2347_v17 = vpop.f32.mrf.mxu0  ;;  %v3577_v57 = vld [vmem:[%s7917_s3 + $0x358] sm:$0xff] }
 0x217   : > { %2575 = vst [vmem:[#allocation4 + $0x31] sm:$0xff] %v2488_v10  ;;  %v2491_v46 = vmax.f32 %v7014_v15, 0.0  ;;  %v7019_v22 = vadd.f32 %v2347_v17, %v6793_v47 }
 0x218   : > { %v5053_v51 = vpop.f32.mrf.mxu0  ;;  %v7097_v17 = vld [vmem:[#allocation4 + $0x22] sm:$0xff] }
 0x219   : > { %2578 = vst [vmem:[#allocation4 + $0x51] sm:$0xff] %v2491_v46  ;;  %v2490_v19 = vmax.f32 %v7019_v22, 0.0  ;;  %v7025_v33 = vadd.f32 %v5053_v51, %v6814_v58  ;;  %v3575_v22 = vld [vmem:[%s7917_s3 + $0x348] sm:$0xff] }
 0x21a   : > { %v2357_v59 = vpop.f32.mrf.mxu0  ;;  %v2797_v56 = vld [vmem:[#allocation4 + $0x18] sm:$0xff]  ;;  %v2798_v58 = vld [vmem:[#allocation4 + $0x20] sm:$0xff] }
 0x21b   : > { %2577 = vst [vmem:[#allocation4 + $0x49] sm:$0xff] %v2490_v19  ;;  %v2493_v47 = vmax.f32 %v7025_v33, 0.0  ;;  %v7034_v2 = vadd.f32 %v2357_v59, %v6807_v28  ;;  %3910 = vmatprep.mubr.f32.mxu0 %v2797_v56  ;;  %3696 = vmatmul.mubr.f32.gmra.mxu1 %v2797_v56  ;;  %v2734_v28 = vld [vmem:[#allocation4 + $0xa] sm:$0xff] }
 0x21c   : > { %v5056_v0 = vpop.f32.mrf.mxu0  ;;  %3911 = vmatmul.mubr.f32.vlgmr.msra.gmra.mxu0 %v2733_v24  ;;  %3700 = vmatprep.mubr.f32.mxu1 %v2487_v44 }
 0x21d   : > { %2580 = vst [vmem:[#allocation4 + $0x69] sm:$0xff] %v2493_v47  ;;  %v2492_v60 = vmax.f32 %v7034_v2, 0.0  ;;  %v7043_v38 = vadd.f32 %v5056_v0, %v6828_v32  ;;  %3915 = vmatprep.mubr.f32.mxu0 %v2798_v58  ;;  %4297 = vmatpush1.msra.mxu0 %v3581_v14  ;;  %v3579_v32 = vld [vmem:[%s7917_s3 + $0x368] sm:$0xff]  ;;  %v3572_v2 = vld [vmem:[%s7917_s3 + $0x330] sm:$0xff] }
 0x21e   : > { %v2367_v41 = vpop.f32.mrf.mxu0  ;;  %4298 = vmatprep.subr.mxu0 %v6872_v6  ;;  %v2799_v42 = vld [vmem:[#allocation4 + $0x30] sm:$0xff]  ;;  %v7077_v4 = vld [vmem:[#allocation4 + $0x38] sm:$0xff] }
 0x21f   : > { %2579 = vst [vmem:[#allocation4 + $0x61] sm:$0xff] %v2492_v60  ;;  %v2495_v30 = vmax.f32 %v7043_v38, 0.0  ;;  %v7050_v49 = vadd.f32 %v2367_v41, %v6821_v1  ;;  %3701 = vmatmul.mubr.f32.gmra.mxu1 %v2798_v58  ;;  %4299 = vmatpush1.msra.mxu0 %v3580_v26  ;;  %v3574_v26 = vld [vmem:[%s7917_s3 + $0x340] sm:$0xff] }
 0x220   : > { %v5059_v48 = vpop.f32.mrf.mxu0  ;;  %3916 = vmatmul.mubr.f32.gmra.mxu0 %v2734_v28  ;;  %3705 = vmatprep.mubr.f32.mxu1 %v2488_v10 }
 0x221   : > { %2582 = vst [vmem:[#allocation4 + $0x81] sm:$0xff] %v2495_v30  ;;  %v2494_v62 = vmax.f32 %v7050_v49, 0.0  ;;  %v7059_v44 = vadd.f32 %v5059_v48, %v6842_v23  ;;  %3920 = vmatprep.mubr.f32.mxu0 %v2799_v42  ;;  %4300 = vmatprep.subr.mxu0 %v6872_v6  ;;  %v7071_v23 = vld [vmem:[#allocation4 + $0x1a] sm:$0xff]  ;;  %v3569_v49 = vld [vmem:[%s7917_s3 + $0x318] sm:$0xff] }
 0x222   : > { %v2377_v1 = vpop.f32.mrf.mxu0  ;;  %4301 = vmatpush1.msra.mxu0 %v3579_v32  ;;  %v7105_v24 = vld [vmem:[#allocation4 + $0x48] sm:$0xff]  ;;  %v7131_v58 = vld [vmem:[#allocation4 + $0x50] sm:$0xff]  ;;  %v7151_v32 = vld [vmem:[#allocation4 + $0x3a] sm:$0xff] }
 0x223   : > { %2581 = vst [vmem:[#allocation4 + $0x79] sm:$0xff] %v2494_v62  ;;  %v2497_v12 = vmax.f32 %v7059_v44, 0.0  ;;  %v7069_v31 = vadd.f32 %v2377_v1, %v6835_v61  ;;  %3706 = vmatmul.mubr.f32.gmra.mxu1 %v2799_v42  ;;  %4302 = vmatprep.subr.mxu0 %v6872_v6 }
 0x224   : > { %v5062_v55 = vpop.f32.mrf.mxu0  ;;  %3921 = vmatmul.mubr.f32.gmra.mxu0 %v7071_v23  ;;  %3710 = vmatprep.mubr.f32.mxu1 %v2489_v3 }
 0x225   : > { %2584 = vst [vmem:[#allocation4 + $0x99] sm:$0xff] %v2497_v12  ;;  %v2496_v61 = vmax.f32 %v7069_v31, 0.0  ;;  %v7086_v36 = vadd.f32 %v5062_v55, %v6856_v5  ;;  %3925 = vmatprep.mubr.f32.mxu0 %v7077_v4  ;;  %4303 = vmatpush1.msra.mxu0 %v3578_v18  ;;  %v3576_v5 = vld [vmem:[%s7917_s3 + $0x350] sm:$0xff]  ;;  %v3566_v31 = vld [vmem:[%s7917_s3 + $0x300] sm:$0xff] }
 0x226   : > { %v2387_v10 = vpop.f32.mrf.mxu0  ;;  %4304 = vmatprep.subr.mxu0 %v6872_v6  ;;  %v7159_v42 = vld [vmem:[#allocation4 + $0x60] sm:$0xff] }
 0x227   : > { %2583 = vst [vmem:[#allocation4 + $0x91] sm:$0xff] %v2496_v61  ;;  %v2499_v16 = vmax.f32 %v7086_v36, 0.0  ;;  %v7094_v3 = vadd.f32 %v2387_v10, %v6849_v50  ;;  %3711 = vmatmul.mubr.f32.gmra.mxu1 %v7077_v4  ;;  %4305 = vmatpush1.msra.mxu0 %v3577_v57  ;;  %v7185_v10 = vld [vmem:[#allocation4 + $0x68] sm:$0xff] }
 0x228   : > { %v5065_v51 = vpop.f32.mrf.mxu0  ;;  %3926 = vmatmul.mubr.f32.gmra.mxu0 %v7097_v17  ;;  %3715 = vmatprep.mubr.f32.mxu1 %v2490_v19  ;;  %v3593_v36 = vld [vmem:[%s7917_s3 + $0x3d8] sm:$0xff] }
 0x229   : > { %2586 = vst [vmem:[#allocation4 + $0xb1] sm:$0xff] %v2499_v16  ;;  %v2498_v50 = vmax.f32 %v7094_v3, 0.0  ;;  %v7111_v59 = vadd.f32 %v5065_v51, %v6870_v40  ;;  %3930 = vmatprep.mubr.f32.mxu0 %v7105_v24  ;;  %4306 = vmatprep.subr.mxu0 %v6872_v6  ;;  %v7125_v40 = vld [vmem:[#allocation4 + $0x32] sm:$0xff] }
 0x22a   : > { %v2397_v56 = vpop.f32.mrf.mxu0  ;;  %4307 = vmatpush1.msra.mxu0 %v3576_v5  ;;  %v3571_v5 = vld [vmem:[%s7917_s3 + $0x328] sm:$0xff] }
 0x22b   : > { %2585 = vst [vmem:[#allocation4 + $0xa9] sm:$0xff] %v2498_v50  ;;  %v2501_v19 = vmax.f32 %v7111_v59, 0.0  ;;  %v7122_v14 = vadd.f32 %v2397_v56, %v6863_v27  ;;  %3716 = vmatmul.mubr.f32.gmra.mxu1 %v7105_v24  ;;  %4308 = vmatprep.subr.mxu0 %v6872_v6  ;;  %v3590_v59 = vld [vmem:[%s7917_s3 + $0x3c0] sm:$0xff] }
 0x22c   : > { %v5068_v0 = vpop.f32.mrf.mxu0  ;;  %3931 = vmatmul.mubr.f32.gmra.mxu0 %v7125_v40  ;;  %3720 = vmatprep.mubr.f32.mxu1 %v2491_v46 }
 0x22d   : > { %2588 = vst [vmem:[#allocation4 + $0xc9] sm:$0xff] %v2501_v19  ;;  %v2500_v27 = vmax.f32 %v7122_v14, 0.0  ;;  %v7140_v28 = vadd.f32 %v5068_v0, %v6890_v53  ;;  %3935 = vmatprep.mubr.f32.mxu0 %v7131_v58  ;;  %4309 = vmatpush1.msra.mxu0 %v3575_v22  ;;  %v3573_v53 = vld [vmem:[%s7917_s3 + $0x338] sm:$0xff]  ;;  %v7205_v22 = vld [vmem:[#allocation4 + $0x52] sm:$0xff] }
 0x22e   : > { %v2407_v41 = vpop.f32.mrf.mxu0  ;;  %4310 = vmatprep.subr.mxu0 %v6872_v6 }
 0x22f   : > { %2587 = vst [vmem:[#allocation4 + $0xc1] sm:$0xff] %v2500_v27  ;;  %v2503_v15 = vmax.f32 %v7140_v28, 0.0  ;;  %v7148_v46 = vadd.f32 %v2407_v41, %v6879_v63  ;;  %3721 = vmatmul.mubr.f32.gmra.mxu1 %v7131_v58  ;;  %4311 = vmatpush1.msra.mxu0 %v3574_v26  ;;  %v7213_v26 = vld [vmem:[#allocation4 + $0x78] sm:$0xff] }
 0x230   : > { %v5071_v48 = vpop.f32.mrf.mxu0  ;;  %3936 = vmatmul.mubr.f32.gmra.mxu0 %v7151_v32  ;;  %3725 = vmatprep.mubr.f32.mxu1 %v2492_v60  ;;  %v3587_v28 = vld [vmem:[%s7917_s3 + $0x3a8] sm:$0xff] }
 0x231   : > { %2590 = vst [vmem:[#allocation4 + $0xe1] sm:$0xff] %v2503_v15  ;;  %v2502_v63 = vmax.f32 %v7148_v46, 0.0  ;;  %v7165_v1 = vadd.f32 %v5071_v48, %v6904_v34  ;;  %3940 = vmatprep.mubr.f32.mxu0 %v7159_v42  ;;  %4312 = vmatprep.subr.mxu0 %v6872_v6  ;;  %v7179_v34 = vld [vmem:[#allocation4 + $0x4a] sm:$0xff] }
 0x232   : > { %v2417_v18 = vpop.f32.mrf.mxu0  ;;  %4313 = vmatpush1.msra.mxu0 %v3573_v53 }
 0x233   : > { %2589 = vst [vmem:[#allocation4 + $0xd9] sm:$0xff] %v2502_v63  ;;  %v2505_v60 = vmax.f32 %v7165_v1, 0.0  ;;  %v7176_v55 = vadd.f32 %v2417_v18, %v6897_v37  ;;  %3726 = vmatmul.mubr.f32.gmra.mxu1 %v7159_v42  ;;  %4314 = vmatprep.subr.mxu0 %v6872_v6  ;;  %v3584_v1 = vld [vmem:[%s7917_s3 + $0x390] sm:$0xff] }
 0x234   : > { %v5074_v57 = vpop.f32.mrf.mxu0  ;;  %3941 = vmatmul.mubr.f32.gmra.mxu0 %v7179_v34  ;;  %3730 = vmatprep.mubr.f32.mxu1 %v2493_v47 }
 0x235   : > { %2592 = vst [vmem:[#allocation4 + $0xf9] sm:$0xff] %v2505_v60  ;;  %v2504_v37 = vmax.f32 %v7176_v55, 0.0  ;;  %v7194_v51 = vadd.f32 %v5074_v57, %v6918_v8  ;;  %3945 = vmatprep.mubr.f32.mxu0 %v7185_v10  ;;  %4315 = vmatpush1.msra.mxu0 %v3572_v2  ;;  %v3570_v8 = vld [vmem:[%s7917_s3 + $0x320] sm:$0xff]  ;;  %v7239_v2 = vld [vmem:[#allocation4 + $0x80] sm:$0xff] }
 0x236   : > { %v2427_v56 = vpop.f32.mrf.mxu0  ;;  %4316 = vmatprep.subr.mxu0 %v6872_v6  ;;  %v3568_v57 = vld [vmem:[%s7917_s3 + $0x310] sm:$0xff] }
 0x237   : > { %2591 = vst [vmem:[#allocation4 + $0xf1] sm:$0xff] %v2504_v37  ;;  %v2507_v33 = vmax.f32 %v7194_v51, 0.0  ;;  %v7202_v47 = vadd.f32 %v2427_v56, %v6911_v11  ;;  %3731 = vmatmul.mubr.f32.gmra.mxu1 %v7185_v10  ;;  %4317 = vmatpush1.msra.mxu0 %v3571_v5 }
 0x238   : > { %v5077_v0 = vpop.f32.mrf.mxu0  ;;  %3946 = vmatmul.mubr.f32.gmra.mxu0 %v7205_v22  ;;  %3735 = vmatprep.mubr.f32.mxu1 %v2494_v62 }
 0x239   : > { %2594 = vst [vmem:[#allocation4 + $0x111] sm:$0xff] %v2507_v33  ;;  %v2506_v11 = vmax.f32 %v7202_v47, 0.0  ;;  %v7219_v41 = vadd.f32 %v5077_v0, %v6932_v43  ;;  %3950 = vmatprep.mubr.f32.mxu0 %v7213_v26  ;;  %4318 = vmatprep.subr.mxu0 %v6872_v6  ;;  %v7233_v43 = vld [vmem:[#allocation4 + $0x62] sm:$0xff] }
 0x23a   : > { %v2437_v53 = vpop.f32.mrf.mxu0  ;;  %4319 = vmatpush1.msra.mxu0 %v3570_v8  ;;  %v7259_v8 = vld [vmem:[#allocation4 + $0x6a] sm:$0xff]  ;;  %v7408_v46 = vld [vmem:[#allocation4 + $0xe0] sm:$0xff] }
 0x23b   : > { %2593 = vst [vmem:[#allocation4 + $0x109] sm:$0xff] %v2506_v11  ;;  %v2509_v62 = vmax.f32 %v7219_v41, 0.0  ;;  %v7230_v48 = vadd.f32 %v2437_v53, %v6925_v20  ;;  %3736 = vmatmul.mubr.f32.gmra.mxu1 %v7213_v26  ;;  %4320 = vmatprep.subr.mxu0 %v6872_v6  ;;  %v7267_v53 = vld [vmem:[#allocation4 + $0x90] sm:$0xff] }
 0x23c   : > { %v5080_v18 = vpop.f32.mrf.mxu0  ;;  %3951 = vmatmul.mubr.f32.gmra.mxu0 %v7233_v43  ;;  %3740 = vmatprep.mubr.f32.mxu1 %v2495_v30 }
 0x23d   : > { %2596 = vst [vmem:[#allocation4 + $0x129] sm:$0xff] %v2509_v62  ;;  %v2508_v20 = vmax.f32 %v7230_v48, 0.0  ;;  %v7248_v5 = vadd.f32 %v5080_v18, %v6946_v29  ;;  %3955 = vmatprep.mubr.f32.mxu0 %v7239_v2  ;;  %4321 = vmatpush1.msra.mxu0 %v3569_v49  ;;  %v3567_v29 = vld [vmem:[%s7917_s3 + $0x308] sm:$0xff] }
 0x23e   : > { %v2447_v56 = vpop.f32.mrf.mxu0  ;;  %4322 = vmatprep.subr.mxu0 %v6872_v6  ;;  %v7438_v55 = vld [vmem:[#allocation4 + $0xf8] sm:$0xff] }
 0x23f   : > { %2595 = vst [vmem:[#allocation4 + $0x121] sm:$0xff] %v2508_v20  ;;  %v2511_v38 = vmax.f32 %v7248_v5, 0.0  ;;  %v7256_v30 = vadd.f32 %v2447_v56, %v6939_v13  ;;  %3741 = vmatmul.mubr.f32.gmra.mxu1 %v7239_v2  ;;  %4323 = vmatpush1.msra.mxu0 %v3568_v57  ;;  %v7289_v56 = vld [vmem:[#allocation4 + $0x7a] sm:$0xff] }
 0x240   : > { %v5083_v0 = vpop.f32.mrf.mxu0  ;;  %3956 = vmatmul.mubr.f32.gmra.mxu0 %v7259_v8  ;;  %3745 = vmatprep.mubr.f32.mxu1 %v2496_v61  ;;  %v2033_v61 = vadd.f32 %v6984_v52, %v6731_v9  ;;  %v7295_v9 = vld [vmem:[#allocation4 + $0x98] sm:$0xff]  ;;  %v3597_v52 = vld [vmem:[%s7917_s3 + $0x3f8] sm:$0xff] }
 0x241   : > { %2598 = vst [vmem:[#allocation4 + $0x141] sm:$0xff] %v2511_v38  ;;  %v2510_v13 = vmax.f32 %v7256_v30, 0.0  ;;  %v7273_v49 = vadd.f32 %v5083_v0, %v6960_v7  ;;  %3960 = vmatprep.mubr.f32.mxu0 %v7267_v53  ;;  %4324 = vmatprep.subr.mxu0 %v6872_v6  ;;  %v7494_v48 = vld [vmem:[#allocation4 + $0x112] sm:$0xff] }
 0x242   : > { %v2457_v18 = vpop.f32.mrf.mxu0  ;;  %4325 = vmatpush1.msra.mxu0 %v3567_v29  ;;  %v2258_v44 = vadd.f32 %v6989_v35, %v2033_v61  ;;  %v7324_v35 = vld [vmem:[#allocation4 + $0xa8] sm:$0xff]  ;;  %v7468_v47 = vld [vmem:[#allocation4 + $0x110] sm:$0xff] }
 0x243   : > { %2597 = vst [vmem:[#allocation4 + $0x139] sm:$0xff] %v2510_v13  ;;  %v7962_v57 = vmax.f32 %v7273_v49, 0.0  ;;  %v7286_v7 = vadd.f32 %v2457_v18, %v6953_v54  ;;  %3746 = vmatmul.mubr.f32.gmra.mxu1 %v7267_v53  ;;  %4326 = vmatprep.subr.mxu0 %v6872_v6 }
 0x244   : > { %v5086_v29 = vpop.f32.mrf.mxu0  ;;  %3961 = vmatmul.mubr.f32.gmra.mxu0 %v7289_v56  ;;  %3750 = vmatprep.mubr.f32.mxu1 %v2497_v12  ;;  %v7512_v30 = vld [vmem:[#allocation4 + $0x12a] sm:$0xff] }
 0x245   : > { %2600 = vst [vmem:[#allocation4 + $0x159] sm:$0xff] %v7962_v57  ;;  %v2512_v54 = vmax.f32 %v7286_v7, 0.0  ;;  %v7304_v0 = vadd.f32 %v5086_v29, %v6974_v39  ;;  %3965 = vmatprep.mubr.f32.mxu0 %v7295_v9  ;;  %4327 = vmatpush1.msra.mxu0 %v3566_v31  ;;  %v7316_v39 = vld [vmem:[#allocation4 + $0x82] sm:$0xff] }
 0x246   : > { %v2467_v18 = vpop.f32.mrf.mxu0  ;;  %4328 = vmatprep.subr.mxu0 %v6872_v6  ;;  %v3596_v31 = vld [vmem:[%s7917_s3 + $0x3f0] sm:$0xff] }
 0x247   : > { %2599 = vst [vmem:[#allocation4 + $0x151] sm:$0xff] %v2512_v54  ;;  %v7963_v12 = vmax.f32 %v7304_v0, 0.0  ;;  %v7313_v57 = vadd.f32 %v2467_v18, %v6967_v25  ;;  %3751 = vmatmul.mubr.f32.gmra.mxu1 %v7295_v9  ;;  %4329 = vmatpush2.msra.mxu0 %v3597_v52  ;;  %v3595_v18 = vld [vmem:[%s7917_s3 + $0x3e8] sm:$0xff]  ;;  %v7481_v51 = vld [vmem:[#allocation4 + $0x120] sm:$0xff] }
 0x248   : > { %v5089_v29 = vpop.f32.mrf.mxu0  ;;  %3966 = vmatmul.mubr.f32.gmra.mxu0 %v7316_v39  ;;  %3755 = vmatprep.mubr.f32.mxu1 %v2498_v50  ;;  %v7503_v41 = vld [vmem:[#allocation4 + $0x122] sm:$0xff] }
 0x249   : > { %2602 = vst [vmem:[#allocation4 + $0x171] sm:$0xff] %v7963_v12  ;;  %v2514_v25 = vmax.f32 %v7313_v57, 0.0  ;;  %v2483_v61 = vadd.f32 %v5089_v29, %v2258_v44  ;;  %3970 = vmatprep.mubr.f32.mxu0 %v7324_v35  ;;  %4330 = vmatprep.subr.mxu0 %v6872_v6  ;;  %v7338_v12 = vld [vmem:[#allocation4 + $0x92] sm:$0xff]  ;;  %v7530_v7 = vld [vmem:[#allocation4 + $0x142] sm:$0xff] }
 0x24a   : > { %v2477_v52 = vpop.f32.mrf.mxu0  ;;  %4331 = vmatpush2.msra.mxu0 %v3596_v31  ;;  %v7344_v44 = vld [vmem:[#allocation4 + $0xb0] sm:$0xff]  ;;  %v7521_v5 = vld [vmem:[#allocation4 + $0x13a] sm:$0xff] }
 0x24b   : > { %2601 = vst [vmem:[#allocation4 + $0x169] sm:$0xff] %v2514_v25  ;;  %v2517_v3 = vmax.f32 %v2483_v61, 0.0  ;;  %v2478_v50 = vadd.f32 %v2477_v52, %v6981_v21  ;;  %3756 = vmatmul.mubr.f32.gmra.mxu1 %v7324_v35  ;;  %4332 = vmatprep.subr.mxu0 %v6872_v6  ;;  %v3594_v31 = vld [vmem:[%s7917_s3 + $0x3e0] sm:$0xff]  ;;  %v7352_v21 = vld [vmem:[#allocation4 + $0x9a] sm:$0xff]  ;;  %v7364_v61 = vpop.f32.mrf.mxu1 }
 0x24c   : > { %3971 = vmatmul.mubr.f32.gmra.mxu0 %v7338_v12  ;;  %3760 = vmatprep.mubr.f32.mxu1 %v2499_v16  ;;  %v7360_v16 = vld [vmem:[#allocation4 + $0xc0] sm:$0xff] }
 0x24d   : > { %2604 = vst [vmem:[#allocation4 + $0x189] sm:$0xff] %v2517_v3  ;;  %v2516_v29 = vmax.f32 %v2478_v50, 0.0  ;;  %3975 = vmatprep.mubr.f32.mxu0 %v7344_v44  ;;  %4333 = vmatpush2.msra.mxu0 %v3595_v18  ;;  %v3592_v52 = vld [vmem:[%s7917_s3 + $0x3d0] sm:$0xff]  ;;  %v7370_v18 = vld [vmem:[#allocation4 + $0xaa] sm:$0xff]  ;;  %v3689_v14 = vpop.f32.mrf.mxu1  ;;  %v3591_v3 = vld [vmem:[%s7917_s3 + $0x3c8] sm:$0xff] }
 0x24e   : > { %4334 = vmatprep.subr.mxu0 %v6872_v6  ;;  %v7416_v14 = vld [vmem:[#allocation4 + $0xca] sm:$0xff]  ;;  %v7548_v57 = vld [vmem:[#allocation4 + $0x15a] sm:$0xff] }
 0x24f   : > { %2603 = vst [vmem:[#allocation4 + $0x181] sm:$0xff] %v2516_v29  ;;  %3761 = vmatmul.mubr.f32.gmra.mxu1 %v7344_v44  ;;  %4335 = vmatpush2.msra.mxu0 %v3594_v31  ;;  %v7382_v50 = vpop.f32.mrf.mxu1  ;;  %v7386_v31 = vld [vmem:[#allocation4 + $0xb2] sm:$0xff] }
 0x250   : > { %3976 = vmatmul.mubr.f32.gmra.mxu0 %v7352_v21  ;;  %3765 = vmatprep.mubr.f32.mxu1 %v2500_v27  ;;  %v7376_v27 = vld [vmem:[#allocation4 + $0xc8] sm:$0xff]  ;;  %v7394_v29 = vld [vmem:[#allocation4 + $0xd8] sm:$0xff] }
 0x251   : > { %3980 = vmatprep.mubr.f32.mxu0 %v7360_v16  ;;  %4336 = vmatprep.subr.mxu0 %v6872_v6 }
 0x252   : > { %4337 = vmatpush2.msra.mxu0 %v3593_v36  ;;  %v3589_v36 = vld [vmem:[%s7917_s3 + $0x3b8] sm:$0xff] }
 0x253   : > { %3766 = vmatmul.mubr.f32.gmra.mxu1 %v7360_v16  ;;  %4338 = vmatprep.subr.mxu0 %v6872_v6 }
 0x254   : > { %3981 = vmatmul.mubr.f32.gmra.mxu0 %v7370_v18  ;;  %3770 = vmatprep.mubr.f32.mxu1 %v2501_v19  ;;  %v3694_v19 = vpop.f32.mrf.mxu1 }
 0x255   : > { %3985 = vmatprep.mubr.f32.mxu0 %v7376_v27  ;;  %4339 = vmatpush2.msra.mxu0 %v3592_v52  ;;  %v7402_v52 = vld [vmem:[#allocation4 + $0xc2] sm:$0xff] }
 0x256   : > { %4340 = vmatprep.subr.mxu0 %v6872_v6  ;;  %v7446_v19 = vld [vmem:[#allocation4 + $0xe2] sm:$0xff] }
 0x257   : > { %3771 = vmatmul.mubr.f32.gmra.mxu1 %v7376_v27  ;;  %4341 = vmatpush2.msra.mxu0 %v3591_v3  ;;  %v3586_v3 = vld [vmem:[%s7917_s3 + $0x3a0] sm:$0xff] }
 0x258   : > { %3986 = vmatmul.mubr.f32.gmra.mxu0 %v7386_v31  ;;  %3775 = vmatprep.mubr.f32.mxu1 %v2502_v63  ;;  %v3588_v63 = vld [vmem:[%s7917_s3 + $0x3b0] sm:$0xff] }
 0x259   : > { %3990 = vmatprep.mubr.f32.mxu0 %v7394_v29  ;;  %4342 = vmatprep.subr.mxu0 %v6872_v6 }
 0x25a   : > { %4343 = vmatpush2.msra.mxu0 %v3590_v59  ;;  %v7432_v59 = vld [vmem:[#allocation4 + $0xda] sm:$0xff] }
 0x25b   : > { %3776 = vmatmul.mubr.f32.gmra.mxu1 %v7394_v29  ;;  %4344 = vmatprep.subr.mxu0 %v6872_v6 }
 0x25c   : > { %3991 = vmatmul.mubr.f32.gmra.mxu0 %v7402_v52  ;;  %3780 = vmatprep.mubr.f32.mxu1 %v2503_v15  ;;  %v7424_v15 = vld [vmem:[#allocation4 + $0xf0] sm:$0xff] }
 0x25d   : > { %3995 = vmatprep.mubr.f32.mxu0 %v7408_v46  ;;  %4345 = vmatpush2.msra.mxu0 %v3589_v36  ;;  %v3583_v36 = vld [vmem:[%s7917_s3 + $0x388] sm:$0xff] }
 0x25e   : > { %4346 = vmatprep.subr.mxu0 %v6872_v6 }
 0x25f   : > { %3781 = vmatmul.mubr.f32.gmra.mxu1 %v7408_v46  ;;  %4347 = vmatpush2.msra.mxu0 %v3588_v63  ;;  %v7462_v63 = vld [vmem:[#allocation4 + $0xf2] sm:$0xff] }
 0x260   : > { %3996 = vmatmul.mubr.f32.gmra.mxu0 %v7416_v14  ;;  %3785 = vmatprep.mubr.f32.mxu1 %v2504_v37  ;;  %v3585_v37 = vld [vmem:[%s7917_s3 + $0x398] sm:$0xff] }
 0x261   : > { %4000 = vmatprep.mubr.f32.mxu0 %v7424_v15  ;;  %4348 = vmatprep.subr.mxu0 %v6872_v6 }
 0x262   : > { %4349 = vmatpush2.msra.mxu0 %v3587_v28  ;;  %v7476_v28 = vld [vmem:[#allocation4 + $0xfa] sm:$0xff] }
 0x263   : > { %3786 = vmatmul.mubr.f32.gmra.mxu1 %v7424_v15  ;;  %4350 = vmatprep.subr.mxu0 %v6872_v6 }
 0x264   : > { %4001 = vmatmul.mubr.f32.gmra.mxu0 %v7432_v59  ;;  %3790 = vmatprep.mubr.f32.mxu1 %v2505_v60  ;;  %v7454_v60 = vld [vmem:[#allocation4 + $0x108] sm:$0xff] }
 0x265   : > { %4005 = vmatprep.mubr.f32.mxu0 %v7438_v55  ;;  %4351 = vmatpush2.msra.mxu0 %v3586_v3  ;;  %v7526_v3 = vld [vmem:[#allocation4 + $0x158] sm:$0xff] }
 0x266   : > { %4352 = vmatprep.subr.mxu0 %v6872_v6 }
 0x267   : > { %3791 = vmatmul.mubr.f32.gmra.mxu1 %v7438_v55  ;;  %4353 = vmatpush2.msra.mxu0 %v3585_v37  ;;  %v8030_v37 = vmax.f32 %v7304_v0, 0.0  ;;  %v3612_v0 = vld [vmem:[%s7917_s3 + $0x470] sm:$0xff] }
 0x268   : > { %4006 = vmatmul.mubr.f32.gmra.mxu0 %v7446_v19  ;;  %3795 = vmatprep.mubr.f32.mxu1 %v2506_v11  ;;  %v3582_v11 = vld [vmem:[%s7917_s3 + $0x380] sm:$0xff] }
 0x269   : > { %4010 = vmatprep.mubr.f32.mxu0 %v7454_v60  ;;  %4354 = vmatprep.subr.mxu0 %v6872_v6 }
 0x26a   : > { %4355 = vmatpush2.msra.mxu0 %v3584_v1  ;;  %v7544_v1 = vld [vmem:[#allocation4 + $0x170] sm:$0xff] }
 0x26b   : > { %3796 = vmatmul.mubr.f32.gmra.mxu1 %v7454_v60  ;;  %4356 = vmatprep.subr.mxu0 %v6872_v6 }
 0x26c   : > { %4011 = vmatmul.mubr.f32.gmra.mxu0 %v7462_v63  ;;  %3800 = vmatprep.mubr.f32.mxu1 %v2507_v33  ;;  %v7485_v33 = vld [vmem:[#allocation4 + $0x10a] sm:$0xff] }
 0x26d   : > { %4015 = vmatprep.mubr.f32.mxu0 %v7468_v47  ;;  %4357 = vmatpush2.msra.mxu0 %v3583_v36  ;;  %v2861_v36 = vld [vmem:[#allocation4 + $0x19] sm:$0xff] }
 0x26e   : > { %4358 = vmatprep.subr.mxu0 %v6872_v6  ;;  %v7490_v6 = vld [vmem:[#allocation4 + $0x128] sm:$0xff] }
 0x26f   : > { %3801 = vmatmul.mubr.f32.gmra.mxu1 %v7468_v47  ;;  %4359 = vmatpush2.msra.mxu0 %v3582_v11  ;;  %v7555_v11 = vld [vmem:[#allocation4 + $0x16a] sm:$0xff] }
 0x270   : > { %4016 = vmatmul.mubr.f32.gmra.mxu0 %v7476_v28  ;;  %3805 = vmatprep.mubr.f32.mxu1 %v2508_v20  ;;  %v7499_v20 = vld [vmem:[#allocation4 + $0x138] sm:$0xff] }
 0x271   : > { %4020 = vmatprep.mubr.f32.mxu0 %v7481_v51 }
 0x273   : > { %3806 = vmatmul.mubr.f32.gmra.mxu1 %v7481_v51 }
 0x274   : > { %4021 = vmatmul.mubr.f32.gmra.mxu0 %v7485_v33  ;;  %3810 = vmatprep.mubr.f32.mxu1 %v2509_v62  ;;  %v7508_v62 = vld [vmem:[#allocation4 + $0x140] sm:$0xff] }
 0x275   : > { %4025 = vmatprep.mubr.f32.mxu0 %v7490_v6 }
 0x277   : > { %3811 = vmatmul.mubr.f32.gmra.mxu1 %v7490_v6 }
 0x278   : > { %4026 = vmatmul.mubr.f32.gmra.mxu0 %v7494_v48  ;;  %3815 = vmatprep.mubr.f32.mxu1 %v2510_v13  ;;  %v7517_v13 = vld [vmem:[#allocation4 + $0x150] sm:$0xff] }
 0x279   : > { %4030 = vmatprep.mubr.f32.mxu0 %v7499_v20 }
 0x27b   : > { %3816 = vmatmul.mubr.f32.gmra.mxu1 %v7499_v20 }
 0x27c   : > { %4031 = vmatmul.mubr.f32.gmra.mxu0 %v7503_v41  ;;  %3820 = vmatprep.mubr.f32.mxu1 %v2511_v38  ;;  %v8029_v38 = vmax.f32 %v7273_v49, 0.0  ;;  %v7539_v49 = vld [vmem:[#allocation4 + $0x152] sm:$0xff] }
 0x27d   : > { %4035 = vmatprep.mubr.f32.mxu0 %v7508_v62 }
 0x27f   : > { %3821 = vmatmul.mubr.f32.gmra.mxu1 %v7508_v62 }
 0x280   : > { %4036 = vmatmul.mubr.f32.gmra.mxu0 %v7512_v30  ;;  %3825 = vmatprep.mubr.f32.mxu1 %v2512_v54  ;;  %v7535_v54 = vld [vmem:[#allocation4 + $0x168] sm:$0xff] }
 0x281   : > { %4040 = vmatprep.mubr.f32.mxu0 %v7517_v13 }
 0x283   : > { %3826 = vmatmul.mubr.f32.gmra.mxu1 %v7517_v13 }
 0x284   : > { %4041 = vmatmul.mubr.f32.gmra.mxu0 %v7521_v5  ;;  %3830 = vmatprep.mubr.f32.mxu1 %v8029_v38  ;;  %v7561_v38 = vld [vmem:[#allocation4 + $0x188] sm:$0xff] }
 0x285   : > { %4045 = vmatprep.mubr.f32.mxu0 %v7526_v3 }
 0x287   : > { %3831 = vmatmul.mubr.f32.gmra.mxu1 %v7526_v3 }
 0x288   : > { %4046 = vmatmul.mubr.f32.gmra.mxu0 %v7530_v7  ;;  %3835 = vmatprep.mubr.f32.mxu1 %v2514_v25  ;;  %v7551_v25 = vld [vmem:[#allocation4 + $0x180] sm:$0xff] }
 0x289   : > { %4050 = vmatprep.mubr.f32.mxu0 %v7535_v54  ;;  %8031 = vst [vmem:[#allocation8_spill] sm:$0xff] %v7551_v25 }
 0x28b   : > { %3836 = vmatmul.mubr.f32.gmra.mxu1 %v7535_v54 }
 0x28c   : > { %4051 = vmatmul.mubr.f32.gmra.mxu0 %v7539_v49  ;;  %3840 = vmatprep.mubr.f32.mxu1 %v8030_v37  ;;  %v7566_v37 = vld [vmem:[#allocation4 + $0x172] sm:$0xff] }
 0x28d   : > { %4055 = vmatprep.mubr.f32.mxu0 %v7544_v1 }
 0x28f   : > { %3841 = vmatmul.mubr.f32.gmra.mxu1 %v7544_v1 }
 0x290   : > { %4056 = vmatmul.mubr.f32.gmra.mxu0 %v7548_v57  ;;  %4135 = vmatprep.mubr.f32.mxu1 %v7071_v23  ;;  %v2862_v23 = vld [vmem:[#allocation4 + $0x21] sm:$0xff] }
 0x291   : > { %4060 = vmatprep.mubr.f32.mxu0 %v7551_v25  ;;  %v3054_v25 = vld [vmem:[#allocation4 + $0x31] sm:$0xff] }
 0x293   : > { %4136 = vmatmul.mubr.f32.vlgmr.msra.gmra.mxu1 %v2861_v36  ;;  %v3611_v36 = vld [vmem:[%s7917_s3 + $0x468] sm:$0xff] }
 0x294   : > { %4061 = vmatmul.mubr.f32.gmra.mxu0 %v7555_v11  ;;  %4140 = vmatprep.mubr.f32.mxu1 %v7097_v17  ;;  %v2990_v17 = vld [vmem:[#allocation4 + $0x30] sm:$0xff] }
 0x295   : > { %4065 = vmatprep.mubr.f32.mxu0 %v7561_v38  ;;  %5091 = vmatpush3.msra.mxu1 %v7009_v45  ;;  %v3610_v45 = vld [vmem:[%s7917_s3 + $0x460] sm:$0xff] }
 0x296   : > { %5092 = vmatprep.subr.mxu1 %v3612_v0 }
 0x297   : > { %4141 = vmatmul.mubr.f32.gmra.mxu1 %v2862_v23  ;;  %v3055_v23 = vld [vmem:[#allocation4 + $0x39] sm:$0xff] }
 0x298   : > { %4066 = vmatmul.mubr.f32.gmra.mxu0 %v7566_v37  ;;  %4145 = vmatprep.mubr.f32.mxu1 %v7125_v40  ;;  %v3609_v40 = vld [vmem:[%s7917_s3 + $0x458] sm:$0xff] }
 0x299   : > { %4360 = vmatprep.mubr.f32.mxu0 %v3054_v25  ;;  %5093 = vmatpush3.msra.mxu1 %v3612_v0  ;;  %v3057_v0 = vld [vmem:[#allocation4 + $0x51] sm:$0xff] }
 0x29a   : > { %5094 = vmatprep.subr.mxu1 %v3611_v36 }
 0x29b   : > { %4146 = vmatmul.mubr.f32.gmra.mxu1 %v3054_v25  ;;  %v3056_v25 = vld [vmem:[#allocation4 + $0x49] sm:$0xff] }
 0x29c   : > { %4361 = vmatmul.mubr.f32.vlgmr.msra.gmra.mxu0 %v2990_v17  ;;  %4150 = vmatprep.mubr.f32.mxu1 %v7151_v32  ;;  %v3608_v32 = vld [vmem:[%s7917_s3 + $0x450] sm:$0xff] }
 0x29d   : > { %4365 = vmatprep.mubr.f32.mxu0 %v3055_v23  ;;  %5095 = vmatpush3.msra.mxu1 %v3611_v36 }
 0x29e   : > { %5096 = vmatprep.subr.mxu1 %v3610_v45 }
 0x29f   : > { %4151 = vmatmul.mubr.f32.gmra.mxu1 %v3055_v23 }
 0x2a0   : > { %4366 = vmatmul.mubr.f32.gmra.mxu0 %v7077_v4  ;;  %4155 = vmatprep.mubr.f32.mxu1 %v7179_v34  ;;  %v3607_v4 = vld [vmem:[%s7917_s3 + $0x448] sm:$0xff]  ;;  %v3058_v34 = vld [vmem:[#allocation4 + $0x61] sm:$0xff] }
 0x2a1   : > { %4370 = vmatprep.mubr.f32.mxu0 %v3056_v25  ;;  %5097 = vmatpush3.msra.mxu1 %v3610_v45 }
 0x2a2   : > { %5098 = vmatprep.subr.mxu1 %v3609_v40 }
 0x2a3   : > { %4156 = vmatmul.mubr.f32.gmra.mxu1 %v3056_v25 }
 0x2a4   : > { %4371 = vmatmul.mubr.f32.gmra.mxu0 %v7105_v24  ;;  %4160 = vmatprep.mubr.f32.mxu1 %v7205_v22  ;;  %v3606_v24 = vld [vmem:[%s7917_s3 + $0x440] sm:$0xff] }
 0x2a5   : > { %4375 = vmatprep.mubr.f32.mxu0 %v3057_v0  ;;  %5099 = vmatpush3.msra.mxu1 %v3609_v40  ;;  %v3059_v22 = vld [vmem:[#allocation4 + $0x69] sm:$0xff] }
 0x2a6   : > { %5100 = vmatprep.subr.mxu1 %v3608_v32 }
 0x2a7   : > { %4161 = vmatmul.mubr.f32.gmra.mxu1 %v3057_v0 }
 0x2a8   : > { %4376 = vmatmul.mubr.f32.gmra.mxu0 %v7131_v58  ;;  %4165 = vmatprep.mubr.f32.mxu1 %v7233_v43  ;;  %v3605_v58 = vld [vmem:[%s7917_s3 + $0x438] sm:$0xff]  ;;  %v3060_v43 = vld [vmem:[#allocation4 + $0x79] sm:$0xff] }
 0x2a9   : > { %4380 = vmatprep.mubr.f32.mxu0 %v3058_v34  ;;  %5101 = vmatpush3.msra.mxu1 %v3608_v32 }
 0x2aa   : > { %5102 = vmatprep.subr.mxu1 %v3607_v4 }
 0x2ab   : > { %4166 = vmatmul.mubr.f32.gmra.mxu1 %v3058_v34 }
 0x2ac   : > { %4381 = vmatmul.mubr.f32.gmra.mxu0 %v7159_v42  ;;  %4170 = vmatprep.mubr.f32.mxu1 %v7259_v8  ;;  %v3604_v42 = vld [vmem:[%s7917_s3 + $0x430] sm:$0xff] }
 0x2ad   : > { %4385 = vmatprep.mubr.f32.mxu0 %v3059_v22  ;;  %5103 = vmatpush3.msra.mxu1 %v3607_v4  ;;  %v3061_v8 = vld [vmem:[#allocation4 + $0x81] sm:$0xff] }
 0x2ae   : > { %5104 = vmatprep.subr.mxu1 %v3606_v24 }
 0x2af   : > { %4171 = vmatmul.mubr.f32.gmra.mxu1 %v3059_v22 }
 0x2b0   : > { %4386 = vmatmul.mubr.f32.gmra.mxu0 %v7185_v10  ;;  %4175 = vmatprep.mubr.f32.mxu1 %v7289_v56  ;;  %v3603_v10 = vld [vmem:[%s7917_s3 + $0x428] sm:$0xff] }
 0x2b1   : > { %4390 = vmatprep.mubr.f32.mxu0 %v3060_v43  ;;  %5105 = vmatpush3.msra.mxu1 %v3606_v24  ;;  %v3062_v56 = vld [vmem:[#allocation4 + $0x91] sm:$0xff] }
 0x2b2   : > { %5106 = vmatprep.subr.mxu1 %v3605_v58 }
 0x2b3   : > { %4176 = vmatmul.mubr.f32.gmra.mxu1 %v3060_v43 }
 0x2b4   : > { %4391 = vmatmul.mubr.f32.gmra.mxu0 %v7213_v26  ;;  %4180 = vmatprep.mubr.f32.mxu1 %v7316_v39  ;;  %v3602_v26 = vld [vmem:[%s7917_s3 + $0x420] sm:$0xff]  ;;  %v3063_v39 = vld [vmem:[#allocation4 + $0x99] sm:$0xff] }
 0x2b5   : > { %4395 = vmatprep.mubr.f32.mxu0 %v3061_v8  ;;  %5107 = vmatpush3.msra.mxu1 %v3605_v58  ;;  %v3074_v58 = vld [vmem:[#allocation4 + $0x121] sm:$0xff] }
 0x2b6   : > { %5108 = vmatprep.subr.mxu1 %v3604_v42 }
 0x2b7   : > { %4181 = vmatmul.mubr.f32.gmra.mxu1 %v3061_v8 }
 0x2b8   : > { %4396 = vmatmul.mubr.f32.gmra.mxu0 %v7239_v2  ;;  %4185 = vmatprep.mubr.f32.mxu1 %v7338_v12  ;;  %v3601_v2 = vld [vmem:[%s7917_s3 + $0x418] sm:$0xff] }
 0x2b9   : > { %4400 = vmatprep.mubr.f32.mxu0 %v3062_v56  ;;  %5109 = vmatpush3.msra.mxu1 %v3604_v42  ;;  %v3064_v12 = vld [vmem:[#allocation4 + $0xa9] sm:$0xff] }
 0x2ba   : > { %5110 = vmatprep.subr.mxu1 %v3603_v10 }
 0x2bb   : > { %4186 = vmatmul.mubr.f32.gmra.mxu1 %v3062_v56  ;;  %v3075_v56 = vld [vmem:[#allocation4 + $0x129] sm:$0xff] }
 0x2bc   : > { %4401 = vmatmul.mubr.f32.gmra.mxu0 %v7267_v53  ;;  %4190 = vmatprep.mubr.f32.mxu1 %v7352_v21  ;;  %v3600_v53 = vld [vmem:[%s7917_s3 + $0x410] sm:$0xff]  ;;  %v3065_v21 = vld [vmem:[#allocation4 + $0xb1] sm:$0xff] }
 0x2bd   : > { %4405 = vmatprep.mubr.f32.mxu0 %v3063_v39  ;;  %5111 = vmatpush3.msra.mxu1 %v3603_v10 }
 0x2be   : > { %5112 = vmatprep.subr.mxu1 %v3602_v26 }
 0x2bf   : > { %4191 = vmatmul.mubr.f32.gmra.mxu1 %v3063_v39 }
 0x2c0   : > { %4406 = vmatmul.mubr.f32.gmra.mxu0 %v7295_v9  ;;  %4195 = vmatprep.mubr.f32.mxu1 %v7370_v18  ;;  %v3599_v9 = vld [vmem:[%s7917_s3 + $0x408] sm:$0xff]  ;;  %v3066_v18 = vld [vmem:[#allocation4 + $0xc1] sm:$0xff] }
 0x2c1   : > { %4410 = vmatprep.mubr.f32.mxu0 %v3064_v12  ;;  %5113 = vmatpush3.msra.mxu1 %v3602_v26 }
 0x2c2   : > { %5114 = vmatprep.subr.mxu1 %v3601_v2 }
 0x2c3   : > { %4196 = vmatmul.mubr.f32.gmra.mxu1 %v3064_v12 }
 0x2c4   : > { %4411 = vmatmul.mubr.f32.gmra.mxu0 %v7324_v35  ;;  %4200 = vmatprep.mubr.f32.mxu1 %v7386_v31  ;;  %v3598_v35 = vld [vmem:[%s7917_s3 + $0x400] sm:$0xff] }
 0x2c5   : > { %4415 = vmatprep.mubr.f32.mxu0 %v3065_v21  ;;  %5115 = vmatpush3.msra.mxu1 %v3601_v2  ;;  %v3067_v31 = vld [vmem:[#allocation4 + $0xc9] sm:$0xff] }
 0x2c6   : > { %5116 = vmatprep.subr.mxu1 %v3600_v53 }
 0x2c7   : > { %4201 = vmatmul.mubr.f32.gmra.mxu1 %v3065_v21 }
 0x2c8   : > { %4416 = vmatmul.mubr.f32.gmra.mxu0 %v7344_v44  ;;  %4205 = vmatprep.mubr.f32.mxu1 %v7402_v52  ;;  %v3068_v44 = vld [vmem:[#allocation4 + $0xd9] sm:$0xff]  ;;  %v7644_v52 = vld [vmem:[%s7918_s4] ss:$0 sm:$0xff] }
 0x2c9   : > { %4420 = vmatprep.mubr.f32.mxu0 %v3066_v18  ;;  %5117 = vmatpush3.msra.mxu1 %v3600_v53  ;;  %v3076_v53 = vld [vmem:[#allocation4 + $0x139] sm:$0xff] }
 0x2ca   : > { %5118 = vmatprep.subr.mxu1 %v3599_v9 }
 0x2cb   : > { %4206 = vmatmul.mubr.f32.gmra.mxu1 %v3066_v18 }
 0x2cc   : > { %4421 = vmatmul.mubr.f32.gmra.mxu0 %v7360_v16  ;;  %4210 = vmatprep.mubr.f32.mxu1 %v7416_v14  ;;  %v3069_v16 = vld [vmem:[#allocation4 + $0xe1] sm:$0xff]  ;;  %v3688_v14 = vadd.f32 %v7644_v52, %v7364_v61  ;;  %v3072_v61 = vld [vmem:[#allocation4 + $0x109] sm:$0xff] }
 0x2cd   : > { %4425 = vmatprep.mubr.f32.mxu0 %v3067_v31  ;;  %5119 = vmatpush3.msra.mxu1 %v3599_v9 }
 0x2ce   : > { %5120 = vmatprep.subr.mxu1 %v3598_v35 }
 0x2cf   : > { %4211 = vmatmul.mubr.f32.gmra.mxu1 %v3067_v31  ;;  %v3077_v31 = vld [vmem:[#allocation4 + $0x141] sm:$0xff] }
 0x2d0   : > { %4426 = vmatmul.mubr.f32.gmra.mxu0 %v7376_v27  ;;  %4215 = vmatprep.mubr.f32.mxu1 %v7432_v59  ;;  %v3070_v27 = vld [vmem:[#allocation4 + $0xf1] sm:$0xff] }
 0x2d1   : > { %4430 = vmatprep.mubr.f32.mxu0 %v3068_v44  ;;  %5121 = vmatpush3.msra.mxu1 %v3598_v35 }
 0x2d3   : > { %4216 = vmatmul.mubr.f32.gmra.mxu1 %v3068_v44 }
 0x2d4   : > { %4431 = vmatmul.mubr.f32.gmra.mxu0 %v7394_v29  ;;  %4220 = vmatprep.mubr.f32.mxu1 %v7446_v19  ;;  %v3071_v19 = vld [vmem:[#allocation4 + $0xf9] sm:$0xff] }
 0x2d5   : > { %4435 = vmatprep.mubr.f32.mxu0 %v3069_v16 }
 0x2d7   : > { %4221 = vmatmul.mubr.f32.gmra.mxu1 %v3069_v16 }
 0x2d8   : > { %4436 = vmatmul.mubr.f32.gmra.mxu0 %v7408_v46  ;;  %4225 = vmatprep.mubr.f32.mxu1 %v7462_v63  ;;  %v3693_v63 = vadd.f32 %v7644_v52, %v7382_v50  ;;  %v3073_v50 = vld [vmem:[#allocation4 + $0x111] sm:$0xff] }
 0x2d9   : > { %4440 = vmatprep.mubr.f32.mxu0 %v3070_v27 }
 0x2db   : > { %v3697_v29 = vpop.f32.mrf.mxu1  ;;  %4226 = vmatmul.mubr.f32.gmra.mxu1 %v3070_v27 }
 0x2dc   : > { %v3912_v59 = vpop.f32.mrf.mxu0  ;;  %4441 = vmatmul.mubr.f32.gmra.mxu0 %v7424_v15  ;;  %4230 = vmatprep.mubr.f32.mxu1 %v7476_v28  ;;  %v3698_v25 = vadd.f32 %v7644_v52, %v3697_v29  ;;  %v3078_v29 = vld [vmem:[#allocation4 + $0x151] sm:$0xff] }
 0x2dd   : > { %v7652_v36 = vadd.f32 %v3912_v59, %v3688_v14  ;;  %4445 = vmatprep.mubr.f32.mxu0 %v3071_v19  ;;  %v3699_v17 = vpop.f32.mrf.mxu1 }
 0x2de   : > { %v3914_v46 = vpop.f32.mrf.mxu0 }
 0x2df   : > { %v3702_v45 = vpop.f32.mrf.mxu1  ;;  %4231 = vmatmul.mubr.f32.gmra.mxu1 %v3071_v19 }
 0x2e0   : > { %v3917_v23 = vpop.f32.mrf.mxu0  ;;  %4446 = vmatmul.mubr.f32.gmra.mxu0 %v7438_v55  ;;  %4235 = vmatprep.mubr.f32.mxu1 %v7485_v33  ;;  %v3703_v34 = vadd.f32 %v7644_v52, %v3702_v45 }
 0x2e1   : > { %v7658_v15 = vadd.f32 %v3917_v23, %v3693_v63  ;;  %4450 = vmatprep.mubr.f32.mxu0 %v3072_v61  ;;  %v3704_v28 = vpop.f32.mrf.mxu1  ;;  %v3079_v63 = vld [vmem:[#allocation4 + $0x159] sm:$0xff] }
 0x2e2   : > { %v3919_v40 = vpop.f32.mrf.mxu0 }
 0x2e3   : > { %v3707_v32 = vpop.f32.mrf.mxu1  ;;  %4236 = vmatmul.mubr.f32.gmra.mxu1 %v3072_v61  ;;  %v3080_v40 = vld [vmem:[#allocation4 + $0x169] sm:$0xff] }
 0x2e4   : > { %v3922_v0 = vpop.f32.mrf.mxu0  ;;  %4451 = vmatmul.mubr.f32.gmra.mxu0 %v7454_v60  ;;  %4240 = vmatprep.mubr.f32.mxu1 %v7494_v48  ;;  %v3708_v42 = vadd.f32 %v7644_v52, %v3707_v32 }
 0x2e5   : > { %v7663_v4 = vadd.f32 %v3922_v0, %v3698_v25  ;;  %4455 = vmatprep.mubr.f32.mxu0 %v3073_v50  ;;  %v3709_v55 = vpop.f32.mrf.mxu1 }
 0x2e6   : > { %v3924_v33 = vpop.f32.mrf.mxu0  ;;  %v3081_v55 = vld [vmem:[#allocation4 + $0x171] sm:$0xff] }
 0x2e7   : > { %v3712_v24 = vpop.f32.mrf.mxu1  ;;  %4241 = vmatmul.mubr.f32.gmra.mxu1 %v3073_v50 }
 0x2e8   : > { %v3927_v22 = vpop.f32.mrf.mxu0  ;;  %4456 = vmatmul.mubr.f32.gmra.mxu0 %v7468_v47  ;;  %4245 = vmatprep.mubr.f32.mxu1 %v7503_v41  ;;  %v3713_v39 = vadd.f32 %v7644_v52, %v3712_v24 }
 0x2e9   : > { %v7668_v43 = vadd.f32 %v3927_v22, %v3703_v34  ;;  %4460 = vmatprep.mubr.f32.mxu0 %v3074_v58  ;;  %v3714_v60 = vpop.f32.mrf.mxu1  ;;  %v7706_v22 = vld [vmem:[#allocation4 + $0x182] sm:$0xff] }
 0x2ea   : > { %v3929_v48 = vpop.f32.mrf.mxu0 }
 0x2eb   : > { %v3717_v8 = vpop.f32.mrf.mxu1  ;;  %4246 = vmatmul.mubr.f32.gmra.mxu1 %v3074_v58 }
 0x2ec   : > { %v3932_v10 = vpop.f32.mrf.mxu0  ;;  %4461 = vmatmul.mubr.f32.gmra.mxu0 %v7481_v51  ;;  %4250 = vmatprep.mubr.f32.mxu1 %v7512_v30  ;;  %v3718_v9 = vadd.f32 %v7644_v52, %v3717_v8 }
 0x2ed   : > { %v7673_v26 = vadd.f32 %v3932_v10, %v3708_v42  ;;  %4465 = vmatprep.mubr.f32.mxu0 %v3075_v56  ;;  %v3719_v47 = vpop.f32.mrf.mxu1  ;;  %v7713_v10 = vld [vmem:[#allocation4 + $0x18a] sm:$0xff] }
 0x2ee   : > { %v3934_v41 = vpop.f32.mrf.mxu0  ;;  %v8032_v47 = vld [vmem:[#allocation8_spill] sm:$0xff] }
 0x2ef   : > { %v3722_v2 = vpop.f32.mrf.mxu1  ;;  %4251 = vmatmul.mubr.f32.gmra.mxu1 %v3075_v56 }
 0x2f0   : > { %v3937_v12 = vpop.f32.mrf.mxu0  ;;  %4466 = vmatmul.mubr.f32.gmra.mxu0 %v7490_v6  ;;  %4255 = vmatprep.mubr.f32.mxu1 %v7521_v5  ;;  %v3723_v16 = vadd.f32 %v7644_v52, %v3722_v2 }
 0x2f1   : > { %v7678_v21 = vadd.f32 %v3937_v12, %v3713_v39  ;;  %4470 = vmatprep.mubr.f32.mxu0 %v3076_v53  ;;  %v3724_v51 = vpop.f32.mrf.mxu1  ;;  %v3084_v12 = vld [vmem:[#allocation4 + $0x199] sm:$0xff] }
 0x2f2   : > { %v3939_v30 = vpop.f32.mrf.mxu0 }
 0x2f3   : > { %v3727_v18 = vpop.f32.mrf.mxu1  ;;  %4256 = vmatmul.mubr.f32.gmra.mxu1 %v3076_v53  ;;  %v3118_v30 = vld [vmem:[#allocation4 + $0x32] sm:$0xff] }
 0x2f4   : > { %v3942_v35 = vpop.f32.mrf.mxu0  ;;  %4471 = vmatmul.mubr.f32.gmra.mxu0 %v7499_v20  ;;  %4260 = vmatprep.mubr.f32.mxu1 %v7530_v7  ;;  %v3728_v19 = vadd.f32 %v7644_v52, %v3727_v18 }
 0x2f5   : > { %v7683_v44 = vadd.f32 %v3942_v35, %v3718_v9  ;;  %4475 = vmatprep.mubr.f32.mxu0 %v3077_v31  ;;  %v3729_v6 = vpop.f32.mrf.mxu1 }
 0x2f6   : > { %v3944_v5 = vpop.f32.mrf.mxu0  ;;  %v3119_v6 = vld [vmem:[#allocation4 + $0x3a] sm:$0xff] }
 0x2f7   : > { %v3732_v27 = vpop.f32.mrf.mxu1  ;;  %4261 = vmatmul.mubr.f32.gmra.mxu1 %v3077_v31  ;;  %v3085_v5 = vld [vmem:[#allocation4 + $0x1a1] sm:$0xff] }
 0x2f8   : > { %v3947_v14 = vpop.f32.mrf.mxu0  ;;  %4476 = vmatmul.mubr.f32.gmra.mxu0 %v7508_v62  ;;  %4265 = vmatprep.mubr.f32.mxu1 %v7539_v49  ;;  %v3733_v23 = vadd.f32 %v7644_v52, %v3732_v27 }
 0x2f9   : > { %v7688_v59 = vadd.f32 %v3947_v14, %v3723_v16  ;;  %4480 = vmatprep.mubr.f32.mxu0 %v3078_v29  ;;  %v3734_v20 = vpop.f32.mrf.mxu1  ;;  %v3120_v14 = vld [vmem:[#allocation4 + $0x4a] sm:$0xff] }
 0x2fa   : > { %v3949_v7 = vpop.f32.mrf.mxu0  ;;  %v5182_v20 = vld [vmem:[#allocation2] sm:$0xff] }
 0x2fb   : > { %v3737_v17 = vpop.f32.mrf.mxu1  ;;  %4266 = vmatmul.mubr.f32.gmra.mxu1 %v3078_v29 }
 0x2fc   : > { %v3952_v46 = vpop.f32.mrf.mxu0  ;;  %4481 = vmatmul.mubr.f32.gmra.mxu0 %v7517_v13  ;;  %4270 = vmatprep.mubr.f32.mxu1 %v7548_v57  ;;  %v3738_v32 = vadd.f32 %v7644_v52, %v3737_v17  ;;  %v3121_v17 = vld [vmem:[#allocation4 + $0x52] sm:$0xff] }
 0x2fd   : > { %v7693_v45 = vadd.f32 %v3952_v46, %v3728_v19  ;;  %4485 = vmatprep.mubr.f32.mxu0 %v3079_v63  ;;  %v3739_v62 = vpop.f32.mrf.mxu1 }
 0x2fe   : > { %v3954_v49 = vpop.f32.mrf.mxu0  ;;  %v3122_v62 = vld [vmem:[#allocation4 + $0x62] sm:$0xff] }
 0x2ff   : > { %v3742_v61 = vpop.f32.mrf.mxu1  ;;  %4271 = vmatmul.mubr.f32.gmra.mxu1 %v3079_v63 }
 0x300   : > { %v3957_v28 = vpop.f32.mrf.mxu0  ;;  %4486 = vmatmul.mubr.f32.gmra.mxu0 %v7526_v3  ;;  %4275 = vmatprep.mubr.f32.mxu1 %v7555_v11  ;;  %v3743_v34 = vadd.f32 %v7644_v52, %v3742_v61 }
 0x301   : > { %v7698_v25 = vadd.f32 %v3957_v28, %v3733_v23  ;;  %4490 = vmatprep.mubr.f32.mxu0 %v3080_v40  ;;  %v3744_v13 = vpop.f32.mrf.mxu1 }
 0x302   : > { %v3959_v57 = vpop.f32.mrf.mxu0 }
 0x303   : > { %v3747_v0 = vpop.f32.mrf.mxu1  ;;  %4276 = vmatmul.mubr.f32.gmra.mxu1 %v3080_v40  ;;  %v3123_v40 = vld [vmem:[#allocation4 + $0x6a] sm:$0xff] }
 0x304   : > { %v3962_v50 = vpop.f32.mrf.mxu0  ;;  %4491 = vmatmul.mubr.f32.gmra.mxu0 %v7535_v54  ;;  %4280 = vmatprep.mubr.f32.mxu1 %v7566_v37  ;;  %v3082_v54 = vld [vmem:[#allocation4 + $0x181] sm:$0xff]  ;;  %v3748_v42 = vadd.f32 %v7644_v52, %v3747_v0 }
 0x305   : > { %v7703_v33 = vadd.f32 %v3962_v50, %v3738_v32  ;;  %4495 = vmatprep.mubr.f32.mxu0 %v3081_v55  ;;  %v3749_v3 = vpop.f32.mrf.mxu1  ;;  %v3124_v32 = vld [vmem:[#allocation4 + $0x7a] sm:$0xff] }
 0x306   : > { %v3964_v11 = vpop.f32.mrf.mxu0 }
 0x307   : > { %v3752_v24 = vpop.f32.mrf.mxu1  ;;  %4281 = vmatmul.mubr.f32.gmra.mxu1 %v3081_v55  ;;  %v3125_v11 = vld [vmem:[#allocation4 + $0x82] sm:$0xff] }
 0x308   : > { %v3967_v58 = vpop.f32.mrf.mxu0  ;;  %4496 = vmatmul.mubr.f32.gmra.mxu0 %v7544_v1  ;;  %4285 = vmatprep.mubr.f32.mxu1 %v7706_v22  ;;  %v3083_v1 = vld [vmem:[#allocation4 + $0x189] sm:$0xff]  ;;  %v3753_v53 = vadd.f32 %v7644_v52, %v3752_v24 }
 0x309   : > { %v7710_v60 = vadd.f32 %v3967_v58, %v3743_v34  ;;  %4500 = vmatprep.mubr.f32.mxu0 %v3082_v54  ;;  %v3754_v37 = vpop.f32.mrf.mxu1  ;;  %v3126_v58 = vld [vmem:[#allocation4 + $0x92] sm:$0xff] }
 0x30a   : > { %v3969_v48 = vpop.f32.mrf.mxu0 }
 0x30b   : > { %v3757_v8 = vpop.f32.mrf.mxu1  ;;  %4286 = vmatmul.mubr.f32.gmra.mxu1 %v3082_v54 }
 0x30c   : > { %v3972_v56 = vpop.f32.mrf.mxu0  ;;  %4501 = vmatmul.mubr.f32.gmra.mxu0 %v8032_v47  ;;  %4290 = vmatprep.mubr.f32.mxu1 %v7713_v10  ;;  %v3758_v16 = vadd.f32 %v7644_v52, %v3757_v8  ;;  %v3127_v8 = vld [vmem:[#allocation4 + $0x9a] sm:$0xff] }
 0x30d   : > { %v7717_v41 = vadd.f32 %v3972_v56, %v3748_v42  ;;  %4505 = vmatprep.mubr.f32.mxu0 %v3083_v1  ;;  %v3759_v39 = vpop.f32.mrf.mxu1 }
 0x30e   : > { %v3974_v2 = vpop.f32.mrf.mxu0 }
 0x30f   : > { %v3762_v51 = vpop.f32.mrf.mxu1  ;;  %4291 = vmatmul.mubr.f32.gmra.mxu1 %v3083_v1  ;;  %v3128_v1 = vld [vmem:[#allocation4 + $0xaa] sm:$0xff] }
 0x310   : > { %v3977_v9 = vpop.f32.mrf.mxu0  ;;  %4506 = vmatmul.mubr.f32.gmra.mxu0 %v7561_v38  ;;  %5122 = vmatprep.mubr.f32.mxu1 %v3118_v30  ;;  %v3763_v46 = vadd.f32 %v7644_v52, %v3762_v51  ;;  %v3129_v51 = vld [vmem:[#allocation4 + $0xb2] sm:$0xff] }
 0x311   : > { %v7721_v18 = vadd.f32 %v3977_v9, %v3753_v53  ;;  %v3764_v35 = vpop.f32.mrf.mxu1  ;;  %4510 = vmatprep.mubr.f32.mxu0 %v3084_v12 }
 0x312   : > { %v3979_v31 = vpop.f32.mrf.mxu0  ;;  %v3130_v35 = vld [vmem:[#allocation4 + $0xc2] sm:$0xff] }
 0x313   : > { %v3767_v27 = vpop.f32.mrf.mxu1  ;;  %5123 = vmatmul.mubr.f32.vlgmr.msra.gmra.mxu1 %v3119_v6 }
 0x314   : > { %v3982_v29 = vpop.f32.mrf.mxu0  ;;  %4511 = vmatmul.mubr.f32.gmra.mxu0 %v5182_v20  ;;  %5125 = vmatprep.mubr.f32.mxu1 %v3120_v14  ;;  %v3768_v13 = vadd.f32 %v7644_v52, %v3767_v27  ;;  %v3131_v27 = vld [vmem:[#allocation4 + $0xca] sm:$0xff] }
 0x315   : > { %v7724_v7 = vadd.f32 %v3982_v29, %v3758_v16  ;;  %v3769_v38 = vpop.f32.mrf.mxu1  ;;  %4515 = vmatprep.mubr.f32.mxu0 %v3085_v5 }
 0x316   : > { %v3984_v19 = vpop.f32.mrf.mxu0 }
 0x317   : > { %v3772_v63 = vpop.f32.mrf.mxu1  ;;  %5126 = vmatmul.mubr.f32.gmra.mxu1 %v3121_v17 }
 0x318   : > { %v3987_v49 = vpop.f32.mrf.mxu0  ;;  %4516 = vmatmul.mubr.f32.gmra.mxu0 %v5182_v20  ;;  %5128 = vmatprep.mubr.f32.mxu1 %v3122_v62  ;;  %v3773_v34 = vadd.f32 %v7644_v52, %v3772_v63  ;;  %v3132_v20 = vld [vmem:[#allocation4 + $0xda] sm:$0xff]  ;;  %v3133_v63 = vld [vmem:[#allocation4 + $0xe2] sm:$0xff] }
 0x319   : > { %v7727_v23 = vadd.f32 %v3987_v49, %v3763_v46  ;;  %v3774_v61 = vpop.f32.mrf.mxu1 }
 0x31a   : > { %v3989_v28 = vpop.f32.mrf.mxu0  ;;  %v3134_v61 = vld [vmem:[#allocation4 + $0xf2] sm:$0xff] }
 0x31b   : > { %v3777_v57 = vpop.f32.mrf.mxu1  ;;  %5129 = vmatmul.mubr.f32.gmra.mxu1 %v3123_v40 }
 0x31c   : > { %v3992_v0 = vpop.f32.mrf.mxu0  ;;  %5131 = vmatprep.mubr.f32.mxu1 %v3124_v32  ;;  %v3778_v56 = vadd.f32 %v7644_v52, %v3777_v57  ;;  %v3135_v32 = vld [vmem:[#allocation4 + $0xfa] sm:$0xff] }
 0x31d   : > { %v7730_v50 = vadd.f32 %v3992_v0, %v3768_v13  ;;  %v3779_v55 = vpop.f32.mrf.mxu1 }
 0x31e   : > { %v3994_v3 = vpop.f32.mrf.mxu0 }
 0x31f   : > { %v3782_v24 = vpop.f32.mrf.mxu1  ;;  %5132 = vmatmul.mubr.f32.gmra.mxu1 %v3125_v11  ;;  %v3136_v3 = vld [vmem:[#allocation4 + $0x10a] sm:$0xff] }
 0x320   : > { %v3997_v54 = vpop.f32.mrf.mxu0  ;;  %5134 = vmatprep.mubr.f32.mxu1 %v3126_v58  ;;  %v3783_v30 = vadd.f32 %v7644_v52, %v3782_v24 }
 0x321   : > { %v7733_v37 = vadd.f32 %v3997_v54, %v3773_v34  ;;  %v3784_v48 = vpop.f32.mrf.mxu1  ;;  %v3137_v54 = vld [vmem:[#allocation4 + $0x112] sm:$0xff] }
 0x322   : > { %v3999_v42 = vpop.f32.mrf.mxu0 }
 0x323   : > { %v3787_v47 = vpop.f32.mrf.mxu1  ;;  %5135 = vmatmul.mubr.f32.gmra.mxu1 %v3127_v8  ;;  %v3138_v8 = vld [vmem:[#allocation4 + $0x122] sm:$0xff] }
 0x324   : > { %v4002_v39 = vpop.f32.mrf.mxu0  ;;  %5137 = vmatprep.mubr.f32.mxu1 %v3128_v1  ;;  %v3788_v14 = vadd.f32 %v7644_v52, %v3787_v47 }
 0x325   : > { %v7736_v2 = vadd.f32 %v4002_v39, %v3778_v56  ;;  %v3789_v12 = vpop.f32.mrf.mxu1 }
 0x326   : > { %v4004_v53 = vpop.f32.mrf.mxu0  ;;  %v3139_v12 = vld [vmem:[#allocation4 + $0x12a] sm:$0xff] }
 0x327   : > { %v3792_v9 = vpop.f32.mrf.mxu1  ;;  %5138 = vmatmul.mubr.f32.gmra.mxu1 %v3129_v51 }
 0x328   : > { %v4007_v31 = vpop.f32.mrf.mxu0  ;;  %5140 = vmatprep.mubr.f32.mxu1 %v3130_v35  ;;  %v3793_v62 = vadd.f32 %v7644_v52, %v3792_v9 }
 0x329   : > { %v7739_v6 = vadd.f32 %v4007_v31, %v3783_v30  ;;  %v3794_v5 = vpop.f32.mrf.mxu1  ;;  %v3140_v30 = vld [vmem:[#allocation4 + $0x13a] sm:$0xff] }
 0x32a   : > { %v4009_v16 = vpop.f32.mrf.mxu0 }
 0x32b   : > { %v3797_v29 = vpop.f32.mrf.mxu1  ;;  %5141 = vmatmul.mubr.f32.gmra.mxu1 %v3131_v27  ;;  %v3141_v16 = vld [vmem:[#allocation4 + $0x142] sm:$0xff] }
 0x32c   : > { %v4012_v38 = vpop.f32.mrf.mxu0  ;;  %5143 = vmatprep.mubr.f32.mxu1 %v3132_v20  ;;  %v3798_v0 = vadd.f32 %v7644_v52, %v3797_v29  ;;  %v3142_v29 = vld [vmem:[#allocation4 + $0x152] sm:$0xff] }
 0x32d   : > { %v7742_v19 = vadd.f32 %v4012_v38, %v3788_v14  ;;  %v3799_v17 = vpop.f32.mrf.mxu1 }
 0x32e   : > { %v4014_v46 = vpop.f32.mrf.mxu0 }
 0x32f   : > { %v3802_v49 = vpop.f32.mrf.mxu1  ;;  %5144 = vmatmul.mubr.f32.gmra.mxu1 %v3133_v63  ;;  %v3143_v63 = vld [vmem:[#allocation4 + $0x15a] sm:$0xff] }
 0x330   : > { %v4017_v28 = vpop.f32.mrf.mxu0  ;;  %5146 = vmatprep.mubr.f32.mxu1 %v3134_v61  ;;  %v3803_v48 = vadd.f32 %v7644_v52, %v3802_v49  ;;  %v3144_v61 = vld [vmem:[#allocation4 + $0x16a] sm:$0xff] }
 0x331   : > { %v7745_v40 = vadd.f32 %v4017_v28, %v3793_v62  ;;  %v3804_v13 = vpop.f32.mrf.mxu1 }
 0x332   : > { %v4019_v57 = vpop.f32.mrf.mxu0 }
 0x333   : > { %v3807_v55 = vpop.f32.mrf.mxu1  ;;  %5147 = vmatmul.mubr.f32.gmra.mxu1 %v3135_v32 }
 0x334   : > { %v4022_v11 = vpop.f32.mrf.mxu0  ;;  %5149 = vmatprep.mubr.f32.mxu1 %v3136_v3  ;;  %v3808_v53 = vadd.f32 %v7644_v52, %v3807_v55 }
 0x335   : > { %v7748_v34 = vadd.f32 %v4022_v11, %v3798_v0  ;;  %v3809_v24 = vpop.f32.mrf.mxu1  ;;  %v3145_v0 = vld [vmem:[#allocation4 + $0x172] sm:$0xff] }
 0x336   : > { %v4024_v58 = vpop.f32.mrf.mxu0 }
 0x337   : > { %v3812_v42 = vpop.f32.mrf.mxu1  ;;  %5150 = vmatmul.mubr.f32.gmra.mxu1 %v3137_v54  ;;  %v3148_v54 = vld [vmem:[#allocation4 + $0x19a] sm:$0xff] }
 0x338   : > { %v4027_v56 = vpop.f32.mrf.mxu0  ;;  %5152 = vmatprep.mubr.f32.mxu1 %v3138_v8  ;;  %v3813_v27 = vadd.f32 %v7644_v52, %v3812_v42 }
 0x339   : > { %v7751_v47 = vadd.f32 %v4027_v56, %v3803_v48  ;;  %v3814_v1 = vpop.f32.mrf.mxu1 }
 0x33a   : > { %v4029_v39 = vpop.f32.mrf.mxu0  ;;  %v3149_v1 = vld [vmem:[#allocation4 + $0x1a2] sm:$0xff] }
 0x33b   : > { %v3817_v51 = vpop.f32.mrf.mxu1  ;;  %5153 = vmatmul.mubr.f32.gmra.mxu1 %v3139_v12 }
 0x33c   : > { %v4032_v9 = vpop.f32.mrf.mxu0  ;;  %5155 = vmatprep.mubr.f32.mxu1 %v3140_v30  ;;  %v3818_v62 = vadd.f32 %v7644_v52, %v3817_v51 }
 0x33d   : > { %v7754_v35 = vadd.f32 %v4032_v9, %v3808_v53  ;;  %v3819_v31 = vpop.f32.mrf.mxu1 }
 0x33e   : > { %v4034_v5 = vpop.f32.mrf.mxu0 }
 0x33f   : > { %v3822_v14 = vpop.f32.mrf.mxu1  ;;  %5156 = vmatmul.mubr.f32.gmra.mxu1 %v3141_v16 }
 0x340   : > { %v4037_v20 = vpop.f32.mrf.mxu0  ;;  %5158 = vmatprep.mubr.f32.mxu1 %v3142_v29  ;;  %v3823_v55 = vadd.f32 %v7644_v52, %v3822_v14 }
 0x341   : > { %v7757_v38 = vadd.f32 %v4037_v20, %v3813_v27  ;;  %v3824_v17 = vpop.f32.mrf.mxu1 }
 0x342   : > { %v4039_v46 = vpop.f32.mrf.mxu0 }
 0x343   : > { %v3827_v49 = vpop.f32.mrf.mxu1  ;;  %5159 = vmatmul.mubr.f32.gmra.mxu1 %v3143_v63 }
 0x344   : > { %v4042_v28 = vpop.f32.mrf.mxu0  ;;  %5161 = vmatprep.mubr.f32.mxu1 %v3144_v61  ;;  %v3828_v42 = vadd.f32 %v7644_v52, %v3827_v49 }
 0x345   : > { %v7760_v13 = vadd.f32 %v4042_v28, %v3818_v62  ;;  %v3829_v57 = vpop.f32.mrf.mxu1 }
 0x346   : > { %v4044_v32 = vpop.f32.mrf.mxu0 }
 0x347   : > { %v3832_v3 = vpop.f32.mrf.mxu1  ;;  %5162 = vmatmul.mubr.f32.gmra.mxu1 %v3145_v0 }
 0x348   : > { %v4047_v11 = vpop.f32.mrf.mxu0  ;;  %5164 = vmatprep.mubr.f32.mxu1 %v7706_v22  ;;  %v3833_v51 = vadd.f32 %v7644_v52, %v3832_v3 }
 0x349   : > { %v7764_v24 = vadd.f32 %v4047_v11, %v3823_v55  ;;  %v3834_v58 = vpop.f32.mrf.mxu1 }
 0x34a   : > { %v4049_v48 = vpop.f32.mrf.mxu0 }
 0x34b   : > { %v3837_v8 = vpop.f32.mrf.mxu1  ;;  %5165 = vmatmul.mubr.f32.gmra.mxu1 %v7713_v10 }
 0x34c   : > { %v4052_v56 = vpop.f32.mrf.mxu0  ;;  %5167 = vmatprep.mubr.f32.mxu1 %v3148_v54  ;;  %v3838_v16 = vadd.f32 %v7644_v52, %v3837_v8 }
 0x34d   : > { %v7768_v39 = vadd.f32 %v4052_v56, %v3828_v42  ;;  %v3839_v12 = vpop.f32.mrf.mxu1 }
 0x34e   : > { %v4054_v53 = vpop.f32.mrf.mxu0 }
 0x34f   : > { %v3842_v22 = vpop.f32.mrf.mxu1  ;;  %5168 = vmatmul.mubr.f32.gmra.mxu1 %v3149_v1 }
 0x350   : > { %v4057_v30 = vpop.f32.mrf.mxu0  ;;  %v3843_v46 = vadd.f32 %v7644_v52, %v3842_v22 }
 0x351   : > { %v7771_v9 = vadd.f32 %v4057_v30, %v3833_v51  ;;  %v3844_v31 = vpop.f32.mrf.mxu1 }
 0x352   : > { %v4059_v5 = vpop.f32.mrf.mxu0 }
 0x353   : > { %v4137_v27 = vpop.f32.mrf.mxu1 }
 0x354   : > { %v4062_v10 = vpop.f32.mrf.mxu0  ;;  %v4138_v14 = vadd.f32 %v4137_v27, %v7652_v36 }
 0x355   : > { %v7775_v29 = vadd.f32 %v4062_v10, %v3838_v16  ;;  %v4139_v20 = vpop.f32.mrf.mxu1 }
 0x356   : > { %v4064_v17 = vpop.f32.mrf.mxu0 }
 0x357   : > { %v4142_v63 = vpop.f32.mrf.mxu1 }
 0x358   : > { %v4067_v62 = vpop.f32.mrf.mxu0  ;;  %v4143_v49 = vadd.f32 %v4142_v63, %v7658_v15 }
 0x359   : > { %v7779_v61 = vadd.f32 %v4067_v62, %v3843_v46  ;;  %v4144_v28 = vpop.f32.mrf.mxu1 }
 0x35a   : > { %v4069_v57 = vpop.f32.mrf.mxu0 }
 0x35b   : > { %v4147_v32 = vpop.f32.mrf.mxu1 }
 0x35c   : > { %v4148_v0 = vadd.f32 %v4147_v32, %v7663_v4  ;;  %v4362_v55 = vpop.f32.mrf.mxu0 }
 0x35d   : > { %v7782_v3 = vadd.f32 %v4362_v55, %v4138_v14  ;;  %v4149_v36 = vpop.f32.mrf.mxu1 }
 0x35e   : > { %v4364_v11 = vpop.f32.mrf.mxu0 }
 0x35f   : > { %v4152_v58 = vpop.f32.mrf.mxu1 }
 0x360   : > { %v4153_v54 = vadd.f32 %v4152_v58, %v7668_v43  ;;  %v4367_v52 = vpop.f32.mrf.mxu0 }
 0x361   : > { %v7785_v48 = vadd.f32 %v4367_v52, %v4143_v49  ;;  %v4154_v42 = vpop.f32.mrf.mxu1 }
 0x362   : > { %v4369_v15 = vpop.f32.mrf.mxu0 }
 0x363   : > { %v4157_v8 = vpop.f32.mrf.mxu1 }
 0x364   : > { %v4158_v56 = vadd.f32 %v4157_v8, %v7673_v26  ;;  %v4372_v1 = vpop.f32.mrf.mxu0 }
 0x365   : > { %v7788_v12 = vadd.f32 %v4372_v1, %v4148_v0  ;;  %v4159_v4 = vpop.f32.mrf.mxu1 }
 0x366   : > { %v4374_v53 = vpop.f32.mrf.mxu0 }
 0x367   : > { %v4162_v51 = vpop.f32.mrf.mxu1 }
 0x368   : > { %v4163_v22 = vadd.f32 %v4162_v51, %v7678_v21  ;;  %v4377_v30 = vpop.f32.mrf.mxu0 }
 0x369   : > { %v7791_v31 = vadd.f32 %v4377_v30, %v4153_v54  ;;  %v4164_v43 = vpop.f32.mrf.mxu1 }
 0x36a   : > { %v4379_v5 = vpop.f32.mrf.mxu0 }
 0x36b   : > { %v4167_v16 = vpop.f32.mrf.mxu1 }
 0x36c   : > { %v4168_v27 = vadd.f32 %v4167_v16, %v7683_v44  ;;  %v4382_v10 = vpop.f32.mrf.mxu0 }
 0x36d   : > { %v7794_v14 = vadd.f32 %v4382_v10, %v4158_v56  ;;  %v4169_v26 = vpop.f32.mrf.mxu1 }
 0x36e   : > { %v4384_v20 = vpop.f32.mrf.mxu0 }
 0x36f   : > { %v4172_v17 = vpop.f32.mrf.mxu1 }
 0x370   : > { %v4173_v46 = vadd.f32 %v4172_v17, %v7688_v59  ;;  %v4387_v63 = vpop.f32.mrf.mxu0 }
 0x371   : > { %v7797_v62 = vadd.f32 %v4387_v63, %v4163_v22  ;;  %v4174_v21 = vpop.f32.mrf.mxu1 }
 0x372   : > { %v4389_v49 = vpop.f32.mrf.mxu0 }
 0x373   : > { %v4177_v28 = vpop.f32.mrf.mxu1 }
 0x374   : > { %v4178_v57 = vadd.f32 %v4177_v28, %v7693_v45  ;;  %v4392_v32 = vpop.f32.mrf.mxu0 }
 0x375   : > { %v7800_v0 = vadd.f32 %v4392_v32, %v4168_v27  ;;  %v4179_v44 = vpop.f32.mrf.mxu1 }
 0x376   : > { %v4394_v55 = vpop.f32.mrf.mxu0 }
 0x377   : > { %v4182_v36 = vpop.f32.mrf.mxu1 }
 0x378   : > { %v4183_v11 = vadd.f32 %v4182_v36, %v7698_v25  ;;  %v4397_v58 = vpop.f32.mrf.mxu0 }
 0x379   : > { %v7803_v54 = vadd.f32 %v4397_v58, %v4173_v46  ;;  %v4184_v59 = vpop.f32.mrf.mxu1 }
 0x37a   : > { %v4399_v52 = vpop.f32.mrf.mxu0 }
 0x37b   : > { %v4187_v42 = vpop.f32.mrf.mxu1 }
 0x37c   : > { %v4188_v15 = vadd.f32 %v4187_v42, %v7703_v33  ;;  %v4402_v8 = vpop.f32.mrf.mxu0 }
 0x37d   : > { %v7806_v56 = vadd.f32 %v4402_v8, %v4178_v57  ;;  %v4189_v45 = vpop.f32.mrf.mxu1 }
 0x37e   : > { %v4404_v1 = vpop.f32.mrf.mxu0 }
 0x37f   : > { %v4192_v4 = vpop.f32.mrf.mxu1 }
 0x380   : > { %v4193_v53 = vadd.f32 %v4192_v4, %v7710_v60  ;;  %v4407_v51 = vpop.f32.mrf.mxu0 }
 0x381   : > { %v7809_v22 = vadd.f32 %v4407_v51, %v4183_v11  ;;  %v4194_v25 = vpop.f32.mrf.mxu1 }
 0x382   : > { %v4409_v30 = vpop.f32.mrf.mxu0 }
 0x383   : > { %v4197_v43 = vpop.f32.mrf.mxu1 }
 0x384   : > { %v4198_v5 = vadd.f32 %v4197_v43, %v7717_v41  ;;  %v4412_v16 = vpop.f32.mrf.mxu0 }
 0x385   : > { %v7812_v27 = vadd.f32 %v4412_v16, %v4188_v15  ;;  %v4199_v33 = vpop.f32.mrf.mxu1 }
 0x386   : > { %v4414_v10 = vpop.f32.mrf.mxu0 }
 0x387   : > { %v4202_v26 = vpop.f32.mrf.mxu1 }
 0x388   : > { %v4203_v20 = vadd.f32 %v4202_v26, %v7721_v18  ;;  %v4417_v17 = vpop.f32.mrf.mxu0 }
 0x389   : > { %v7815_v46 = vadd.f32 %v4417_v17, %v4193_v53  ;;  %v4204_v60 = vpop.f32.mrf.mxu1 }
 0x38a   : > { %v4419_v63 = vpop.f32.mrf.mxu0 }
 0x38b   : > { %v4207_v21 = vpop.f32.mrf.mxu1 }
 0x38c   : > { %v4208_v49 = vadd.f32 %v4207_v21, %v7724_v7  ;;  %v4422_v28 = vpop.f32.mrf.mxu0 }
 0x38d   : > { %v7818_v57 = vadd.f32 %v4422_v28, %v4198_v5  ;;  %v4209_v41 = vpop.f32.mrf.mxu1 }
 0x38e   : > { %v4424_v32 = vpop.f32.mrf.mxu0 }
 0x38f   : > { %v4212_v44 = vpop.f32.mrf.mxu1 }
 0x390   : > { %v4213_v55 = vadd.f32 %v4212_v44, %v7727_v23  ;;  %v4427_v36 = vpop.f32.mrf.mxu0 }
 0x391   : > { %v7821_v11 = vadd.f32 %v4427_v36, %v4203_v20  ;;  %v4214_v18 = vpop.f32.mrf.mxu1 }
 0x392   : > { %v4429_v58 = vpop.f32.mrf.mxu0 }
 0x393   : > { %v4217_v59 = vpop.f32.mrf.mxu1 }
 0x394   : > { %v4218_v52 = vadd.f32 %v4217_v59, %v7730_v50  ;;  %v4432_v42 = vpop.f32.mrf.mxu0 }
 0x395   : > { %v7824_v15 = vadd.f32 %v4432_v42, %v4208_v49  ;;  %v4219_v7 = vpop.f32.mrf.mxu1 }
 0x396   : > { %v4434_v8 = vpop.f32.mrf.mxu0 }
 0x397   : > { %v4222_v45 = vpop.f32.mrf.mxu1 }
 0x398   : > { %v4223_v1 = vadd.f32 %v4222_v45, %v7733_v37  ;;  %v4437_v4 = vpop.f32.mrf.mxu0 }
 0x399   : > { %v7827_v53 = vadd.f32 %v4437_v4, %v4213_v55  ;;  %v4224_v23 = vpop.f32.mrf.mxu1 }
 0x39a   : > { %v4439_v51 = vpop.f32.mrf.mxu0 }
 0x39b   : > { %v4227_v25 = vpop.f32.mrf.mxu1 }
 0x39c   : > { %v4228_v30 = vadd.f32 %v4227_v25, %v7736_v2  ;;  %v4442_v43 = vpop.f32.mrf.mxu0 }
 0x39d   : > { %v7830_v5 = vadd.f32 %v4442_v43, %v4218_v52  ;;  %v4229_v50 = vpop.f32.mrf.mxu1 }
 0x39e   : > { %v4444_v16 = vpop.f32.mrf.mxu0 }
 0x39f   : > { %v4232_v33 = vpop.f32.mrf.mxu1 }
 0x3a0   : > { %v4233_v10 = vadd.f32 %v4232_v33, %v7739_v6  ;;  %v4447_v26 = vpop.f32.mrf.mxu0 }
 0x3a1   : > { %v7833_v20 = vadd.f32 %v4447_v26, %v4223_v1  ;;  %v4234_v37 = vpop.f32.mrf.mxu1 }
 0x3a2   : > { %v4449_v17 = vpop.f32.mrf.mxu0 }
 0x3a3   : > { %v4237_v60 = vpop.f32.mrf.mxu1 }
 0x3a4   : > { %v4238_v63 = vadd.f32 %v4237_v60, %v7742_v19  ;;  %v4452_v21 = vpop.f32.mrf.mxu0 }
 0x3a5   : > { %v7836_v49 = vadd.f32 %v4452_v21, %v4228_v30  ;;  %v4239_v2 = vpop.f32.mrf.mxu1 }
 0x3a6   : > { %v4454_v28 = vpop.f32.mrf.mxu0 }
 0x3a7   : > { %v4242_v41 = vpop.f32.mrf.mxu1 }
 0x3a8   : > { %v4243_v32 = vadd.f32 %v4242_v41, %v7745_v40  ;;  %v4457_v44 = vpop.f32.mrf.mxu0 }
 0x3a9   : > { %v7839_v55 = vadd.f32 %v4457_v44, %v4233_v10  ;;  %v4244_v6 = vpop.f32.mrf.mxu1 }
 0x3aa   : > { %v4459_v36 = vpop.f32.mrf.mxu0 }
 0x3ab   : > { %v4247_v18 = vpop.f32.mrf.mxu1 }
 0x3ac   : > { %v4248_v58 = vadd.f32 %v4247_v18, %v7748_v34  ;;  %v4462_v59 = vpop.f32.mrf.mxu0 }
 0x3ad   : > { %v7842_v52 = vadd.f32 %v4462_v59, %v4238_v63  ;;  %v4249_v19 = vpop.f32.mrf.mxu1 }
 0x3ae   : > { %v4464_v42 = vpop.f32.mrf.mxu0 }
 0x3af   : > { %v4252_v7 = vpop.f32.mrf.mxu1 }
 0x3b0   : > { %v4253_v8 = vadd.f32 %v4252_v7, %v7751_v47  ;;  %v4467_v45 = vpop.f32.mrf.mxu0 }
 0x3b1   : > { %v7845_v1 = vadd.f32 %v4467_v45, %v4243_v32  ;;  %v4254_v40 = vpop.f32.mrf.mxu1 }
 0x3b2   : > { %v4469_v4 = vpop.f32.mrf.mxu0 }
 0x3b3   : > { %v4257_v23 = vpop.f32.mrf.mxu1 }
 0x3b4   : > { %v4258_v51 = vadd.f32 %v4257_v23, %v7754_v35  ;;  %v4472_v25 = vpop.f32.mrf.mxu0 }
 0x3b5   : > { %v7848_v30 = vadd.f32 %v4472_v25, %v4248_v58  ;;  %v4259_v34 = vpop.f32.mrf.mxu1 }
 0x3b6   : > { %v4474_v43 = vpop.f32.mrf.mxu0 }
 0x3b7   : > { %v4262_v50 = vpop.f32.mrf.mxu1 }
 0x3b8   : > { %v4263_v16 = vadd.f32 %v4262_v50, %v7757_v38  ;;  %v4477_v33 = vpop.f32.mrf.mxu0 }
 0x3b9   : > { %v7851_v10 = vadd.f32 %v4477_v33, %v4253_v8  ;;  %v4264_v47 = vpop.f32.mrf.mxu1 }
 0x3ba   : > { %v4479_v26 = vpop.f32.mrf.mxu0 }
 0x3bb   : > { %v4267_v37 = vpop.f32.mrf.mxu1 }
 0x3bc   : > { %v4268_v17 = vadd.f32 %v4267_v37, %v7760_v13  ;;  %v4482_v60 = vpop.f32.mrf.mxu0 }
 0x3bd   : > { %v7854_v63 = vadd.f32 %v4482_v60, %v4258_v51  ;;  %v4269_v35 = vpop.f32.mrf.mxu1 }
 0x3be   : > { %v4484_v21 = vpop.f32.mrf.mxu0 }
 0x3bf   : > { %v4272_v2 = vpop.f32.mrf.mxu1 }
 0x3c0   : > { %v4273_v28 = vadd.f32 %v4272_v2, %v7764_v24  ;;  %v4487_v41 = vpop.f32.mrf.mxu0 }
 0x3c1   : > { %v7857_v32 = vadd.f32 %v4487_v41, %v4263_v16  ;;  %v4274_v38 = vpop.f32.mrf.mxu1 }
 0x3c2   : > { %v4489_v44 = vpop.f32.mrf.mxu0 }
 0x3c3   : > { %v4277_v6 = vpop.f32.mrf.mxu1 }
 0x3c4   : > { %v4278_v36 = vadd.f32 %v4277_v6, %v7768_v39  ;;  %v4492_v18 = vpop.f32.mrf.mxu0 }
 0x3c5   : > { %v7860_v58 = vadd.f32 %v4492_v18, %v4268_v17  ;;  %v4279_v13 = vpop.f32.mrf.mxu1 }
 0x3c6   : > { %v4494_v59 = vpop.f32.mrf.mxu0 }
 0x3c7   : > { %v4282_v19 = vpop.f32.mrf.mxu1 }
 0x3c8   : > { %v4283_v42 = vadd.f32 %v4282_v19, %v7771_v9  ;;  %v4497_v7 = vpop.f32.mrf.mxu0 }
 0x3c9   : > { %v7863_v8 = vadd.f32 %v4497_v7, %v4273_v28  ;;  %v4284_v24 = vpop.f32.mrf.mxu1 }
 0x3ca   : > { %v4499_v45 = vpop.f32.mrf.mxu0 }
 0x3cb   : > { %v4287_v40 = vpop.f32.mrf.mxu1 }
 0x3cc   : > { %v4288_v4 = vadd.f32 %v4287_v40, %v7775_v29  ;;  %v4502_v23 = vpop.f32.mrf.mxu0 }
 0x3cd   : > { %v7866_v51 = vadd.f32 %v4502_v23, %v4278_v36  ;;  %v4289_v39 = vpop.f32.mrf.mxu1 }
 0x3ce   : > { %v4504_v25 = vpop.f32.mrf.mxu0 }
 0x3cf   : > { %v4292_v34 = vpop.f32.mrf.mxu1 }
 0x3d0   : > { %v4293_v43 = vadd.f32 %v4292_v34, %v7779_v61  ;;  %v4507_v50 = vpop.f32.mrf.mxu0 }
 0x3d1   : > { %v7869_v16 = vadd.f32 %v4507_v50, %v4283_v42  ;;  %v4294_v9 = vpop.f32.mrf.mxu1 }
 0x3d2   : > { %v4509_v33 = vpop.f32.mrf.mxu0 }
 0x3d3   : > { %v5124_v47 = vpop.f32.mrf.mxu1 }
 0x3d4   : > { %v4512_v26 = vpop.f32.mrf.mxu0  ;;  %v4593_v21 = vadd.f32 %v5124_v47, %v7785_v48 }
 0x3d5   : > { %v7871_v37 = vadd.f32 %v4512_v26, %v4288_v4  ;;  %v4587_v17 = vpop.f32.mrf.mxu1 }
 0x3d6   : > { %v4514_v60 = vpop.f32.mrf.mxu0  ;;  %v4588_v29 = vadd.f32 %v4587_v17, %v7782_v3  ;;  %v4747_v6 = vmax.f32 %v4593_v21, 0.0 }
 0x3d7   : > { %v5127_v35 = vpop.f32.mrf.mxu1 }
 0x3d8   : > { %v4517_v2 = vpop.f32.mrf.mxu0  ;;  %v4746_v28 = vmax.f32 %v4588_v29, 0.0  ;;  %v4603_v59 = vadd.f32 %v5127_v35, %v7791_v31 }
 0x3d9   : > { %v7875_v41 = vadd.f32 %v4517_v2, %v4293_v43  ;;  %v4597_v61 = vpop.f32.mrf.mxu1 }
 0x3da   : > { %4778 = vxpose.xlu0.b32.start [1/16] (narrow) %v4746_v28, 8  ;;  %v4519_v38 = vpop.f32.mrf.mxu0  ;;  %v4598_v36 = vadd.f32 %v4597_v61, %v7788_v12  ;;  %v4749_v42 = vmax.f32 %v4603_v59, 0.0 }
 0x3db   : > { %v5130_v44 = vpop.f32.mrf.mxu1 }
 0x3dc   : > { %v4748_v3 = vmax.f32 %v4598_v36, 0.0  ;;  %v4613_v40 = vadd.f32 %v5130_v44, %v7797_v62 }
 0x3dd   : > { %v4607_v18 = vpop.f32.mrf.mxu1 }
 0x3de   : > { %4779 = vxpose.xlu0.b32.cont [2/16] (narrow) %v4747_v6, 8  ;;  %v4608_v7 = vadd.f32 %v4607_v18, %v7794_v14  ;;  %v4751_v39 = vmax.f32 %v4613_v40, 0.0 }
 0x3df   : > { %v5133_v13 = vpop.f32.mrf.mxu1 }
 0x3e0   : > { %v4750_v4 = vmax.f32 %v4608_v7, 0.0  ;;  %v4623_v43 = vadd.f32 %v5133_v13, %v7803_v54 }
 0x3e1   : > { %v4617_v19 = vpop.f32.mrf.mxu1 }
 0x3e2   : > { %4780 = vxpose.xlu0.b32.cont [3/16] (narrow) %v4748_v3, 8  ;;  %v4618_v25 = vadd.f32 %v4617_v19, %v7800_v0  ;;  %v4753_v33 = vmax.f32 %v4623_v43, 0.0 }
 0x3e3   : > { %v5136_v48 = vpop.f32.mrf.mxu1 }
 0x3e4   : > { %v4752_v50 = vmax.f32 %v4618_v25, 0.0  ;;  %v4633_v60 = vadd.f32 %v5136_v48, %v7809_v22 }
 0x3e5   : > { %v4627_v24 = vpop.f32.mrf.mxu1 }
 0x3e6   : > { %4781 = vxpose.xlu0.b32.cont [4/16] (narrow) %v4749_v42, 8  ;;  %v4628_v47 = vadd.f32 %v4627_v24, %v7806_v56  ;;  %v4755_v54 = vmax.f32 %v4633_v60, 0.0 }
 0x3e7   : > { %v5139_v45 = vpop.f32.mrf.mxu1 }
 0x3e8   : > { %v4754_v0 = vmax.f32 %v4628_v47, 0.0 }
 0x3e9   : > { %v4637_v23 = vpop.f32.mrf.mxu1 }
 0x3ea   : > { %4782 = vxpose.xlu0.b32.cont [5/16] (narrow) %v4750_v4, 8  ;;  %v4638_v2 = vadd.f32 %v4637_v23, %v7812_v27 }
 0x3eb   : > { %v5142_v12 = vpop.f32.mrf.mxu1 }
 0x3ec   : > { %v4756_v38 = vmax.f32 %v4638_v2, 0.0 }
 0x3ed   : > { %v4647_v31 = vpop.f32.mrf.mxu1 }
 0x3ee   : > { %4783 = vxpose.xlu0.b32.cont [6/16] (narrow) %v4751_v39, 8  ;;  %v4648_v36 = vadd.f32 %v4647_v31, %v7818_v57 }
 0x3ef   : > { %v5145_v34 = vpop.f32.mrf.mxu1 }
 0x3f0   : > { %v4758_v59 = vmax.f32 %v4648_v36, 0.0 }
 0x3f1   : > { %v4657_v9 = vpop.f32.mrf.mxu1 }
 0x3f2   : > { %4784 = vxpose.xlu0.b32.cont [7/16] (narrow) %v4752_v50, 8  ;;  %v4658_v48 = vadd.f32 %v4657_v9, %v7824_v15 }
 0x3f3   : > { %v5148_v14 = vpop.f32.mrf.mxu1 }
 0x3f4   : > { %v4673_v29 = vadd.f32 %v5148_v14, %v7833_v20  ;;  %v4760_v24 = vmax.f32 %v4658_v48, 0.0 }
 0x3f5   : > { %v4667_v62 = vpop.f32.mrf.mxu1 }
 0x3f6   : > { %4785 = vxpose.xlu0.b32.cont [8/16] (narrow) %v4753_v33, 8  ;;  %v4668_v26 = vadd.f32 %v4667_v62, %v7830_v5  ;;  %v4763_v28 = vmax.f32 %v4673_v29, 0.0  ;;  %v4643_v5 = vadd.f32 %v5139_v45, %v7815_v46 }
 0x3f7   : > { %v5151_v17 = vpop.f32.mrf.mxu1 }
 0x3f8   : > { %v4762_v35 = vmax.f32 %v4668_v26, 0.0  ;;  %v4683_v22 = vadd.f32 %v5151_v17, %v7839_v55  ;;  %v4757_v6 = vmax.f32 %v4643_v5, 0.0 }
 0x3f9   : > { %v4677_v21 = vpop.f32.mrf.mxu1 }
 0x3fa   : > { %4810 = vxpose.xlu1.b32.start [1/16] (narrow) %v4762_v35, 8  ;;  %4786 = vxpose.xlu0.b32.cont [9/16] (narrow) %v4754_v0, 8  ;;  %v4678_v56 = vadd.f32 %v4677_v21, %v7836_v49  ;;  %v4765_v18 = vmax.f32 %v4683_v22, 0.0  ;;  %v4653_v49 = vadd.f32 %v5142_v12, %v7821_v11 }
 0x3fb   : > { %v5154_v61 = vpop.f32.mrf.mxu1 }
 0x3fc   : > { %v4764_v44 = vmax.f32 %v4678_v56, 0.0  ;;  %v4693_v46 = vadd.f32 %v5154_v61, %v7845_v1  ;;  %v4759_v19 = vmax.f32 %v4653_v49, 0.0 }
 0x3fd   : > { %v4687_v20 = vpop.f32.mrf.mxu1 }
 0x3fe   : > { %4811 = vxpose.xlu1.b32.cont [2/16] (narrow) %v4763_v28, 8  ;;  %4787 = vxpose.xlu0.b32.cont [10/16] (narrow) %v4755_v54, 8  ;;  %v4688_v27 = vadd.f32 %v4687_v20, %v7842_v52  ;;  %v4767_v42 = vmax.f32 %v4693_v46, 0.0  ;;  %v4663_v52 = vadd.f32 %v5145_v34, %v7827_v53 }
 0x3ff   : > { %v5157_v13 = vpop.f32.mrf.mxu1 }
 0x400   : > { %v4766_v3 = vmax.f32 %v4688_v27, 0.0  ;;  %v4703_v11 = vadd.f32 %v5157_v13, %v7851_v10  ;;  %v4761_v40 = vmax.f32 %v4663_v52, 0.0 }
 0x401   : > { %v4697_v55 = vpop.f32.mrf.mxu1 }
 0x402   : > { %4812 = vxpose.xlu1.b32.cont [3/16] (narrow) %v4764_v44, 8  ;;  %4788 = vxpose.xlu0.b32.cont [11/16] (narrow) %v4756_v38, 8  ;;  %v4698_v57 = vadd.f32 %v4697_v55, %v7848_v30  ;;  %v4769_v4 = vmax.f32 %v4703_v11, 0.0 }
 0x403   : > { %v5160_v7 = vpop.f32.mrf.mxu1 }
 0x404   : > { %v4768_v45 = vmax.f32 %v4698_v57, 0.0  ;;  %v4713_v30 = vadd.f32 %v5160_v7, %v7857_v32 }
 0x405   : > { %v4707_v1 = vpop.f32.mrf.mxu1 }
 0x406   : > { %4813 = vxpose.xlu1.b32.cont [4/16] (narrow) %v4765_v18, 8  ;;  %4789 = vxpose.xlu0.b32.cont [12/16] (narrow) %v4757_v6, 8  ;;  %v4708_v23 = vadd.f32 %v4707_v1, %v7854_v63  ;;  %v4771_v53 = vmax.f32 %v4713_v30, 0.0 }
 0x407   : > { %v5163_v15 = vpop.f32.mrf.mxu1 }
 0x408   : > { %v4770_v12 = vmax.f32 %v4708_v23, 0.0  ;;  %v4723_v31 = vadd.f32 %v5163_v15, %v7863_v8 }
 0x409   : > { %v4717_v39 = vpop.f32.mrf.mxu1 }
 0x40a   : > { %4814 = vxpose.xlu1.b32.cont [5/16] (narrow) %v4766_v3, 8  ;;  %4790 = vxpose.xlu0.b32.cont [13/16] (narrow) %v4758_v59, 8  ;;  %v4718_v25 = vadd.f32 %v4717_v39, %v7860_v58  ;;  %v4773_v50 = vmax.f32 %v4723_v31, 0.0 }
 0x40b   : > { %v5166_v10 = vpop.f32.mrf.mxu1 }
 0x40c   : > { %v4772_v34 = vmax.f32 %v4718_v25, 0.0  ;;  %v4733_v32 = vadd.f32 %v5166_v10, %v7869_v16 }
 0x40d   : > { %v4727_v43 = vpop.f32.mrf.mxu1 }
 0x40e   : > { %4815 = vxpose.xlu1.b32.cont [6/16] (narrow) %v4767_v42, 8  ;;  %4791 = vxpose.xlu0.b32.cont [14/16] (narrow) %v4759_v19, 8  ;;  %v4728_v63 = vadd.f32 %v4727_v43, %v7866_v51  ;;  %v4775_v47 = vmax.f32 %v4733_v32, 0.0 }
 0x40f   : > { %v5169_v9 = vpop.f32.mrf.mxu1 }
 0x410   : > { %v4774_v14 = vmax.f32 %v4728_v63, 0.0  ;;  %v4743_v8 = vadd.f32 %v5169_v9, %v7875_v41 }
 0x411   : > { %v4737_v33 = vpop.f32.mrf.mxu1 }
 0x412   : > { %4816 = vxpose.xlu1.b32.cont [7/16] (narrow) %v4768_v45, 8  ;;  %4792 = vxpose.xlu0.b32.cont [15/16] (narrow) %v4760_v24, 8  ;;  %v4738_v58 = vadd.f32 %v4737_v33, %v7871_v37  ;;  %v4777_v26 = vmax.f32 %v4743_v8, 0.0 }
 0x414   : > { %v4776_v62 = vmax.f32 %v4738_v58, 0.0 }
 0x416   : > { %4817 = vxpose.xlu1.b32.cont [8/16] (narrow) %v4769_v4, 8  ;;  %4793 = vxpose.xlu0.b32.end [16/16] (narrow) %v4761_v40, 8 }
 0x41a   : > { %4818 = vxpose.xlu1.b32.cont [9/16] (narrow) %v4770_v12, 8 }
 0x41e   : > { %4819 = vxpose.xlu1.b32.cont [10/16] (narrow) %v4771_v53, 8 }
 0x422   : > { %4820 = vxpose.xlu1.b32.cont [11/16] (narrow) %v4772_v34, 8 }
 0x426   : > { %4821 = vxpose.xlu1.b32.cont [12/16] (narrow) %v4773_v50, 8 }
 0x42a   : > { %4822 = vxpose.xlu1.b32.cont [13/16] (narrow) %v4774_v14, 8 }
 0x42e   : > { %4823 = vxpose.xlu1.b32.cont [14/16] (narrow) %v4775_v47, 8 }
 0x432   : > { %4824 = vxpose.xlu1.b32.cont [15/16] (narrow) %v4776_v62, 8 }
 0x436   : > { %4825 = vxpose.xlu1.b32.end [16/16] (narrow) %v4777_v26, 8 }
 0x456   : > { %v4794_v51 = vpop.trf.xlu0 }
 0x457   : > { %4842 = vst [vmem:[%s224_s15] sm:$0xff] %v4794_v51 }
 0x476   : > { %v4826_v16 = vpop.trf.xlu1 }
 0x477   : > { %4843 = vst [vmem:[%s224_s15 + $0x8] sm:$0xff] %v4826_v16 }
 0x478 PF: > { %s15_s18 = sadd.s32 1, %s5189_s18  }
 0x479   : > { %p12_p4 = scmp.ge.s32.totalorder %s15_s18, 4  }
 0x47b   :  { %14 = sbr.rel (!%p12_p4) target bundleno = 1 (0x1), region = 74 }

</bundles_post_ra>
